<compile_context>
chip_gen: v7x
topology: tpu7x:2x2x1
jax: 0.10.0
libtpu: 0.0.40
codegen_flags: <defaults>
</compile_context>

<pallas_src>
import numpy as np
import jax
import jax.numpy as jnp
from jax.experimental import pallas as pl
from jax.experimental.pallas import tpu as pltpu

# ----------------------------- configuration --------------------------------
BOS_ID = 1                     # utils.Vocab.bos_id stand-in
SRC_VOCAB = 40
TGT_VOCAB = 50
EMB_DIM = 16
ENC_HIDDEN = 32                # per-direction encoder hidden
DEC_HIDDEN = 2 * ENC_HIDDEN    # decoder hidden = 2 * encoder hidden
ATTN_DIM = DEC_HIDDEN          # Bahdanau attention projection size
BATCH = 2
SRC_LEN = 8
TGT_LEN = 6
NEG_INF = -1e30


# ------------------------- fused bidirectional encoder -----------------------
def _bi_encoder_kernel(emb_ref, valid_ref,
                       wih_f_ref, whh_f_ref, b_f_ref,
                       wih_b_ref, whh_b_ref, b_b_ref,
                       w_att_enc_ref,
                       enc_ref, encp_ref, hn_ref, cn_ref):
    """Whole bidirectional encoder in a single kernel invocation (no grid).

    emb   : (S,B,E) embedded source (time-major).
    valid : (S,B,1) 1.0 where t < length else 0.0 (packed-sequence masking).
    enc   : (B,S,2H) batch-major outputs (fwd half at [:,t,:H], bwd at [:,S-1-t,H:]).
    encp  : (B,S,A) = enc @ W_att_enc (hoisted Bahdanau projection).
    hn/cn : (B,2H) final [fwd ; bwd] states -> decoder initial state.
    """
    S, B, E = emb_ref.shape
    H = whh_f_ref.shape[0]

    wih_f = wih_f_ref[...]; whh_f = whh_f_ref[...]; b_f = b_f_ref[...]
    wih_b = wih_b_ref[...]; whh_b = whh_b_ref[...]; b_b = b_b_ref[...]
    w_enc_f = w_att_enc_ref[0:H, :]          # forward-half rows of W_att_enc
    w_enc_b = w_att_enc_ref[H:2 * H, :]      # backward-half rows

    def lstm_cell(x, h, c, wih, whh, b):
        gates = (jnp.dot(x, wih, preferred_element_type=jnp.float32)
                 + jnp.dot(h, whh, preferred_element_type=jnp.float32) + b)
        i_g = jax.nn.sigmoid(gates[:, 0 * H:1 * H])
        f_g = jax.nn.sigmoid(gates[:, 1 * H:2 * H])
        g_g = jnp.tanh(gates[:, 2 * H:3 * H])
        o_g = jax.nn.sigmoid(gates[:, 3 * H:4 * H])
        c_new = f_g * c + i_g * g_g
        h_new = o_g * jnp.tanh(c_new)
        return h_new, c_new

    h_f = jnp.zeros((B, H), jnp.float32); c_f = jnp.zeros((B, H), jnp.float32)
    h_b = jnp.zeros((B, H), jnp.float32); c_b = jnp.zeros((B, H), jnp.float32)

    encp_f = [None] * S
    encp_b = [None] * S

    # statically unrolled time loop: fwd direction step t, bwd direction step S-1-t
    for t in range(S):
        tb = S - 1 - t
        v_f = valid_ref[t]                                   # (B,1)
        v_b = valid_ref[tb]

        hn, cn = lstm_cell(emb_ref[t], h_f, c_f, wih_f, whh_f, b_f)
        h_f = v_f * hn + (1.0 - v_f) * h_f                   # freeze state at pads
        c_f = v_f * cn + (1.0 - v_f) * c_f

        hn, cn = lstm_cell(emb_ref[tb], h_b, c_b, wih_b, whh_b, b_b)
        h_b = v_b * hn + (1.0 - v_b) * h_b
        c_b = v_b * cn + (1.0 - v_b) * c_b

        o_f = v_f * h_f                                      # zero outputs at pads
        o_b = v_b * h_b
        enc_ref[:, pl.ds(t, 1), 0:H] = o_f[:, None, :]
        enc_ref[:, pl.ds(tb, 1), H:2 * H] = o_b[:, None, :]
        encp_f[t] = jnp.dot(o_f, w_enc_f, preferred_element_type=jnp.float32)
        encp_b[tb] = jnp.dot(o_b, w_enc_b, preferred_element_type=jnp.float32)

    for t in range(S):
        encp_ref[:, pl.ds(t, 1), :] = (encp_f[t] + encp_b[t])[:, None, :]

    hn_ref[:, 0:H] = h_f
    hn_ref[:, H:2 * H] = h_b
    cn_ref[:, 0:H] = c_f
    cn_ref[:, H:2 * H] = c_b


def bi_encoder(params, src, lengths):
    """BiEncoder: embedding gather (XLA) + fully fused bidirectional LSTM kernel."""
    B, S = src.shape
    H, A = ENC_HIDDEN, ATTN_DIM

    emb = jnp.transpose(params['src_emb'][src], (1, 0, 2))                 # (S,B,E)
    # NOTE: assumes every row has length >= 1 (zero-length rows would NaN the softmax).
    valid = (jnp.arange(S)[:, None] < lengths[None, :]
             ).astype(jnp.float32)[:, :, None]                             # (S,B,1)

    vmem = pl.BlockSpec(memory_space=pltpu.MemorySpace.VMEM)
    enc, encp, h_n, c_n = pl.pallas_call(
        _bi_encoder_kernel,
        out_shape=(
            jax.ShapeDtypeStruct((B, S, 2 * H), jnp.float32),   # batch-major outputs
            jax.ShapeDtypeStruct((B, S, A), jnp.float32),       # enc @ W_att_enc
            jax.ShapeDtypeStruct((B, 2 * H), jnp.float32),      # final h
            jax.ShapeDtypeStruct((B, 2 * H), jnp.float32),      # final c
        ),
        in_specs=[vmem] * 9,
        out_specs=(vmem, vmem, vmem, vmem),
    )(emb, valid,
      params['Wih_f'], params['Whh_f'], params['b_f'],
      params['Wih_b'], params['Whh_b'], params['b_b'],
      params['W_att_enc'])
    return enc, encp, (h_n, c_n)


# ---------------- fully fused Bahdanau-attention decode loop -----------------
def _decoder_kernel(tf_ref,                                   # SMEM scalar prefetch
                    tgt_ref, emb_tbl_ref, h0_ref, c0_ref, enc_ref, encp_ref,
                    amask_ref,
                    w_att_h_ref, b_att_ref, v_att_ref,
                    wih_e_ref, wih_c_ref, whh_ref, b_lstm_ref,
                    w_out_ref, b_out_ref,
                    logits_ref,                               # (1,B,Vp) output block
                    h_s, c_s, id_s):                          # VMEM carries
    """One grid step = one decoder timestep; state carried in VMEM scratch."""
    step = pl.program_id(0)
    B, Hd = h0_ref.shape
    V = emb_tbl_ref.shape[0]
    Vp = w_out_ref.shape[1]

    @pl.when(step == 0)
    def _init():
        h_s[...] = h0_ref[...]
        c_s[...] = c0_ref[...]
        id_s[...] = jnp.full(id_s.shape, BOS_ID, jnp.int32)   # BOS start token

    h_prev = h_s[...]
    c_prev = c_s[...]

    # --- in-kernel embedding gather: one-hot (B,V) @ (V,E) on the MXU ----------
    ids = id_s[...]                                                        # (B,1)
    onehot = (jax.lax.broadcasted_iota(jnp.int32, (B, V), 1) == ids
              ).astype(jnp.float32)                                        # (B,V)
    emb = jnp.dot(onehot, emb_tbl_ref[...], preferred_element_type=jnp.float32)
    # TODO(synk): nn.Dropout(p=0.2) on the embedded decoder input omitted (eval mode).

    # --- Bahdanau additive attention on the *previous* decoder state -----------
    q = (jnp.dot(h_prev, w_att_h_ref[...], preferred_element_type=jnp.float32)
         + b_att_ref[...])                                                 # (B,A)
    e = jnp.tanh(encp_ref[...] + q[:, None, :])                            # (B,S,A)
    scores = jnp.sum(e * v_att_ref[...], axis=-1) + amask_ref[...]         # (B,S)
    m = jnp.max(scores, axis=-1, keepdims=True)
    p = jnp.exp(scores - m)
    attn = p * pl.reciprocal(jnp.sum(p, axis=-1, keepdims=True), approx=True)

    # context: VPU broadcast-multiply + reduce over S (no tiny batched MXU matmul)
    ctx = jnp.sum(attn[:, :, None] * enc_ref[...], axis=1)                 # (B,Hd)

    # --- LSTM cell over [embedded ; context] via split input weights ----------
    gates = (jnp.dot(emb, wih_e_ref[...], preferred_element_type=jnp.float32)
             + jnp.dot(ctx, wih_c_ref[...], preferred_element_type=jnp.float32)
             + jnp.dot(h_prev, whh_ref[...], preferred_element_type=jnp.float32)
             + b_lstm_ref[...])                                            # (B,4Hd)
    i_g = jax.nn.sigmoid(gates[:, 0 * Hd:1 * Hd])
    f_g = jax.nn.sigmoid(gates[:, 1 * Hd:2 * Hd])
    g_g = jnp.tanh(gates[:, 2 * Hd:3 * Hd])
    o_g = jax.nn.sigmoid(gates[:, 3 * Hd:4 * Hd])
    c_new = f_g * c_prev + i_g * g_g
    h_new = o_g * jnp.tanh(c_new)
    h_s[...] = h_new
    c_s[...] = c_new

    # --- vocab projection (lane-padded; padded columns biased to -1e30) -------
    logits = (jnp.dot(h_new, w_out_ref[...], preferred_element_type=jnp.float32)
              + b_out_ref[...])                                            # (B,Vp)
    logits_ref[0] = logits

    # --- greedy argmax (first max index) entirely in-kernel --------------------
    lane = jax.lax.broadcasted_iota(jnp.int32, (B, Vp), 1)
    mx = jnp.max(logits, axis=-1, keepdims=True)
    greedy = jnp.min(jnp.where(logits == mx, lane, Vp), axis=-1, keepdims=True)

    # --- next decoder input: teacher forcing (tgt token) vs greedy prediction --
    use_tf = tf_ref[step] > 0
    id_s[...] = jnp.where(use_tf, tgt_ref[0], greedy)


def fused_decode(params, tf_flags, tgt, h0, c0, enc, encp, amask, w_out_p, b_out_p):
    B, S, Hd = enc.shape
    T = tgt.shape[1]
    A = encp.shape[-1]
    V, E = params['tgt_emb'].shape
    Vp = w_out_p.shape[-1]

    tgt_tb = jnp.transpose(tgt.astype(jnp.int32), (1, 0))[:, :, None]      # (T,B,1)

    grid_spec = pltpu.PrefetchScalarGridSpec(
        num_scalar_prefetch=1,                                # tf flags -> SMEM
        grid=(T,),
        in_specs=[
            pl.BlockSpec((1, B, 1), lambda t, tf: (t, 0, 0)),          # tgt tokens
            pl.BlockSpec((V, E), lambda t, tf: (0, 0)),                # tgt emb table
            pl.BlockSpec((B, Hd), lambda t, tf: (0, 0)),               # h0
            pl.BlockSpec((B, Hd), lambda t, tf: (0, 0)),               # c0
            pl.BlockSpec((B, S, Hd), lambda t, tf: (0, 0, 0)),         # encoder outputs
            pl.BlockSpec((B, S, A), lambda t, tf: (0, 0, 0)),          # enc @ W_att_enc
            pl.BlockSpec((B, S), lambda t, tf: (0, 0)),                # additive mask
            pl.BlockSpec((Hd, A), lambda t, tf: (0, 0)),               # W_att_h
            pl.BlockSpec((1, A), lambda t, tf: (0, 0)),                # b_att
            pl.BlockSpec((1, A), lambda t, tf: (0, 0)),                # v_att
            pl.BlockSpec((E, 4 * Hd), lambda t, tf: (0, 0)),           # Wih_e
            pl.BlockSpec((Hd, 4 * Hd), lambda t, tf: (0, 0)),          # Wih_c
            pl.BlockSpec((Hd, 4 * Hd), lambda t, tf: (0, 0)),          # Whh_d
            pl.BlockSpec((1, 4 * Hd), lambda t, tf: (0, 0)),           # b_d
            pl.BlockSpec((Hd, Vp), lambda t, tf: (0, 0)),              # W_out (padded)
            pl.BlockSpec((1, Vp), lambda t, tf: (0, 0)),               # b_out (padded)
        ],
        out_specs=pl.BlockSpec((1, B, Vp), lambda t, tf: (t, 0, 0)),
        scratch_shapes=[
            pltpu.VMEM((B, Hd), jnp.float32),      # h carry
            pltpu.VMEM((B, Hd), jnp.float32),      # c carry
            pltpu.VMEM((B, 1), jnp.int32),         # current decoder input ids
        ],
    )
    return pl.pallas_call(
        _decoder_kernel,
        grid_spec=grid_spec,
        out_shape=jax.ShapeDtypeStruct((T, B, Vp), jnp.float32),
        compiler_params=pltpu.CompilerParams(dimension_semantics=("arbitrary",)),
    )(tf_flags.astype(jnp.int32), tgt_tb, params['tgt_emb'], h0, c0, enc, encp,
      amask,
      params['W_att_h'], params['b_att'], params['v_att'],
      params['Wih_e'], params['Wih_c'], params['Whh_d'], params['b_d'],
      w_out_p, b_out_p)


# --------------------------------- forward ------------------------------------
@jax.jit
def _forward_impl(params, src, tgt, lengths, tf_flags):
    Hd = DEC_HIDDEN
    V = params['W_out'].shape[-1]
    Vp = pl.cdiv(V, 128) * 128

    # ----- encoder: single gridless Pallas call --------------------------------
    enc, encp, (h0, c0) = bi_encoder(params, src, lengths)

    # pack_padded/pad_packed round trip is identity here; pad token id == 0
    amask = jnp.where(src == 0, jnp.float32(NEG_INF), jnp.float32(0.0))     # (B,S)

    # lane-pad vocab projection to one full 128-wide tile (padded cols -> -1e30)
    if Vp > V:
        w_out_p = jnp.concatenate(
            [params['W_out'], jnp.zeros((Hd, Vp - V), jnp.float32)], axis=-1)
        b_out_p = jnp.concatenate(
            [params['b_out'], jnp.full((1, Vp - V), NEG_INF, jnp.float32)], axis=-1)
    else:
        w_out_p, b_out_p = params['W_out'], params['b_out']

    # ----- decoder: the whole T-step loop is ONE gridded Pallas call -----------
    logits_all = fused_decode(params, tf_flags, tgt, h0, c0, enc, encp, amask,
                              w_out_p, b_out_p)                             # (T,B,Vp)
    return jnp.transpose(logits_all[:, :, :V], (1, 2, 0))                   # (B,V,T)


def forward(params, src, tgt, lengths, teacher_forcing_ratio=0.0):
    T = int(tgt.shape[1])
    # Per-step teacher-forcing draws happen outside the trace (like np.random in
    # the PyTorch loop) but are passed as runtime int32 data -> ONE trace/compile
    # regardless of the sampled flag pattern.
    tf_flags = jnp.asarray(np.random.random(T) < teacher_forcing_ratio,
                           dtype=jnp.int32)
    return _forward_impl(params, src, tgt, lengths, tf_flags)


# ------------------------------ parameter init --------------------------------
def init_params(key):
    ks = jax.random.split(key, 18)
    s = 0.1
    E, H, Hd, A, V = EMB_DIM, ENC_HIDDEN, DEC_HIDDEN, ATTN_DIM, TGT_VOCAB
    params = {
        'src_emb': s * jax.random.normal(ks[0], (SRC_VOCAB, E), jnp.float32),
        'tgt_emb': s * jax.random.normal(ks[1], (TGT_VOCAB, E), jnp.float32),
        # encoder forward-direction LSTM
        'Wih_f': s * jax.random.normal(ks[2], (E, 4 * H), jnp.float32),
        'Whh_f': s * jax.random.normal(ks[3], (H, 4 * H), jnp.float32),
        'b_f':   s * jax.random.normal(ks[4], (1, 4 * H), jnp.float32),
        # encoder backward-direction LSTM
        'Wih_b': s * jax.random.normal(ks[5], (E, 4 * H), jnp.float32),
        'Whh_b': s * jax.random.normal(ks[6], (H, 4 * H), jnp.float32),
        'b_b':   s * jax.random.normal(ks[7], (1, 4 * H), jnp.float32),
        # decoder LSTM over [embedded ; context]  (hidden = 2*H)
        'Wih_e': s * jax.random.normal(ks[8], (E, 4 * Hd), jnp.float32),
        'Wih_c': s * jax.random.normal(ks[9], (Hd, 4 * Hd), jnp.float32),
        'Whh_d': s * jax.random.normal(ks[10], (Hd, 4 * Hd), jnp.float32),
        'b_d':   s * jax.random.normal(ks[11], (1, 4 * Hd), jnp.float32),
        # Bahdanau additive attention: v . tanh(W_enc enc + W_h h + b)
        'W_att_enc': s * jax.random.normal(ks[12], (Hd, A), jnp.float32),
        'W_att_h':   s * jax.random.normal(ks[13], (Hd, A), jnp.float32),
        'b_att':     s * jax.random.normal(ks[14], (1, A), jnp.float32),
        'v_att':     s * jax.random.normal(ks[15], (1, A), jnp.float32),
        # output projection
        'W_out': s * jax.random.normal(ks[16], (Hd, V), jnp.float32),
        'b_out': s * jax.random.normal(ks[17], (1, V), jnp.float32),
    }
    # padding token 0 embeds to zero
    params['src_emb'] = params['src_emb'].at[0].set(0.0)
    params['tgt_emb'] = params['tgt_emb'].at[0].set(0.0)
    return params


# ----------------------------------- main --------------------------------------
if __name__ == "__main__":
    np.random.seed(0)
    key = jax.random.PRNGKey(0)
    pk, sk, tk = jax.random.split(key, 3)

    params = init_params(pk)

    # source: padded token ids (0 = pad), lengths sorted descending
    lengths = jnp.array([SRC_LEN, 5], dtype=jnp.int32)
    src = jax.random.randint(sk, (BATCH, SRC_LEN), 1, SRC_VOCAB, dtype=jnp.int32)
    pad_mask = jnp.arange(SRC_LEN)[None, :] < lengths[:, None]
    src = jnp.where(pad_mask, src, 0)

    tgt = jax.random.randint(tk, (BATCH, TGT_LEN), 1, TGT_VOCAB, dtype=jnp.int32)

    # greedy decoding path (no teacher forcing)
    out = forward(params, src, tgt, lengths, teacher_forcing_ratio=0.0)
    out = jax.block_until_ready(out)
    assert out.shape == (BATCH, TGT_VOCAB, TGT_LEN), out.shape
    assert bool(jnp.all(jnp.isfinite(out)))

    # teacher-forcing path reuses the SAME trace (flags are runtime data)
    out_tf = forward(params, src, tgt, lengths, teacher_forcing_ratio=1.0)
    out_tf = jax.block_until_ready(out_tf)
    assert out_tf.shape == (BATCH, TGT_VOCAB, TGT_LEN), out_tf.shape
    assert bool(jnp.all(jnp.isfinite(out_tf)))

    print("KERNEL_OK")
</pallas_src>

<mosaic_0001>
module attributes {stable_mosaic.version = 11 : i64} {
  func.func @_bi_encoder_kernel(%arg0: memref<8x2x16xf32, #tpu.memory_space<vmem>>, %arg1: memref<8x2x1xf32, #tpu.memory_space<vmem>>, %arg2: memref<16x128xf32, #tpu.memory_space<vmem>>, %arg3: memref<32x128xf32, #tpu.memory_space<vmem>>, %arg4: memref<1x128xf32, #tpu.memory_space<vmem>>, %arg5: memref<16x128xf32, #tpu.memory_space<vmem>>, %arg6: memref<32x128xf32, #tpu.memory_space<vmem>>, %arg7: memref<1x128xf32, #tpu.memory_space<vmem>>, %arg8: memref<64x64xf32, #tpu.memory_space<vmem>>, %arg9: memref<2x8x64xf32, #tpu.memory_space<vmem>>, %arg10: memref<2x8x64xf32, #tpu.memory_space<vmem>>, %arg11: memref<2x64xf32, #tpu.memory_space<vmem>>, %arg12: memref<2x64xf32, #tpu.memory_space<vmem>>) attributes {dimension_semantics = [], scalar_prefetch = 0 : i64, scratch_operands = 0 : i64, tpu.core_type = #tpu.core_type<tc>} {
    %c0 = arith.constant 0 : index
    %c0_0 = arith.constant 0 : index
    %0 = vector.load %arg2[%c0, %c0_0] : memref<16x128xf32, #tpu.memory_space<vmem>>, vector<16x128xf32>
    %c0_1 = arith.constant 0 : index
    %c0_2 = arith.constant 0 : index
    %1 = vector.load %arg3[%c0_1, %c0_2] : memref<32x128xf32, #tpu.memory_space<vmem>>, vector<32x128xf32>
    %c0_3 = arith.constant 0 : index
    %c0_4 = arith.constant 0 : index
    %2 = vector.load %arg4[%c0_3, %c0_4] : memref<1x128xf32, #tpu.memory_space<vmem>>, vector<1x128xf32>
    %c0_5 = arith.constant 0 : index
    %c0_6 = arith.constant 0 : index
    %3 = vector.load %arg5[%c0_5, %c0_6] : memref<16x128xf32, #tpu.memory_space<vmem>>, vector<16x128xf32>
    %c0_7 = arith.constant 0 : index
    %c0_8 = arith.constant 0 : index
    %4 = vector.load %arg6[%c0_7, %c0_8] : memref<32x128xf32, #tpu.memory_space<vmem>>, vector<32x128xf32>
    %c0_9 = arith.constant 0 : index
    %c0_10 = arith.constant 0 : index
    %5 = vector.load %arg7[%c0_9, %c0_10] : memref<1x128xf32, #tpu.memory_space<vmem>>, vector<1x128xf32>
    %c0_11 = arith.constant 0 : index
    %c0_12 = arith.constant 0 : index
    %6 = vector.load %arg8[%c0_11, %c0_12] : memref<64x64xf32, #tpu.memory_space<vmem>>, vector<32x64xf32>
    %c32 = arith.constant 32 : index
    %c0_13 = arith.constant 0 : index
    %7 = vector.load %arg8[%c32, %c0_13] : memref<64x64xf32, #tpu.memory_space<vmem>>, vector<32x64xf32>
    %cst = arith.constant 0.000000e+00 : f32
    %8 = vector.broadcast %cst : f32 to vector<2x32xf32>
    %cst_14 = arith.constant 0.000000e+00 : f32
    %9 = vector.broadcast %cst_14 : f32 to vector<2x32xf32>
    %cst_15 = arith.constant 0.000000e+00 : f32
    %10 = vector.broadcast %cst_15 : f32 to vector<2x32xf32>
    %cst_16 = arith.constant 0.000000e+00 : f32
    %11 = vector.broadcast %cst_16 : f32 to vector<2x32xf32>
    %c0_17 = arith.constant 0 : index
    %c0_18 = arith.constant 0 : index
    %c0_19 = arith.constant 0 : index
    %12 = vector.load %arg1[%c0_17, %c0_18, %c0_19] : memref<8x2x1xf32, #tpu.memory_space<vmem>>, vector<1x2x1xf32>
    %13 = vector.shape_cast %12 : vector<1x2x1xf32> to vector<2x1xf32>
    %c7 = arith.constant 7 : index
    %c0_20 = arith.constant 0 : index
    %c0_21 = arith.constant 0 : index
    %14 = vector.load %arg1[%c7, %c0_20, %c0_21] : memref<8x2x1xf32, #tpu.memory_space<vmem>>, vector<1x2x1xf32>
    %15 = vector.shape_cast %14 : vector<1x2x1xf32> to vector<2x1xf32>
    %c0_22 = arith.constant 0 : index
    %c0_23 = arith.constant 0 : index
    %c0_24 = arith.constant 0 : index
    %16 = vector.load %arg0[%c0_22, %c0_23, %c0_24] : memref<8x2x16xf32, #tpu.memory_space<vmem>>, vector<1x2x16xf32>
    %17 = vector.shape_cast %16 : vector<1x2x16xf32> to vector<2x16xf32>
    %cst_25 = arith.constant dense<0.000000e+00> : vector<2x128xf32>
    %18 = tpu.matmul %17, %0, %cst_25 {dimension_numbers = #tpu.dot_dimension_numbers<[1], [0], [0], [1], [0, 0, 1, 1], [], []>} : vector<2x16xf32>, vector<16x128xf32>, vector<2x128xf32> -> vector<2x128xf32>
    %cst_26 = arith.constant dense<0.000000e+00> : vector<2x128xf32>
    %19 = tpu.matmul %8, %1, %cst_26 {dimension_numbers = #tpu.dot_dimension_numbers<[1], [0], [0], [1], [0, 0, 1, 1], [], []>} : vector<2x32xf32>, vector<32x128xf32>, vector<2x128xf32> -> vector<2x128xf32>
    %20 = arith.addf %18, %19 : vector<2x128xf32>
    %21 = vector.broadcast %2 : vector<1x128xf32> to vector<2x128xf32>
    %22 = arith.addf %20, %21 : vector<2x128xf32>
    %23 = vector.extract_strided_slice %22 {offsets = [0, 0], sizes = [2, 32], strides = [1, 1]} : vector<2x128xf32> to vector<2x32xf32>
    %24 = arith.negf %23 : vector<2x32xf32>
    %25 = math.exp %24 : vector<2x32xf32>
    %cst_27 = arith.constant 1.000000e+00 : f32
    %26 = vector.broadcast %cst_27 : f32 to vector<2x32xf32>
    %27 = arith.addf %26, %25 : vector<2x32xf32>
    %28 = arith.divf %26, %27 : vector<2x32xf32>
    %29 = vector.extract_strided_slice %22 {offsets = [0, 32], sizes = [2, 32], strides = [1, 1]} : vector<2x128xf32> to vector<2x32xf32>
    %30 = arith.negf %29 : vector<2x32xf32>
    %31 = math.exp %30 : vector<2x32xf32>
    %cst_28 = arith.constant 1.000000e+00 : f32
    %32 = vector.broadcast %cst_28 : f32 to vector<2x32xf32>
    %33 = arith.addf %32, %31 : vector<2x32xf32>
    %34 = arith.divf %32, %33 : vector<2x32xf32>
    %35 = vector.extract_strided_slice %22 {offsets = [0, 64], sizes = [2, 32], strides = [1, 1]} : vector<2x128xf32> to vector<2x32xf32>
    %36 = math.tanh %35 : vector<2x32xf32>
    %37 = vector.extract_strided_slice %22 {offsets = [0, 96], sizes = [2, 32], strides = [1, 1]} : vector<2x128xf32> to vector<2x32xf32>
    %38 = arith.negf %37 : vector<2x32xf32>
    %39 = math.exp %38 : vector<2x32xf32>
    %cst_29 = arith.constant 1.000000e+00 : f32
    %40 = vector.broadcast %cst_29 : f32 to vector<2x32xf32>
    %41 = arith.addf %40, %39 : vector<2x32xf32>
    %42 = arith.divf %40, %41 : vector<2x32xf32>
    %43 = arith.mulf %34, %9 : vector<2x32xf32>
    %44 = arith.mulf %28, %36 : vector<2x32xf32>
    %45 = arith.addf %43, %44 : vector<2x32xf32>
    %46 = math.tanh %45 : vector<2x32xf32>
    %47 = arith.mulf %42, %46 : vector<2x32xf32>
    %48 = vector.broadcast %13 : vector<2x1xf32> to vector<2x32xf32>
    %49 = arith.mulf %48, %47 : vector<2x32xf32>
    %cst_30 = arith.constant 1.000000e+00 : f32
    %50 = vector.broadcast %cst_30 : f32 to vector<2x1xf32>
    %51 = arith.subf %50, %13 : vector<2x1xf32>
    %52 = vector.broadcast %51 : vector<2x1xf32> to vector<2x32xf32>
    %53 = arith.mulf %52, %8 : vector<2x32xf32>
    %54 = arith.addf %49, %53 : vector<2x32xf32>
    %55 = vector.broadcast %13 : vector<2x1xf32> to vector<2x32xf32>
    %56 = arith.mulf %55, %45 : vector<2x32xf32>
    %cst_31 = arith.constant 1.000000e+00 : f32
    %57 = vector.broadcast %cst_31 : f32 to vector<2x1xf32>
    %58 = arith.subf %57, %13 : vector<2x1xf32>
    %59 = vector.broadcast %58 : vector<2x1xf32> to vector<2x32xf32>
    %60 = arith.mulf %59, %9 : vector<2x32xf32>
    %61 = arith.addf %56, %60 : vector<2x32xf32>
    %c7_32 = arith.constant 7 : index
    %c0_33 = arith.constant 0 : index
    %c0_34 = arith.constant 0 : index
    %62 = vector.load %arg0[%c7_32, %c0_33, %c0_34] : memref<8x2x16xf32, #tpu.memory_space<vmem>>, vector<1x2x16xf32>
    %63 = vector.shape_cast %62 : vector<1x2x16xf32> to vector<2x16xf32>
    %cst_35 = arith.constant dense<0.000000e+00> : vector<2x128xf32>
    %64 = tpu.matmul %63, %3, %cst_35 {dimension_numbers = #tpu.dot_dimension_numbers<[1], [0], [0], [1], [0, 0, 1, 1], [], []>} : vector<2x16xf32>, vector<16x128xf32>, vector<2x128xf32> -> vector<2x128xf32>
    %cst_36 = arith.constant dense<0.000000e+00> : vector<2x128xf32>
    %65 = tpu.matmul %10, %4, %cst_36 {dimension_numbers = #tpu.dot_dimension_numbers<[1], [0], [0], [1], [0, 0, 1, 1], [], []>} : vector<2x32xf32>, vector<32x128xf32>, vector<2x128xf32> -> vector<2x128xf32>
    %66 = arith.addf %64, %65 : vector<2x128xf32>
    %67 = vector.broadcast %5 : vector<1x128xf32> to vector<2x128xf32>
    %68 = arith.addf %66, %67 : vector<2x128xf32>
    %69 = vector.extract_strided_slice %68 {offsets = [0, 0], sizes = [2, 32], strides = [1, 1]} : vector<2x128xf32> to vector<2x32xf32>
    %70 = arith.negf %69 : vector<2x32xf32>
    %71 = math.exp %70 : vector<2x32xf32>
    %cst_37 = arith.constant 1.000000e+00 : f32
    %72 = vector.broadcast %cst_37 : f32 to vector<2x32xf32>
    %73 = arith.addf %72, %71 : vector<2x32xf32>
    %74 = arith.divf %72, %73 : vector<2x32xf32>
    %75 = vector.extract_strided_slice %68 {offsets = [0, 32], sizes = [2, 32], strides = [1, 1]} : vector<2x128xf32> to vector<2x32xf32>
    %76 = arith.negf %75 : vector<2x32xf32>
    %77 = math.exp %76 : vector<2x32xf32>
    %cst_38 = arith.constant 1.000000e+00 : f32
    %78 = vector.broadcast %cst_38 : f32 to vector<2x32xf32>
    %79 = arith.addf %78, %77 : vector<2x32xf32>
    %80 = arith.divf %78, %79 : vector<2x32xf32>
    %81 = vector.extract_strided_slice %68 {offsets = [0, 64], sizes = [2, 32], strides = [1, 1]} : vector<2x128xf32> to vector<2x32xf32>
    %82 = math.tanh %81 : vector<2x32xf32>
    %83 = vector.extract_strided_slice %68 {offsets = [0, 96], sizes = [2, 32], strides = [1, 1]} : vector<2x128xf32> to vector<2x32xf32>
    %84 = arith.negf %83 : vector<2x32xf32>
    %85 = math.exp %84 : vector<2x32xf32>
    %cst_39 = arith.constant 1.000000e+00 : f32
    %86 = vector.broadcast %cst_39 : f32 to vector<2x32xf32>
    %87 = arith.addf %86, %85 : vector<2x32xf32>
    %88 = arith.divf %86, %87 : vector<2x32xf32>
    %89 = arith.mulf %80, %11 : vector<2x32xf32>
    %90 = arith.mulf %74, %82 : vector<2x32xf32>
    %91 = arith.addf %89, %90 : vector<2x32xf32>
    %92 = math.tanh %91 : vector<2x32xf32>
    %93 = arith.mulf %88, %92 : vector<2x32xf32>
    %94 = vector.broadcast %15 : vector<2x1xf32> to vector<2x32xf32>
    %95 = arith.mulf %94, %93 : vector<2x32xf32>
    %cst_40 = arith.constant 1.000000e+00 : f32
    %96 = vector.broadcast %cst_40 : f32 to vector<2x1xf32>
    %97 = arith.subf %96, %15 : vector<2x1xf32>
    %98 = vector.broadcast %97 : vector<2x1xf32> to vector<2x32xf32>
    %99 = arith.mulf %98, %10 : vector<2x32xf32>
    %100 = arith.addf %95, %99 : vector<2x32xf32>
    %101 = vector.broadcast %15 : vector<2x1xf32> to vector<2x32xf32>
    %102 = arith.mulf %101, %91 : vector<2x32xf32>
    %cst_41 = arith.constant 1.000000e+00 : f32
    %103 = vector.broadcast %cst_41 : f32 to vector<2x1xf32>
    %104 = arith.subf %103, %15 : vector<2x1xf32>
    %105 = vector.broadcast %104 : vector<2x1xf32> to vector<2x32xf32>
    %106 = arith.mulf %105, %11 : vector<2x32xf32>
    %107 = arith.addf %102, %106 : vector<2x32xf32>
    %108 = vector.broadcast %13 : vector<2x1xf32> to vector<2x32xf32>
    %109 = arith.mulf %108, %54 : vector<2x32xf32>
    %110 = vector.broadcast %15 : vector<2x1xf32> to vector<2x32xf32>
    %111 = arith.mulf %110, %100 : vector<2x32xf32>
    %112 = vector.shape_cast %109 : vector<2x32xf32> to vector<2x1x32xf32>
    %c0_42 = arith.constant 0 : index
    %c0_43 = arith.constant 0 : index
    %c0_44 = arith.constant 0 : index
    %113 = vector.load %arg9[%c0_42, %c0_43, %c0_44] : memref<2x8x64xf32, #tpu.memory_space<vmem>>, vector<2x1x32xf32>
    tpu.vector_store %arg9[%c0_42, %c0_43, %c0_44], %112 {strides = array<i32>} : memref<2x8x64xf32, #tpu.memory_space<vmem>>, vector<2x1x32xf32>,
    %114 = vector.shape_cast %111 : vector<2x32xf32> to vector<2x1x32xf32>
    %c0_45 = arith.constant 0 : index
    %c7_46 = arith.constant 7 : index
    %c32_47 = arith.constant 32 : index
    %115 = vector.load %arg9[%c0_45, %c7_46, %c32_47] : memref<2x8x64xf32, #tpu.memory_space<vmem>>, vector<2x1x32xf32>
    tpu.vector_store %arg9[%c0_45, %c7_46, %c32_47], %114 {strides = array<i32>} : memref<2x8x64xf32, #tpu.memory_space<vmem>>, vector<2x1x32xf32>,
    %cst_48 = arith.constant dense<0.000000e+00> : vector<2x64xf32>
    %116 = tpu.matmul %109, %6, %cst_48 {dimension_numbers = #tpu.dot_dimension_numbers<[1], [0], [0], [1], [0, 0, 1, 1], [], []>} : vector<2x32xf32>, vector<32x64xf32>, vector<2x64xf32> -> vector<2x64xf32>
    %cst_49 = arith.constant dense<0.000000e+00> : vector<2x64xf32>
    %117 = tpu.matmul %111, %7, %cst_49 {dimension_numbers = #tpu.dot_dimension_numbers<[1], [0], [0], [1], [0, 0, 1, 1], [], []>} : vector<2x32xf32>, vector<32x64xf32>, vector<2x64xf32> -> vector<2x64xf32>
    %c1 = arith.constant 1 : index
    %c0_50 = arith.constant 0 : index
    %c0_51 = arith.constant 0 : index
    %118 = vector.load %arg1[%c1, %c0_50, %c0_51] : memref<8x2x1xf32, #tpu.memory_space<vmem>>, vector<1x2x1xf32>
    %119 = vector.shape_cast %118 : vector<1x2x1xf32> to vector<2x1xf32>
    %c6 = arith.constant 6 : index
    %c0_52 = arith.constant 0 : index
    %c0_53 = arith.constant 0 : index
    %120 = vector.load %arg1[%c6, %c0_52, %c0_53] : memref<8x2x1xf32, #tpu.memory_space<vmem>>, vector<1x2x1xf32>
    %121 = vector.shape_cast %120 : vector<1x2x1xf32> to vector<2x1xf32>
    %c1_54 = arith.constant 1 : index
    %c0_55 = arith.constant 0 : index
    %c0_56 = arith.constant 0 : index
    %122 = vector.load %arg0[%c1_54, %c0_55, %c0_56] : memref<8x2x16xf32, #tpu.memory_space<vmem>>, vector<1x2x16xf32>
    %123 = vector.shape_cast %122 : vector<1x2x16xf32> to vector<2x16xf32>
    %cst_57 = arith.constant dense<0.000000e+00> : vector<2x128xf32>
    %124 = tpu.matmul %123, %0, %cst_57 {dimension_numbers = #tpu.dot_dimension_numbers<[1], [0], [0], [1], [0, 0, 1, 1], [], []>} : vector<2x16xf32>, vector<16x128xf32>, vector<2x128xf32> -> vector<2x128xf32>
    %cst_58 = arith.constant dense<0.000000e+00> : vector<2x128xf32>
    %125 = tpu.matmul %54, %1, %cst_58 {dimension_numbers = #tpu.dot_dimension_numbers<[1], [0], [0], [1], [0, 0, 1, 1], [], []>} : vector<2x32xf32>, vector<32x128xf32>, vector<2x128xf32> -> vector<2x128xf32>
    %126 = arith.addf %124, %125 : vector<2x128xf32>
    %127 = vector.broadcast %2 : vector<1x128xf32> to vector<2x128xf32>
    %128 = arith.addf %126, %127 : vector<2x128xf32>
    %129 = vector.extract_strided_slice %128 {offsets = [0, 0], sizes = [2, 32], strides = [1, 1]} : vector<2x128xf32> to vector<2x32xf32>
    %130 = arith.negf %129 : vector<2x32xf32>
    %131 = math.exp %130 : vector<2x32xf32>
    %cst_59 = arith.constant 1.000000e+00 : f32
    %132 = vector.broadcast %cst_59 : f32 to vector<2x32xf32>
    %133 = arith.addf %132, %131 : vector<2x32xf32>
    %134 = arith.divf %132, %133 : vector<2x32xf32>
    %135 = vector.extract_strided_slice %128 {offsets = [0, 32], sizes = [2, 32], strides = [1, 1]} : vector<2x128xf32> to vector<2x32xf32>
    %136 = arith.negf %135 : vector<2x32xf32>
    %137 = math.exp %136 : vector<2x32xf32>
    %cst_60 = arith.constant 1.000000e+00 : f32
    %138 = vector.broadcast %cst_60 : f32 to vector<2x32xf32>
    %139 = arith.addf %138, %137 : vector<2x32xf32>
    %140 = arith.divf %138, %139 : vector<2x32xf32>
    %141 = vector.extract_strided_slice %128 {offsets = [0, 64], sizes = [2, 32], strides = [1, 1]} : vector<2x128xf32> to vector<2x32xf32>
    %142 = math.tanh %141 : vector<2x32xf32>
    %143 = vector.extract_strided_slice %128 {offsets = [0, 96], sizes = [2, 32], strides = [1, 1]} : vector<2x128xf32> to vector<2x32xf32>
    %144 = arith.negf %143 : vector<2x32xf32>
    %145 = math.exp %144 : vector<2x32xf32>
    %cst_61 = arith.constant 1.000000e+00 : f32
    %146 = vector.broadcast %cst_61 : f32 to vector<2x32xf32>
    %147 = arith.addf %146, %145 : vector<2x32xf32>
    %148 = arith.divf %146, %147 : vector<2x32xf32>
    %149 = arith.mulf %140, %61 : vector<2x32xf32>
    %150 = arith.mulf %134, %142 : vector<2x32xf32>
    %151 = arith.addf %149, %150 : vector<2x32xf32>
    %152 = math.tanh %151 : vector<2x32xf32>
    %153 = arith.mulf %148, %152 : vector<2x32xf32>
    %154 = vector.broadcast %119 : vector<2x1xf32> to vector<2x32xf32>
    %155 = arith.mulf %154, %153 : vector<2x32xf32>
    %cst_62 = arith.constant 1.000000e+00 : f32
    %156 = vector.broadcast %cst_62 : f32 to vector<2x1xf32>
    %157 = arith.subf %156, %119 : vector<2x1xf32>
    %158 = vector.broadcast %157 : vector<2x1xf32> to vector<2x32xf32>
    %159 = arith.mulf %158, %54 : vector<2x32xf32>
    %160 = arith.addf %155, %159 : vector<2x32xf32>
    %161 = vector.broadcast %119 : vector<2x1xf32> to vector<2x32xf32>
    %162 = arith.mulf %161, %151 : vector<2x32xf32>
    %cst_63 = arith.constant 1.000000e+00 : f32
    %163 = vector.broadcast %cst_63 : f32 to vector<2x1xf32>
    %164 = arith.subf %163, %119 : vector<2x1xf32>
    %165 = vector.broadcast %164 : vector<2x1xf32> to vector<2x32xf32>
    %166 = arith.mulf %165, %61 : vector<2x32xf32>
    %167 = arith.addf %162, %166 : vector<2x32xf32>
    %c6_64 = arith.constant 6 : index
    %c0_65 = arith.constant 0 : index
    %c0_66 = arith.constant 0 : index
    %168 = vector.load %arg0[%c6_64, %c0_65, %c0_66] : memref<8x2x16xf32, #tpu.memory_space<vmem>>, vector<1x2x16xf32>
    %169 = vector.shape_cast %168 : vector<1x2x16xf32> to vector<2x16xf32>
    %cst_67 = arith.constant dense<0.000000e+00> : vector<2x128xf32>
    %170 = tpu.matmul %169, %3, %cst_67 {dimension_numbers = #tpu.dot_dimension_numbers<[1], [0], [0], [1], [0, 0, 1, 1], [], []>} : vector<2x16xf32>, vector<16x128xf32>, vector<2x128xf32> -> vector<2x128xf32>
    %cst_68 = arith.constant dense<0.000000e+00> : vector<2x128xf32>
    %171 = tpu.matmul %100, %4, %cst_68 {dimension_numbers = #tpu.dot_dimension_numbers<[1], [0], [0], [1], [0, 0, 1, 1], [], []>} : vector<2x32xf32>, vector<32x128xf32>, vector<2x128xf32> -> vector<2x128xf32>
    %172 = arith.addf %170, %171 : vector<2x128xf32>
    %173 = vector.broadcast %5 : vector<1x128xf32> to vector<2x128xf32>
    %174 = arith.addf %172, %173 : vector<2x128xf32>
    %175 = vector.extract_strided_slice %174 {offsets = [0, 0], sizes = [2, 32], strides = [1, 1]} : vector<2x128xf32> to vector<2x32xf32>
    %176 = arith.negf %175 : vector<2x32xf32>
    %177 = math.exp %176 : vector<2x32xf32>
    %cst_69 = arith.constant 1.000000e+00 : f32
    %178 = vector.broadcast %cst_69 : f32 to vector<2x32xf32>
    %179 = arith.addf %178, %177 : vector<2x32xf32>
    %180 = arith.divf %178, %179 : vector<2x32xf32>
    %181 = vector.extract_strided_slice %174 {offsets = [0, 32], sizes = [2, 32], strides = [1, 1]} : vector<2x128xf32> to vector<2x32xf32>
    %182 = arith.negf %181 : vector<2x32xf32>
    %183 = math.exp %182 : vector<2x32xf32>
    %cst_70 = arith.constant 1.000000e+00 : f32
    %184 = vector.broadcast %cst_70 : f32 to vector<2x32xf32>
    %185 = arith.addf %184, %183 : vector<2x32xf32>
    %186 = arith.divf %184, %185 : vector<2x32xf32>
    %187 = vector.extract_strided_slice %174 {offsets = [0, 64], sizes = [2, 32], strides = [1, 1]} : vector<2x128xf32> to vector<2x32xf32>
    %188 = math.tanh %187 : vector<2x32xf32>
    %189 = vector.extract_strided_slice %174 {offsets = [0, 96], sizes = [2, 32], strides = [1, 1]} : vector<2x128xf32> to vector<2x32xf32>
    %190 = arith.negf %189 : vector<2x32xf32>
    %191 = math.exp %190 : vector<2x32xf32>
    %cst_71 = arith.constant 1.000000e+00 : f32
    %192 = vector.broadcast %cst_71 : f32 to vector<2x32xf32>
    %193 = arith.addf %192, %191 : vector<2x32xf32>
    %194 = arith.divf %192, %193 : vector<2x32xf32>
    %195 = arith.mulf %186, %107 : vector<2x32xf32>
    %196 = arith.mulf %180, %188 : vector<2x32xf32>
    %197 = arith.addf %195, %196 : vector<2x32xf32>
    %198 = math.tanh %197 : vector<2x32xf32>
    %199 = arith.mulf %194, %198 : vector<2x32xf32>
    %200 = vector.broadcast %121 : vector<2x1xf32> to vector<2x32xf32>
    %201 = arith.mulf %200, %199 : vector<2x32xf32>
    %cst_72 = arith.constant 1.000000e+00 : f32
    %202 = vector.broadcast %cst_72 : f32 to vector<2x1xf32>
    %203 = arith.subf %202, %121 : vector<2x1xf32>
    %204 = vector.broadcast %203 : vector<2x1xf32> to vector<2x32xf32>
    %205 = arith.mulf %204, %100 : vector<2x32xf32>
    %206 = arith.addf %201, %205 : vector<2x32xf32>
    %207 = vector.broadcast %121 : vector<2x1xf32> to vector<2x32xf32>
    %208 = arith.mulf %207, %197 : vector<2x32xf32>
    %cst_73 = arith.constant 1.000000e+00 : f32
    %209 = vector.broadcast %cst_73 : f32 to vector<2x1xf32>
    %210 = arith.subf %209, %121 : vector<2x1xf32>
    %211 = vector.broadcast %210 : vector<2x1xf32> to vector<2x32xf32>
    %212 = arith.mulf %211, %107 : vector<2x32xf32>
    %213 = arith.addf %208, %212 : vector<2x32xf32>
    %214 = vector.broadcast %119 : vector<2x1xf32> to vector<2x32xf32>
    %215 = arith.mulf %214, %160 : vector<2x32xf32>
    %216 = vector.broadcast %121 : vector<2x1xf32> to vector<2x32xf32>
    %217 = arith.mulf %216, %206 : vector<2x32xf32>
    %218 = vector.shape_cast %215 : vector<2x32xf32> to vector<2x1x32xf32>
    %c0_74 = arith.constant 0 : index
    %c1_75 = arith.constant 1 : index
    %c0_76 = arith.constant 0 : index
    %219 = vector.load %arg9[%c0_74, %c1_75, %c0_76] : memref<2x8x64xf32, #tpu.memory_space<vmem>>, vector<2x1x32xf32>
    tpu.vector_store %arg9[%c0_74, %c1_75, %c0_76], %218 {strides = array<i32>} : memref<2x8x64xf32, #tpu.memory_space<vmem>>, vector<2x1x32xf32>,
    %220 = vector.shape_cast %217 : vector<2x32xf32> to vector<2x1x32xf32>
    %c0_77 = arith.constant 0 : index
    %c6_78 = arith.constant 6 : index
    %c32_79 = arith.constant 32 : index
    %221 = vector.load %arg9[%c0_77, %c6_78, %c32_79] : memref<2x8x64xf32, #tpu.memory_space<vmem>>, vector<2x1x32xf32>
    tpu.vector_store %arg9[%c0_77, %c6_78, %c32_79], %220 {strides = array<i32>} : memref<2x8x64xf32, #tpu.memory_space<vmem>>, vector<2x1x32xf32>,
    %cst_80 = arith.constant dense<0.000000e+00> : vector<2x64xf32>
    %222 = tpu.matmul %215, %6, %cst_80 {dimension_numbers = #tpu.dot_dimension_numbers<[1], [0], [0], [1], [0, 0, 1, 1], [], []>} : vector<2x32xf32>, vector<32x64xf32>, vector<2x64xf32> -> vector<2x64xf32>
    %cst_81 = arith.constant dense<0.000000e+00> : vector<2x64xf32>
    %223 = tpu.matmul %217, %7, %cst_81 {dimension_numbers = #tpu.dot_dimension_numbers<[1], [0], [0], [1], [0, 0, 1, 1], [], []>} : vector<2x32xf32>, vector<32x64xf32>, vector<2x64xf32> -> vector<2x64xf32>
    %c2 = arith.constant 2 : index
    %c0_82 = arith.constant 0 : index
    %c0_83 = arith.constant 0 : index
    %224 = vector.load %arg1[%c2, %c0_82, %c0_83] : memref<8x2x1xf32, #tpu.memory_space<vmem>>, vector<1x2x1xf32>
    %225 = vector.shape_cast %224 : vector<1x2x1xf32> to vector<2x1xf32>
    %c5 = arith.constant 5 : index
    %c0_84 = arith.constant 0 : index
    %c0_85 = arith.constant 0 : index
    %226 = vector.load %arg1[%c5, %c0_84, %c0_85] : memref<8x2x1xf32, #tpu.memory_space<vmem>>, vector<1x2x1xf32>
    %227 = vector.shape_cast %226 : vector<1x2x1xf32> to vector<2x1xf32>
    %c2_86 = arith.constant 2 : index
    %c0_87 = arith.constant 0 : index
    %c0_88 = arith.constant 0 : index
    %228 = vector.load %arg0[%c2_86, %c0_87, %c0_88] : memref<8x2x16xf32, #tpu.memory_space<vmem>>, vector<1x2x16xf32>
    %229 = vector.shape_cast %228 : vector<1x2x16xf32> to vector<2x16xf32>
    %cst_89 = arith.constant dense<0.000000e+00> : vector<2x128xf32>
    %230 = tpu.matmul %229, %0, %cst_89 {dimension_numbers = #tpu.dot_dimension_numbers<[1], [0], [0], [1], [0, 0, 1, 1], [], []>} : vector<2x16xf32>, vector<16x128xf32>, vector<2x128xf32> -> vector<2x128xf32>
    %cst_90 = arith.constant dense<0.000000e+00> : vector<2x128xf32>
    %231 = tpu.matmul %160, %1, %cst_90 {dimension_numbers = #tpu.dot_dimension_numbers<[1], [0], [0], [1], [0, 0, 1, 1], [], []>} : vector<2x32xf32>, vector<32x128xf32>, vector<2x128xf32> -> vector<2x128xf32>
    %232 = arith.addf %230, %231 : vector<2x128xf32>
    %233 = vector.broadcast %2 : vector<1x128xf32> to vector<2x128xf32>
    %234 = arith.addf %232, %233 : vector<2x128xf32>
    %235 = vector.extract_strided_slice %234 {offsets = [0, 0], sizes = [2, 32], strides = [1, 1]} : vector<2x128xf32> to vector<2x32xf32>
    %236 = arith.negf %235 : vector<2x32xf32>
    %237 = math.exp %236 : vector<2x32xf32>
    %cst_91 = arith.constant 1.000000e+00 : f32
    %238 = vector.broadcast %cst_91 : f32 to vector<2x32xf32>
    %239 = arith.addf %238, %237 : vector<2x32xf32>
    %240 = arith.divf %238, %239 : vector<2x32xf32>
    %241 = vector.extract_strided_slice %234 {offsets = [0, 32], sizes = [2, 32], strides = [1, 1]} : vector<2x128xf32> to vector<2x32xf32>
    %242 = arith.negf %241 : vector<2x32xf32>
    %243 = math.exp %242 : vector<2x32xf32>
    %cst_92 = arith.constant 1.000000e+00 : f32
    %244 = vector.broadcast %cst_92 : f32 to vector<2x32xf32>
    %245 = arith.addf %244, %243 : vector<2x32xf32>
    %246 = arith.divf %244, %245 : vector<2x32xf32>
    %247 = vector.extract_strided_slice %234 {offsets = [0, 64], sizes = [2, 32], strides = [1, 1]} : vector<2x128xf32> to vector<2x32xf32>
    %248 = math.tanh %247 : vector<2x32xf32>
    %249 = vector.extract_strided_slice %234 {offsets = [0, 96], sizes = [2, 32], strides = [1, 1]} : vector<2x128xf32> to vector<2x32xf32>
    %250 = arith.negf %249 : vector<2x32xf32>
    %251 = math.exp %250 : vector<2x32xf32>
    %cst_93 = arith.constant 1.000000e+00 : f32
    %252 = vector.broadcast %cst_93 : f32 to vector<2x32xf32>
    %253 = arith.addf %252, %251 : vector<2x32xf32>
    %254 = arith.divf %252, %253 : vector<2x32xf32>
    %255 = arith.mulf %246, %167 : vector<2x32xf32>
    %256 = arith.mulf %240, %248 : vector<2x32xf32>
    %257 = arith.addf %255, %256 : vector<2x32xf32>
    %258 = math.tanh %257 : vector<2x32xf32>
    %259 = arith.mulf %254, %258 : vector<2x32xf32>
    %260 = vector.broadcast %225 : vector<2x1xf32> to vector<2x32xf32>
    %261 = arith.mulf %260, %259 : vector<2x32xf32>
    %cst_94 = arith.constant 1.000000e+00 : f32
    %262 = vector.broadcast %cst_94 : f32 to vector<2x1xf32>
    %263 = arith.subf %262, %225 : vector<2x1xf32>
    %264 = vector.broadcast %263 : vector<2x1xf32> to vector<2x32xf32>
    %265 = arith.mulf %264, %160 : vector<2x32xf32>
    %266 = arith.addf %261, %265 : vector<2x32xf32>
    %267 = vector.broadcast %225 : vector<2x1xf32> to vector<2x32xf32>
    %268 = arith.mulf %267, %257 : vector<2x32xf32>
    %cst_95 = arith.constant 1.000000e+00 : f32
    %269 = vector.broadcast %cst_95 : f32 to vector<2x1xf32>
    %270 = arith.subf %269, %225 : vector<2x1xf32>
    %271 = vector.broadcast %270 : vector<2x1xf32> to vector<2x32xf32>
    %272 = arith.mulf %271, %167 : vector<2x32xf32>
    %273 = arith.addf %268, %272 : vector<2x32xf32>
    %c5_96 = arith.constant 5 : index
    %c0_97 = arith.constant 0 : index
    %c0_98 = arith.constant 0 : index
    %274 = vector.load %arg0[%c5_96, %c0_97, %c0_98] : memref<8x2x16xf32, #tpu.memory_space<vmem>>, vector<1x2x16xf32>
    %275 = vector.shape_cast %274 : vector<1x2x16xf32> to vector<2x16xf32>
    %cst_99 = arith.constant dense<0.000000e+00> : vector<2x128xf32>
    %276 = tpu.matmul %275, %3, %cst_99 {dimension_numbers = #tpu.dot_dimension_numbers<[1], [0], [0], [1], [0, 0, 1, 1], [], []>} : vector<2x16xf32>, vector<16x128xf32>, vector<2x128xf32> -> vector<2x128xf32>
    %cst_100 = arith.constant dense<0.000000e+00> : vector<2x128xf32>
    %277 = tpu.matmul %206, %4, %cst_100 {dimension_numbers = #tpu.dot_dimension_numbers<[1], [0], [0], [1], [0, 0, 1, 1], [], []>} : vector<2x32xf32>, vector<32x128xf32>, vector<2x128xf32> -> vector<2x128xf32>
    %278 = arith.addf %276, %277 : vector<2x128xf32>
    %279 = vector.broadcast %5 : vector<1x128xf32> to vector<2x128xf32>
    %280 = arith.addf %278, %279 : vector<2x128xf32>
    %281 = vector.extract_strided_slice %280 {offsets = [0, 0], sizes = [2, 32], strides = [1, 1]} : vector<2x128xf32> to vector<2x32xf32>
    %282 = arith.negf %281 : vector<2x32xf32>
    %283 = math.exp %282 : vector<2x32xf32>
    %cst_101 = arith.constant 1.000000e+00 : f32
    %284 = vector.broadcast %cst_101 : f32 to vector<2x32xf32>
    %285 = arith.addf %284, %283 : vector<2x32xf32>
    %286 = arith.divf %284, %285 : vector<2x32xf32>
    %287 = vector.extract_strided_slice %280 {offsets = [0, 32], sizes = [2, 32], strides = [1, 1]} : vector<2x128xf32> to vector<2x32xf32>
    %288 = arith.negf %287 : vector<2x32xf32>
    %289 = math.exp %288 : vector<2x32xf32>
    %cst_102 = arith.constant 1.000000e+00 : f32
    %290 = vector.broadcast %cst_102 : f32 to vector<2x32xf32>
    %291 = arith.addf %290, %289 : vector<2x32xf32>
    %292 = arith.divf %290, %291 : vector<2x32xf32>
    %293 = vector.extract_strided_slice %280 {offsets = [0, 64], sizes = [2, 32], strides = [1, 1]} : vector<2x128xf32> to vector<2x32xf32>
    %294 = math.tanh %293 : vector<2x32xf32>
    %295 = vector.extract_strided_slice %280 {offsets = [0, 96], sizes = [2, 32], strides = [1, 1]} : vector<2x128xf32> to vector<2x32xf32>
    %296 = arith.negf %295 : vector<2x32xf32>
    %297 = math.exp %296 : vector<2x32xf32>
    %cst_103 = arith.constant 1.000000e+00 : f32
    %298 = vector.broadcast %cst_103 : f32 to vector<2x32xf32>
    %299 = arith.addf %298, %297 : vector<2x32xf32>
    %300 = arith.divf %298, %299 : vector<2x32xf32>
    %301 = arith.mulf %292, %213 : vector<2x32xf32>
    %302 = arith.mulf %286, %294 : vector<2x32xf32>
    %303 = arith.addf %301, %302 : vector<2x32xf32>
    %304 = math.tanh %303 : vector<2x32xf32>
    %305 = arith.mulf %300, %304 : vector<2x32xf32>
    %306 = vector.broadcast %227 : vector<2x1xf32> to vector<2x32xf32>
    %307 = arith.mulf %306, %305 : vector<2x32xf32>
    %cst_104 = arith.constant 1.000000e+00 : f32
    %308 = vector.broadcast %cst_104 : f32 to vector<2x1xf32>
    %309 = arith.subf %308, %227 : vector<2x1xf32>
    %310 = vector.broadcast %309 : vector<2x1xf32> to vector<2x32xf32>
    %311 = arith.mulf %310, %206 : vector<2x32xf32>
    %312 = arith.addf %307, %311 : vector<2x32xf32>
    %313 = vector.broadcast %227 : vector<2x1xf32> to vector<2x32xf32>
    %314 = arith.mulf %313, %303 : vector<2x32xf32>
    %cst_105 = arith.constant 1.000000e+00 : f32
    %315 = vector.broadcast %cst_105 : f32 to vector<2x1xf32>
    %316 = arith.subf %315, %227 : vector<2x1xf32>
    %317 = vector.broadcast %316 : vector<2x1xf32> to vector<2x32xf32>
    %318 = arith.mulf %317, %213 : vector<2x32xf32>
    %319 = arith.addf %314, %318 : vector<2x32xf32>
    %320 = vector.broadcast %225 : vector<2x1xf32> to vector<2x32xf32>
    %321 = arith.mulf %320, %266 : vector<2x32xf32>
    %322 = vector.broadcast %227 : vector<2x1xf32> to vector<2x32xf32>
    %323 = arith.mulf %322, %312 : vector<2x32xf32>
    %324 = vector.shape_cast %321 : vector<2x32xf32> to vector<2x1x32xf32>
    %c0_106 = arith.constant 0 : index
    %c2_107 = arith.constant 2 : index
    %c0_108 = arith.constant 0 : index
    %325 = vector.load %arg9[%c0_106, %c2_107, %c0_108] : memref<2x8x64xf32, #tpu.memory_space<vmem>>, vector<2x1x32xf32>
    tpu.vector_store %arg9[%c0_106, %c2_107, %c0_108], %324 {strides = array<i32>} : memref<2x8x64xf32, #tpu.memory_space<vmem>>, vector<2x1x32xf32>,
    %326 = vector.shape_cast %323 : vector<2x32xf32> to vector<2x1x32xf32>
    %c0_109 = arith.constant 0 : index
    %c5_110 = arith.constant 5 : index
    %c32_111 = arith.constant 32 : index
    %327 = vector.load %arg9[%c0_109, %c5_110, %c32_111] : memref<2x8x64xf32, #tpu.memory_space<vmem>>, vector<2x1x32xf32>
    tpu.vector_store %arg9[%c0_109, %c5_110, %c32_111], %326 {strides = array<i32>} : memref<2x8x64xf32, #tpu.memory_space<vmem>>, vector<2x1x32xf32>,
    %cst_112 = arith.constant dense<0.000000e+00> : vector<2x64xf32>
    %328 = tpu.matmul %321, %6, %cst_112 {dimension_numbers = #tpu.dot_dimension_numbers<[1], [0], [0], [1], [0, 0, 1, 1], [], []>} : vector<2x32xf32>, vector<32x64xf32>, vector<2x64xf32> -> vector<2x64xf32>
    %cst_113 = arith.constant dense<0.000000e+00> : vector<2x64xf32>
    %329 = tpu.matmul %323, %7, %cst_113 {dimension_numbers = #tpu.dot_dimension_numbers<[1], [0], [0], [1], [0, 0, 1, 1], [], []>} : vector<2x32xf32>, vector<32x64xf32>, vector<2x64xf32> -> vector<2x64xf32>
    %c3 = arith.constant 3 : index
    %c0_114 = arith.constant 0 : index
    %c0_115 = arith.constant 0 : index
    %330 = vector.load %arg1[%c3, %c0_114, %c0_115] : memref<8x2x1xf32, #tpu.memory_space<vmem>>, vector<1x2x1xf32>
    %331 = vector.shape_cast %330 : vector<1x2x1xf32> to vector<2x1xf32>
    %c4 = arith.constant 4 : index
    %c0_116 = arith.constant 0 : index
    %c0_117 = arith.constant 0 : index
    %332 = vector.load %arg1[%c4, %c0_116, %c0_117] : memref<8x2x1xf32, #tpu.memory_space<vmem>>, vector<1x2x1xf32>
    %333 = vector.shape_cast %332 : vector<1x2x1xf32> to vector<2x1xf32>
    %c3_118 = arith.constant 3 : index
    %c0_119 = arith.constant 0 : index
    %c0_120 = arith.constant 0 : index
    %334 = vector.load %arg0[%c3_118, %c0_119, %c0_120] : memref<8x2x16xf32, #tpu.memory_space<vmem>>, vector<1x2x16xf32>
    %335 = vector.shape_cast %334 : vector<1x2x16xf32> to vector<2x16xf32>
    %cst_121 = arith.constant dense<0.000000e+00> : vector<2x128xf32>
    %336 = tpu.matmul %335, %0, %cst_121 {dimension_numbers = #tpu.dot_dimension_numbers<[1], [0], [0], [1], [0, 0, 1, 1], [], []>} : vector<2x16xf32>, vector<16x128xf32>, vector<2x128xf32> -> vector<2x128xf32>
    %cst_122 = arith.constant dense<0.000000e+00> : vector<2x128xf32>
    %337 = tpu.matmul %266, %1, %cst_122 {dimension_numbers = #tpu.dot_dimension_numbers<[1], [0], [0], [1], [0, 0, 1, 1], [], []>} : vector<2x32xf32>, vector<32x128xf32>, vector<2x128xf32> -> vector<2x128xf32>
    %338 = arith.addf %336, %337 : vector<2x128xf32>
    %339 = vector.broadcast %2 : vector<1x128xf32> to vector<2x128xf32>
    %340 = arith.addf %338, %339 : vector<2x128xf32>
    %341 = vector.extract_strided_slice %340 {offsets = [0, 0], sizes = [2, 32], strides = [1, 1]} : vector<2x128xf32> to vector<2x32xf32>
    %342 = arith.negf %341 : vector<2x32xf32>
    %343 = math.exp %342 : vector<2x32xf32>
    %cst_123 = arith.constant 1.000000e+00 : f32
    %344 = vector.broadcast %cst_123 : f32 to vector<2x32xf32>
    %345 = arith.addf %344, %343 : vector<2x32xf32>
    %346 = arith.divf %344, %345 : vector<2x32xf32>
    %347 = vector.extract_strided_slice %340 {offsets = [0, 32], sizes = [2, 32], strides = [1, 1]} : vector<2x128xf32> to vector<2x32xf32>
    %348 = arith.negf %347 : vector<2x32xf32>
    %349 = math.exp %348 : vector<2x32xf32>
    %cst_124 = arith.constant 1.000000e+00 : f32
    %350 = vector.broadcast %cst_124 : f32 to vector<2x32xf32>
    %351 = arith.addf %350, %349 : vector<2x32xf32>
    %352 = arith.divf %350, %351 : vector<2x32xf32>
    %353 = vector.extract_strided_slice %340 {offsets = [0, 64], sizes = [2, 32], strides = [1, 1]} : vector<2x128xf32> to vector<2x32xf32>
    %354 = math.tanh %353 : vector<2x32xf32>
    %355 = vector.extract_strided_slice %340 {offsets = [0, 96], sizes = [2, 32], strides = [1, 1]} : vector<2x128xf32> to vector<2x32xf32>
    %356 = arith.negf %355 : vector<2x32xf32>
    %357 = math.exp %356 : vector<2x32xf32>
    %cst_125 = arith.constant 1.000000e+00 : f32
    %358 = vector.broadcast %cst_125 : f32 to vector<2x32xf32>
    %359 = arith.addf %358, %357 : vector<2x32xf32>
    %360 = arith.divf %358, %359 : vector<2x32xf32>
    %361 = arith.mulf %352, %273 : vector<2x32xf32>
    %362 = arith.mulf %346, %354 : vector<2x32xf32>
    %363 = arith.addf %361, %362 : vector<2x32xf32>
    %364 = math.tanh %363 : vector<2x32xf32>
    %365 = arith.mulf %360, %364 : vector<2x32xf32>
    %366 = vector.broadcast %331 : vector<2x1xf32> to vector<2x32xf32>
    %367 = arith.mulf %366, %365 : vector<2x32xf32>
    %cst_126 = arith.constant 1.000000e+00 : f32
    %368 = vector.broadcast %cst_126 : f32 to vector<2x1xf32>
    %369 = arith.subf %368, %331 : vector<2x1xf32>
    %370 = vector.broadcast %369 : vector<2x1xf32> to vector<2x32xf32>
    %371 = arith.mulf %370, %266 : vector<2x32xf32>
    %372 = arith.addf %367, %371 : vector<2x32xf32>
    %373 = vector.broadcast %331 : vector<2x1xf32> to vector<2x32xf32>
    %374 = arith.mulf %373, %363 : vector<2x32xf32>
    %cst_127 = arith.constant 1.000000e+00 : f32
    %375 = vector.broadcast %cst_127 : f32 to vector<2x1xf32>
    %376 = arith.subf %375, %331 : vector<2x1xf32>
    %377 = vector.broadcast %376 : vector<2x1xf32> to vector<2x32xf32>
    %378 = arith.mulf %377, %273 : vector<2x32xf32>
    %379 = arith.addf %374, %378 : vector<2x32xf32>
    %c4_128 = arith.constant 4 : index
    %c0_129 = arith.constant 0 : index
    %c0_130 = arith.constant 0 : index
    %380 = vector.load %arg0[%c4_128, %c0_129, %c0_130] : memref<8x2x16xf32, #tpu.memory_space<vmem>>, vector<1x2x16xf32>
    %381 = vector.shape_cast %380 : vector<1x2x16xf32> to vector<2x16xf32>
    %cst_131 = arith.constant dense<0.000000e+00> : vector<2x128xf32>
    %382 = tpu.matmul %381, %3, %cst_131 {dimension_numbers = #tpu.dot_dimension_numbers<[1], [0], [0], [1], [0, 0, 1, 1], [], []>} : vector<2x16xf32>, vector<16x128xf32>, vector<2x128xf32> -> vector<2x128xf32>
    %cst_132 = arith.constant dense<0.000000e+00> : vector<2x128xf32>
    %383 = tpu.matmul %312, %4, %cst_132 {dimension_numbers = #tpu.dot_dimension_numbers<[1], [0], [0], [1], [0, 0, 1, 1], [], []>} : vector<2x32xf32>, vector<32x128xf32>, vector<2x128xf32> -> vector<2x128xf32>
    %384 = arith.addf %382, %383 : vector<2x128xf32>
    %385 = vector.broadcast %5 : vector<1x128xf32> to vector<2x128xf32>
    %386 = arith.addf %384, %385 : vector<2x128xf32>
    %387 = vector.extract_strided_slice %386 {offsets = [0, 0], sizes = [2, 32], strides = [1, 1]} : vector<2x128xf32> to vector<2x32xf32>
    %388 = arith.negf %387 : vector<2x32xf32>
    %389 = math.exp %388 : vector<2x32xf32>
    %cst_133 = arith.constant 1.000000e+00 : f32
    %390 = vector.broadcast %cst_133 : f32 to vector<2x32xf32>
    %391 = arith.addf %390, %389 : vector<2x32xf32>
    %392 = arith.divf %390, %391 : vector<2x32xf32>
    %393 = vector.extract_strided_slice %386 {offsets = [0, 32], sizes = [2, 32], strides = [1, 1]} : vector<2x128xf32> to vector<2x32xf32>
    %394 = arith.negf %393 : vector<2x32xf32>
    %395 = math.exp %394 : vector<2x32xf32>
    %cst_134 = arith.constant 1.000000e+00 : f32
    %396 = vector.broadcast %cst_134 : f32 to vector<2x32xf32>
    %397 = arith.addf %396, %395 : vector<2x32xf32>
    %398 = arith.divf %396, %397 : vector<2x32xf32>
    %399 = vector.extract_strided_slice %386 {offsets = [0, 64], sizes = [2, 32], strides = [1, 1]} : vector<2x128xf32> to vector<2x32xf32>
    %400 = math.tanh %399 : vector<2x32xf32>
    %401 = vector.extract_strided_slice %386 {offsets = [0, 96], sizes = [2, 32], strides = [1, 1]} : vector<2x128xf32> to vector<2x32xf32>
    %402 = arith.negf %401 : vector<2x32xf32>
    %403 = math.exp %402 : vector<2x32xf32>
    %cst_135 = arith.constant 1.000000e+00 : f32
    %404 = vector.broadcast %cst_135 : f32 to vector<2x32xf32>
    %405 = arith.addf %404, %403 : vector<2x32xf32>
    %406 = arith.divf %404, %405 : vector<2x32xf32>
    %407 = arith.mulf %398, %319 : vector<2x32xf32>
    %408 = arith.mulf %392, %400 : vector<2x32xf32>
    %409 = arith.addf %407, %408 : vector<2x32xf32>
    %410 = math.tanh %409 : vector<2x32xf32>
    %411 = arith.mulf %406, %410 : vector<2x32xf32>
    %412 = vector.broadcast %333 : vector<2x1xf32> to vector<2x32xf32>
    %413 = arith.mulf %412, %411 : vector<2x32xf32>
    %cst_136 = arith.constant 1.000000e+00 : f32
    %414 = vector.broadcast %cst_136 : f32 to vector<2x1xf32>
    %415 = arith.subf %414, %333 : vector<2x1xf32>
    %416 = vector.broadcast %415 : vector<2x1xf32> to vector<2x32xf32>
    %417 = arith.mulf %416, %312 : vector<2x32xf32>
    %418 = arith.addf %413, %417 : vector<2x32xf32>
    %419 = vector.broadcast %333 : vector<2x1xf32> to vector<2x32xf32>
    %420 = arith.mulf %419, %409 : vector<2x32xf32>
    %cst_137 = arith.constant 1.000000e+00 : f32
    %421 = vector.broadcast %cst_137 : f32 to vector<2x1xf32>
    %422 = arith.subf %421, %333 : vector<2x1xf32>
    %423 = vector.broadcast %422 : vector<2x1xf32> to vector<2x32xf32>
    %424 = arith.mulf %423, %319 : vector<2x32xf32>
    %425 = arith.addf %420, %424 : vector<2x32xf32>
    %426 = vector.broadcast %331 : vector<2x1xf32> to vector<2x32xf32>
    %427 = arith.mulf %426, %372 : vector<2x32xf32>
    %428 = vector.broadcast %333 : vector<2x1xf32> to vector<2x32xf32>
    %429 = arith.mulf %428, %418 : vector<2x32xf32>
    %430 = vector.shape_cast %427 : vector<2x32xf32> to vector<2x1x32xf32>
    %c0_138 = arith.constant 0 : index
    %c3_139 = arith.constant 3 : index
    %c0_140 = arith.constant 0 : index
    %431 = vector.load %arg9[%c0_138, %c3_139, %c0_140] : memref<2x8x64xf32, #tpu.memory_space<vmem>>, vector<2x1x32xf32>
    tpu.vector_store %arg9[%c0_138, %c3_139, %c0_140], %430 {strides = array<i32>} : memref<2x8x64xf32, #tpu.memory_space<vmem>>, vector<2x1x32xf32>,
    %432 = vector.shape_cast %429 : vector<2x32xf32> to vector<2x1x32xf32>
    %c0_141 = arith.constant 0 : index
    %c4_142 = arith.constant 4 : index
    %c32_143 = arith.constant 32 : index
    %433 = vector.load %arg9[%c0_141, %c4_142, %c32_143] : memref<2x8x64xf32, #tpu.memory_space<vmem>>, vector<2x1x32xf32>
    tpu.vector_store %arg9[%c0_141, %c4_142, %c32_143], %432 {strides = array<i32>} : memref<2x8x64xf32, #tpu.memory_space<vmem>>, vector<2x1x32xf32>,
    %cst_144 = arith.constant dense<0.000000e+00> : vector<2x64xf32>
    %434 = tpu.matmul %427, %6, %cst_144 {dimension_numbers = #tpu.dot_dimension_numbers<[1], [0], [0], [1], [0, 0, 1, 1], [], []>} : vector<2x32xf32>, vector<32x64xf32>, vector<2x64xf32> -> vector<2x64xf32>
    %cst_145 = arith.constant dense<0.000000e+00> : vector<2x64xf32>
    %435 = tpu.matmul %429, %7, %cst_145 {dimension_numbers = #tpu.dot_dimension_numbers<[1], [0], [0], [1], [0, 0, 1, 1], [], []>} : vector<2x32xf32>, vector<32x64xf32>, vector<2x64xf32> -> vector<2x64xf32>
    %c4_146 = arith.constant 4 : index
    %c0_147 = arith.constant 0 : index
    %c0_148 = arith.constant 0 : index
    %436 = vector.load %arg1[%c4_146, %c0_147, %c0_148] : memref<8x2x1xf32, #tpu.memory_space<vmem>>, vector<1x2x1xf32>
    %437 = vector.shape_cast %436 : vector<1x2x1xf32> to vector<2x1xf32>
    %c3_149 = arith.constant 3 : index
    %c0_150 = arith.constant 0 : index
    %c0_151 = arith.constant 0 : index
    %438 = vector.load %arg1[%c3_149, %c0_150, %c0_151] : memref<8x2x1xf32, #tpu.memory_space<vmem>>, vector<1x2x1xf32>
    %439 = vector.shape_cast %438 : vector<1x2x1xf32> to vector<2x1xf32>
    %c4_152 = arith.constant 4 : index
    %c0_153 = arith.constant 0 : index
    %c0_154 = arith.constant 0 : index
    %440 = vector.load %arg0[%c4_152, %c0_153, %c0_154] : memref<8x2x16xf32, #tpu.memory_space<vmem>>, vector<1x2x16xf32>
    %441 = vector.shape_cast %440 : vector<1x2x16xf32> to vector<2x16xf32>
    %cst_155 = arith.constant dense<0.000000e+00> : vector<2x128xf32>
    %442 = tpu.matmul %441, %0, %cst_155 {dimension_numbers = #tpu.dot_dimension_numbers<[1], [0], [0], [1], [0, 0, 1, 1], [], []>} : vector<2x16xf32>, vector<16x128xf32>, vector<2x128xf32> -> vector<2x128xf32>
    %cst_156 = arith.constant dense<0.000000e+00> : vector<2x128xf32>
    %443 = tpu.matmul %372, %1, %cst_156 {dimension_numbers = #tpu.dot_dimension_numbers<[1], [0], [0], [1], [0, 0, 1, 1], [], []>} : vector<2x32xf32>, vector<32x128xf32>, vector<2x128xf32> -> vector<2x128xf32>
    %444 = arith.addf %442, %443 : vector<2x128xf32>
    %445 = vector.broadcast %2 : vector<1x128xf32> to vector<2x128xf32>
    %446 = arith.addf %444, %445 : vector<2x128xf32>
    %447 = vector.extract_strided_slice %446 {offsets = [0, 0], sizes = [2, 32], strides = [1, 1]} : vector<2x128xf32> to vector<2x32xf32>
    %448 = arith.negf %447 : vector<2x32xf32>
    %449 = math.exp %448 : vector<2x32xf32>
    %cst_157 = arith.constant 1.000000e+00 : f32
    %450 = vector.broadcast %cst_157 : f32 to vector<2x32xf32>
    %451 = arith.addf %450, %449 : vector<2x32xf32>
    %452 = arith.divf %450, %451 : vector<2x32xf32>
    %453 = vector.extract_strided_slice %446 {offsets = [0, 32], sizes = [2, 32], strides = [1, 1]} : vector<2x128xf32> to vector<2x32xf32>
    %454 = arith.negf %453 : vector<2x32xf32>
    %455 = math.exp %454 : vector<2x32xf32>
    %cst_158 = arith.constant 1.000000e+00 : f32
    %456 = vector.broadcast %cst_158 : f32 to vector<2x32xf32>
    %457 = arith.addf %456, %455 : vector<2x32xf32>
    %458 = arith.divf %456, %457 : vector<2x32xf32>
    %459 = vector.extract_strided_slice %446 {offsets = [0, 64], sizes = [2, 32], strides = [1, 1]} : vector<2x128xf32> to vector<2x32xf32>
    %460 = math.tanh %459 : vector<2x32xf32>
    %461 = vector.extract_strided_slice %446 {offsets = [0, 96], sizes = [2, 32], strides = [1, 1]} : vector<2x128xf32> to vector<2x32xf32>
    %462 = arith.negf %461 : vector<2x32xf32>
    %463 = math.exp %462 : vector<2x32xf32>
    %cst_159 = arith.constant 1.000000e+00 : f32
    %464 = vector.broadcast %cst_159 : f32 to vector<2x32xf32>
    %465 = arith.addf %464, %463 : vector<2x32xf32>
    %466 = arith.divf %464, %465 : vector<2x32xf32>
    %467 = arith.mulf %458, %379 : vector<2x32xf32>
    %468 = arith.mulf %452, %460 : vector<2x32xf32>
    %469 = arith.addf %467, %468 : vector<2x32xf32>
    %470 = math.tanh %469 : vector<2x32xf32>
    %471 = arith.mulf %466, %470 : vector<2x32xf32>
    %472 = vector.broadcast %437 : vector<2x1xf32> to vector<2x32xf32>
    %473 = arith.mulf %472, %471 : vector<2x32xf32>
    %cst_160 = arith.constant 1.000000e+00 : f32
    %474 = vector.broadcast %cst_160 : f32 to vector<2x1xf32>
    %475 = arith.subf %474, %437 : vector<2x1xf32>
    %476 = vector.broadcast %475 : vector<2x1xf32> to vector<2x32xf32>
    %477 = arith.mulf %476, %372 : vector<2x32xf32>
    %478 = arith.addf %473, %477 : vector<2x32xf32>
    %479 = vector.broadcast %437 : vector<2x1xf32> to vector<2x32xf32>
    %480 = arith.mulf %479, %469 : vector<2x32xf32>
    %cst_161 = arith.constant 1.000000e+00 : f32
    %481 = vector.broadcast %cst_161 : f32 to vector<2x1xf32>
    %482 = arith.subf %481, %437 : vector<2x1xf32>
    %483 = vector.broadcast %482 : vector<2x1xf32> to vector<2x32xf32>
    %484 = arith.mulf %483, %379 : vector<2x32xf32>
    %485 = arith.addf %480, %484 : vector<2x32xf32>
    %c3_162 = arith.constant 3 : index
    %c0_163 = arith.constant 0 : index
    %c0_164 = arith.constant 0 : index
    %486 = vector.load %arg0[%c3_162, %c0_163, %c0_164] : memref<8x2x16xf32, #tpu.memory_space<vmem>>, vector<1x2x16xf32>
    %487 = vector.shape_cast %486 : vector<1x2x16xf32> to vector<2x16xf32>
    %cst_165 = arith.constant dense<0.000000e+00> : vector<2x128xf32>
    %488 = tpu.matmul %487, %3, %cst_165 {dimension_numbers = #tpu.dot_dimension_numbers<[1], [0], [0], [1], [0, 0, 1, 1], [], []>} : vector<2x16xf32>, vector<16x128xf32>, vector<2x128xf32> -> vector<2x128xf32>
    %cst_166 = arith.constant dense<0.000000e+00> : vector<2x128xf32>
    %489 = tpu.matmul %418, %4, %cst_166 {dimension_numbers = #tpu.dot_dimension_numbers<[1], [0], [0], [1], [0, 0, 1, 1], [], []>} : vector<2x32xf32>, vector<32x128xf32>, vector<2x128xf32> -> vector<2x128xf32>
    %490 = arith.addf %488, %489 : vector<2x128xf32>
    %491 = vector.broadcast %5 : vector<1x128xf32> to vector<2x128xf32>
    %492 = arith.addf %490, %491 : vector<2x128xf32>
    %493 = vector.extract_strided_slice %492 {offsets = [0, 0], sizes = [2, 32], strides = [1, 1]} : vector<2x128xf32> to vector<2x32xf32>
    %494 = arith.negf %493 : vector<2x32xf32>
    %495 = math.exp %494 : vector<2x32xf32>
    %cst_167 = arith.constant 1.000000e+00 : f32
    %496 = vector.broadcast %cst_167 : f32 to vector<2x32xf32>
    %497 = arith.addf %496, %495 : vector<2x32xf32>
    %498 = arith.divf %496, %497 : vector<2x32xf32>
    %499 = vector.extract_strided_slice %492 {offsets = [0, 32], sizes = [2, 32], strides = [1, 1]} : vector<2x128xf32> to vector<2x32xf32>
    %500 = arith.negf %499 : vector<2x32xf32>
    %501 = math.exp %500 : vector<2x32xf32>
    %cst_168 = arith.constant 1.000000e+00 : f32
    %502 = vector.broadcast %cst_168 : f32 to vector<2x32xf32>
    %503 = arith.addf %502, %501 : vector<2x32xf32>
    %504 = arith.divf %502, %503 : vector<2x32xf32>
    %505 = vector.extract_strided_slice %492 {offsets = [0, 64], sizes = [2, 32], strides = [1, 1]} : vector<2x128xf32> to vector<2x32xf32>
    %506 = math.tanh %505 : vector<2x32xf32>
    %507 = vector.extract_strided_slice %492 {offsets = [0, 96], sizes = [2, 32], strides = [1, 1]} : vector<2x128xf32> to vector<2x32xf32>
    %508 = arith.negf %507 : vector<2x32xf32>
    %509 = math.exp %508 : vector<2x32xf32>
    %cst_169 = arith.constant 1.000000e+00 : f32
    %510 = vector.broadcast %cst_169 : f32 to vector<2x32xf32>
    %511 = arith.addf %510, %509 : vector<2x32xf32>
    %512 = arith.divf %510, %511 : vector<2x32xf32>
    %513 = arith.mulf %504, %425 : vector<2x32xf32>
    %514 = arith.mulf %498, %506 : vector<2x32xf32>
    %515 = arith.addf %513, %514 : vector<2x32xf32>
    %516 = math.tanh %515 : vector<2x32xf32>
    %517 = arith.mulf %512, %516 : vector<2x32xf32>
    %518 = vector.broadcast %439 : vector<2x1xf32> to vector<2x32xf32>
    %519 = arith.mulf %518, %517 : vector<2x32xf32>
    %cst_170 = arith.constant 1.000000e+00 : f32
    %520 = vector.broadcast %cst_170 : f32 to vector<2x1xf32>
    %521 = arith.subf %520, %439 : vector<2x1xf32>
    %522 = vector.broadcast %521 : vector<2x1xf32> to vector<2x32xf32>
    %523 = arith.mulf %522, %418 : vector<2x32xf32>
    %524 = arith.addf %519, %523 : vector<2x32xf32>
    %525 = vector.broadcast %439 : vector<2x1xf32> to vector<2x32xf32>
    %526 = arith.mulf %525, %515 : vector<2x32xf32>
    %cst_171 = arith.constant 1.000000e+00 : f32
    %527 = vector.broadcast %cst_171 : f32 to vector<2x1xf32>
    %528 = arith.subf %527, %439 : vector<2x1xf32>
    %529 = vector.broadcast %528 : vector<2x1xf32> to vector<2x32xf32>
    %530 = arith.mulf %529, %425 : vector<2x32xf32>
    %531 = arith.addf %526, %530 : vector<2x32xf32>
    %532 = vector.broadcast %437 : vector<2x1xf32> to vector<2x32xf32>
    %533 = arith.mulf %532, %478 : vector<2x32xf32>
    %534 = vector.broadcast %439 : vector<2x1xf32> to vector<2x32xf32>
    %535 = arith.mulf %534, %524 : vector<2x32xf32>
    %536 = vector.shape_cast %533 : vector<2x32xf32> to vector<2x1x32xf32>
    %c0_172 = arith.constant 0 : index
    %c4_173 = arith.constant 4 : index
    %c0_174 = arith.constant 0 : index
    %537 = vector.load %arg9[%c0_172, %c4_173, %c0_174] : memref<2x8x64xf32, #tpu.memory_space<vmem>>, vector<2x1x32xf32>
    tpu.vector_store %arg9[%c0_172, %c4_173, %c0_174], %536 {strides = array<i32>} : memref<2x8x64xf32, #tpu.memory_space<vmem>>, vector<2x1x32xf32>,
    %538 = vector.shape_cast %535 : vector<2x32xf32> to vector<2x1x32xf32>
    %c0_175 = arith.constant 0 : index
    %c3_176 = arith.constant 3 : index
    %c32_177 = arith.constant 32 : index
    %539 = vector.load %arg9[%c0_175, %c3_176, %c32_177] : memref<2x8x64xf32, #tpu.memory_space<vmem>>, vector<2x1x32xf32>
    tpu.vector_store %arg9[%c0_175, %c3_176, %c32_177], %538 {strides = array<i32>} : memref<2x8x64xf32, #tpu.memory_space<vmem>>, vector<2x1x32xf32>,
    %cst_178 = arith.constant dense<0.000000e+00> : vector<2x64xf32>
    %540 = tpu.matmul %533, %6, %cst_178 {dimension_numbers = #tpu.dot_dimension_numbers<[1], [0], [0], [1], [0, 0, 1, 1], [], []>} : vector<2x32xf32>, vector<32x64xf32>, vector<2x64xf32> -> vector<2x64xf32>
    %cst_179 = arith.constant dense<0.000000e+00> : vector<2x64xf32>
    %541 = tpu.matmul %535, %7, %cst_179 {dimension_numbers = #tpu.dot_dimension_numbers<[1], [0], [0], [1], [0, 0, 1, 1], [], []>} : vector<2x32xf32>, vector<32x64xf32>, vector<2x64xf32> -> vector<2x64xf32>
    %c5_180 = arith.constant 5 : index
    %c0_181 = arith.constant 0 : index
    %c0_182 = arith.constant 0 : index
    %542 = vector.load %arg1[%c5_180, %c0_181, %c0_182] : memref<8x2x1xf32, #tpu.memory_space<vmem>>, vector<1x2x1xf32>
    %543 = vector.shape_cast %542 : vector<1x2x1xf32> to vector<2x1xf32>
    %c2_183 = arith.constant 2 : index
    %c0_184 = arith.constant 0 : index
    %c0_185 = arith.constant 0 : index
    %544 = vector.load %arg1[%c2_183, %c0_184, %c0_185] : memref<8x2x1xf32, #tpu.memory_space<vmem>>, vector<1x2x1xf32>
    %545 = vector.shape_cast %544 : vector<1x2x1xf32> to vector<2x1xf32>
    %c5_186 = arith.constant 5 : index
    %c0_187 = arith.constant 0 : index
    %c0_188 = arith.constant 0 : index
    %546 = vector.load %arg0[%c5_186, %c0_187, %c0_188] : memref<8x2x16xf32, #tpu.memory_space<vmem>>, vector<1x2x16xf32>
    %547 = vector.shape_cast %546 : vector<1x2x16xf32> to vector<2x16xf32>
    %cst_189 = arith.constant dense<0.000000e+00> : vector<2x128xf32>
    %548 = tpu.matmul %547, %0, %cst_189 {dimension_numbers = #tpu.dot_dimension_numbers<[1], [0], [0], [1], [0, 0, 1, 1], [], []>} : vector<2x16xf32>, vector<16x128xf32>, vector<2x128xf32> -> vector<2x128xf32>
    %cst_190 = arith.constant dense<0.000000e+00> : vector<2x128xf32>
    %549 = tpu.matmul %478, %1, %cst_190 {dimension_numbers = #tpu.dot_dimension_numbers<[1], [0], [0], [1], [0, 0, 1, 1], [], []>} : vector<2x32xf32>, vector<32x128xf32>, vector<2x128xf32> -> vector<2x128xf32>
    %550 = arith.addf %548, %549 : vector<2x128xf32>
    %551 = vector.broadcast %2 : vector<1x128xf32> to vector<2x128xf32>
    %552 = arith.addf %550, %551 : vector<2x128xf32>
    %553 = vector.extract_strided_slice %552 {offsets = [0, 0], sizes = [2, 32], strides = [1, 1]} : vector<2x128xf32> to vector<2x32xf32>
    %554 = arith.negf %553 : vector<2x32xf32>
    %555 = math.exp %554 : vector<2x32xf32>
    %cst_191 = arith.constant 1.000000e+00 : f32
    %556 = vector.broadcast %cst_191 : f32 to vector<2x32xf32>
    %557 = arith.addf %556, %555 : vector<2x32xf32>
    %558 = arith.divf %556, %557 : vector<2x32xf32>
    %559 = vector.extract_strided_slice %552 {offsets = [0, 32], sizes = [2, 32], strides = [1, 1]} : vector<2x128xf32> to vector<2x32xf32>
    %560 = arith.negf %559 : vector<2x32xf32>
    %561 = math.exp %560 : vector<2x32xf32>
    %cst_192 = arith.constant 1.000000e+00 : f32
    %562 = vector.broadcast %cst_192 : f32 to vector<2x32xf32>
    %563 = arith.addf %562, %561 : vector<2x32xf32>
    %564 = arith.divf %562, %563 : vector<2x32xf32>
    %565 = vector.extract_strided_slice %552 {offsets = [0, 64], sizes = [2, 32], strides = [1, 1]} : vector<2x128xf32> to vector<2x32xf32>
    %566 = math.tanh %565 : vector<2x32xf32>
    %567 = vector.extract_strided_slice %552 {offsets = [0, 96], sizes = [2, 32], strides = [1, 1]} : vector<2x128xf32> to vector<2x32xf32>
    %568 = arith.negf %567 : vector<2x32xf32>
    %569 = math.exp %568 : vector<2x32xf32>
    %cst_193 = arith.constant 1.000000e+00 : f32
    %570 = vector.broadcast %cst_193 : f32 to vector<2x32xf32>
    %571 = arith.addf %570, %569 : vector<2x32xf32>
    %572 = arith.divf %570, %571 : vector<2x32xf32>
    %573 = arith.mulf %564, %485 : vector<2x32xf32>
    %574 = arith.mulf %558, %566 : vector<2x32xf32>
    %575 = arith.addf %573, %574 : vector<2x32xf32>
    %576 = math.tanh %575 : vector<2x32xf32>
    %577 = arith.mulf %572, %576 : vector<2x32xf32>
    %578 = vector.broadcast %543 : vector<2x1xf32> to vector<2x32xf32>
    %579 = arith.mulf %578, %577 : vector<2x32xf32>
    %cst_194 = arith.constant 1.000000e+00 : f32
    %580 = vector.broadcast %cst_194 : f32 to vector<2x1xf32>
    %581 = arith.subf %580, %543 : vector<2x1xf32>
    %582 = vector.broadcast %581 : vector<2x1xf32> to vector<2x32xf32>
    %583 = arith.mulf %582, %478 : vector<2x32xf32>
    %584 = arith.addf %579, %583 : vector<2x32xf32>
    %585 = vector.broadcast %543 : vector<2x1xf32> to vector<2x32xf32>
    %586 = arith.mulf %585, %575 : vector<2x32xf32>
    %cst_195 = arith.constant 1.000000e+00 : f32
    %587 = vector.broadcast %cst_195 : f32 to vector<2x1xf32>
    %588 = arith.subf %587, %543 : vector<2x1xf32>
    %589 = vector.broadcast %588 : vector<2x1xf32> to vector<2x32xf32>
    %590 = arith.mulf %589, %485 : vector<2x32xf32>
    %591 = arith.addf %586, %590 : vector<2x32xf32>
    %c2_196 = arith.constant 2 : index
    %c0_197 = arith.constant 0 : index
    %c0_198 = arith.constant 0 : index
    %592 = vector.load %arg0[%c2_196, %c0_197, %c0_198] : memref<8x2x16xf32, #tpu.memory_space<vmem>>, vector<1x2x16xf32>
    %593 = vector.shape_cast %592 : vector<1x2x16xf32> to vector<2x16xf32>
    %cst_199 = arith.constant dense<0.000000e+00> : vector<2x128xf32>
    %594 = tpu.matmul %593, %3, %cst_199 {dimension_numbers = #tpu.dot_dimension_numbers<[1], [0], [0], [1], [0, 0, 1, 1], [], []>} : vector<2x16xf32>, vector<16x128xf32>, vector<2x128xf32> -> vector<2x128xf32>
    %cst_200 = arith.constant dense<0.000000e+00> : vector<2x128xf32>
    %595 = tpu.matmul %524, %4, %cst_200 {dimension_numbers = #tpu.dot_dimension_numbers<[1], [0], [0], [1], [0, 0, 1, 1], [], []>} : vector<2x32xf32>, vector<32x128xf32>, vector<2x128xf32> -> vector<2x128xf32>
    %596 = arith.addf %594, %595 : vector<2x128xf32>
    %597 = vector.broadcast %5 : vector<1x128xf32> to vector<2x128xf32>
    %598 = arith.addf %596, %597 : vector<2x128xf32>
    %599 = vector.extract_strided_slice %598 {offsets = [0, 0], sizes = [2, 32], strides = [1, 1]} : vector<2x128xf32> to vector<2x32xf32>
    %600 = arith.negf %599 : vector<2x32xf32>
    %601 = math.exp %600 : vector<2x32xf32>
    %cst_201 = arith.constant 1.000000e+00 : f32
    %602 = vector.broadcast %cst_201 : f32 to vector<2x32xf32>
    %603 = arith.addf %602, %601 : vector<2x32xf32>
    %604 = arith.divf %602, %603 : vector<2x32xf32>
    %605 = vector.extract_strided_slice %598 {offsets = [0, 32], sizes = [2, 32], strides = [1, 1]} : vector<2x128xf32> to vector<2x32xf32>
    %606 = arith.negf %605 : vector<2x32xf32>
    %607 = math.exp %606 : vector<2x32xf32>
    %cst_202 = arith.constant 1.000000e+00 : f32
    %608 = vector.broadcast %cst_202 : f32 to vector<2x32xf32>
    %609 = arith.addf %608, %607 : vector<2x32xf32>
    %610 = arith.divf %608, %609 : vector<2x32xf32>
    %611 = vector.extract_strided_slice %598 {offsets = [0, 64], sizes = [2, 32], strides = [1, 1]} : vector<2x128xf32> to vector<2x32xf32>
    %612 = math.tanh %611 : vector<2x32xf32>
    %613 = vector.extract_strided_slice %598 {offsets = [0, 96], sizes = [2, 32], strides = [1, 1]} : vector<2x128xf32> to vector<2x32xf32>
    %614 = arith.negf %613 : vector<2x32xf32>
    %615 = math.exp %614 : vector<2x32xf32>
    %cst_203 = arith.constant 1.000000e+00 : f32
    %616 = vector.broadcast %cst_203 : f32 to vector<2x32xf32>
    %617 = arith.addf %616, %615 : vector<2x32xf32>
    %618 = arith.divf %616, %617 : vector<2x32xf32>
    %619 = arith.mulf %610, %531 : vector<2x32xf32>
    %620 = arith.mulf %604, %612 : vector<2x32xf32>
    %621 = arith.addf %619, %620 : vector<2x32xf32>
    %622 = math.tanh %621 : vector<2x32xf32>
    %623 = arith.mulf %618, %622 : vector<2x32xf32>
    %624 = vector.broadcast %545 : vector<2x1xf32> to vector<2x32xf32>
    %625 = arith.mulf %624, %623 : vector<2x32xf32>
    %cst_204 = arith.constant 1.000000e+00 : f32
    %626 = vector.broadcast %cst_204 : f32 to vector<2x1xf32>
    %627 = arith.subf %626, %545 : vector<2x1xf32>
    %628 = vector.broadcast %627 : vector<2x1xf32> to vector<2x32xf32>
    %629 = arith.mulf %628, %524 : vector<2x32xf32>
    %630 = arith.addf %625, %629 : vector<2x32xf32>
    %631 = vector.broadcast %545 : vector<2x1xf32> to vector<2x32xf32>
    %632 = arith.mulf %631, %621 : vector<2x32xf32>
    %cst_205 = arith.constant 1.000000e+00 : f32
    %633 = vector.broadcast %cst_205 : f32 to vector<2x1xf32>
    %634 = arith.subf %633, %545 : vector<2x1xf32>
    %635 = vector.broadcast %634 : vector<2x1xf32> to vector<2x32xf32>
    %636 = arith.mulf %635, %531 : vector<2x32xf32>
    %637 = arith.addf %632, %636 : vector<2x32xf32>
    %638 = vector.broadcast %543 : vector<2x1xf32> to vector<2x32xf32>
    %639 = arith.mulf %638, %584 : vector<2x32xf32>
    %640 = vector.broadcast %545 : vector<2x1xf32> to vector<2x32xf32>
    %641 = arith.mulf %640, %630 : vector<2x32xf32>
    %642 = vector.shape_cast %639 : vector<2x32xf32> to vector<2x1x32xf32>
    %c0_206 = arith.constant 0 : index
    %c5_207 = arith.constant 5 : index
    %c0_208 = arith.constant 0 : index
    %643 = vector.load %arg9[%c0_206, %c5_207, %c0_208] : memref<2x8x64xf32, #tpu.memory_space<vmem>>, vector<2x1x32xf32>
    tpu.vector_store %arg9[%c0_206, %c5_207, %c0_208], %642 {strides = array<i32>} : memref<2x8x64xf32, #tpu.memory_space<vmem>>, vector<2x1x32xf32>,
    %644 = vector.shape_cast %641 : vector<2x32xf32> to vector<2x1x32xf32>
    %c0_209 = arith.constant 0 : index
    %c2_210 = arith.constant 2 : index
    %c32_211 = arith.constant 32 : index
    %645 = vector.load %arg9[%c0_209, %c2_210, %c32_211] : memref<2x8x64xf32, #tpu.memory_space<vmem>>, vector<2x1x32xf32>
    tpu.vector_store %arg9[%c0_209, %c2_210, %c32_211], %644 {strides = array<i32>} : memref<2x8x64xf32, #tpu.memory_space<vmem>>, vector<2x1x32xf32>,
    %cst_212 = arith.constant dense<0.000000e+00> : vector<2x64xf32>
    %646 = tpu.matmul %639, %6, %cst_212 {dimension_numbers = #tpu.dot_dimension_numbers<[1], [0], [0], [1], [0, 0, 1, 1], [], []>} : vector<2x32xf32>, vector<32x64xf32>, vector<2x64xf32> -> vector<2x64xf32>
    %cst_213 = arith.constant dense<0.000000e+00> : vector<2x64xf32>
    %647 = tpu.matmul %641, %7, %cst_213 {dimension_numbers = #tpu.dot_dimension_numbers<[1], [0], [0], [1], [0, 0, 1, 1], [], []>} : vector<2x32xf32>, vector<32x64xf32>, vector<2x64xf32> -> vector<2x64xf32>
    %c6_214 = arith.constant 6 : index
    %c0_215 = arith.constant 0 : index
    %c0_216 = arith.constant 0 : index
    %648 = vector.load %arg1[%c6_214, %c0_215, %c0_216] : memref<8x2x1xf32, #tpu.memory_space<vmem>>, vector<1x2x1xf32>
    %649 = vector.shape_cast %648 : vector<1x2x1xf32> to vector<2x1xf32>
    %c1_217 = arith.constant 1 : index
    %c0_218 = arith.constant 0 : index
    %c0_219 = arith.constant 0 : index
    %650 = vector.load %arg1[%c1_217, %c0_218, %c0_219] : memref<8x2x1xf32, #tpu.memory_space<vmem>>, vector<1x2x1xf32>
    %651 = vector.shape_cast %650 : vector<1x2x1xf32> to vector<2x1xf32>
    %c6_220 = arith.constant 6 : index
    %c0_221 = arith.constant 0 : index
    %c0_222 = arith.constant 0 : index
    %652 = vector.load %arg0[%c6_220, %c0_221, %c0_222] : memref<8x2x16xf32, #tpu.memory_space<vmem>>, vector<1x2x16xf32>
    %653 = vector.shape_cast %652 : vector<1x2x16xf32> to vector<2x16xf32>
    %cst_223 = arith.constant dense<0.000000e+00> : vector<2x128xf32>
    %654 = tpu.matmul %653, %0, %cst_223 {dimension_numbers = #tpu.dot_dimension_numbers<[1], [0], [0], [1], [0, 0, 1, 1], [], []>} : vector<2x16xf32>, vector<16x128xf32>, vector<2x128xf32> -> vector<2x128xf32>
    %cst_224 = arith.constant dense<0.000000e+00> : vector<2x128xf32>
    %655 = tpu.matmul %584, %1, %cst_224 {dimension_numbers = #tpu.dot_dimension_numbers<[1], [0], [0], [1], [0, 0, 1, 1], [], []>} : vector<2x32xf32>, vector<32x128xf32>, vector<2x128xf32> -> vector<2x128xf32>
    %656 = arith.addf %654, %655 : vector<2x128xf32>
    %657 = vector.broadcast %2 : vector<1x128xf32> to vector<2x128xf32>
    %658 = arith.addf %656, %657 : vector<2x128xf32>
    %659 = vector.extract_strided_slice %658 {offsets = [0, 0], sizes = [2, 32], strides = [1, 1]} : vector<2x128xf32> to vector<2x32xf32>
    %660 = arith.negf %659 : vector<2x32xf32>
    %661 = math.exp %660 : vector<2x32xf32>
    %cst_225 = arith.constant 1.000000e+00 : f32
    %662 = vector.broadcast %cst_225 : f32 to vector<2x32xf32>
    %663 = arith.addf %662, %661 : vector<2x32xf32>
    %664 = arith.divf %662, %663 : vector<2x32xf32>
    %665 = vector.extract_strided_slice %658 {offsets = [0, 32], sizes = [2, 32], strides = [1, 1]} : vector<2x128xf32> to vector<2x32xf32>
    %666 = arith.negf %665 : vector<2x32xf32>
    %667 = math.exp %666 : vector<2x32xf32>
    %cst_226 = arith.constant 1.000000e+00 : f32
    %668 = vector.broadcast %cst_226 : f32 to vector<2x32xf32>
    %669 = arith.addf %668, %667 : vector<2x32xf32>
    %670 = arith.divf %668, %669 : vector<2x32xf32>
    %671 = vector.extract_strided_slice %658 {offsets = [0, 64], sizes = [2, 32], strides = [1, 1]} : vector<2x128xf32> to vector<2x32xf32>
    %672 = math.tanh %671 : vector<2x32xf32>
    %673 = vector.extract_strided_slice %658 {offsets = [0, 96], sizes = [2, 32], strides = [1, 1]} : vector<2x128xf32> to vector<2x32xf32>
    %674 = arith.negf %673 : vector<2x32xf32>
    %675 = math.exp %674 : vector<2x32xf32>
    %cst_227 = arith.constant 1.000000e+00 : f32
    %676 = vector.broadcast %cst_227 : f32 to vector<2x32xf32>
    %677 = arith.addf %676, %675 : vector<2x32xf32>
    %678 = arith.divf %676, %677 : vector<2x32xf32>
    %679 = arith.mulf %670, %591 : vector<2x32xf32>
    %680 = arith.mulf %664, %672 : vector<2x32xf32>
    %681 = arith.addf %679, %680 : vector<2x32xf32>
    %682 = math.tanh %681 : vector<2x32xf32>
    %683 = arith.mulf %678, %682 : vector<2x32xf32>
    %684 = vector.broadcast %649 : vector<2x1xf32> to vector<2x32xf32>
    %685 = arith.mulf %684, %683 : vector<2x32xf32>
    %cst_228 = arith.constant 1.000000e+00 : f32
    %686 = vector.broadcast %cst_228 : f32 to vector<2x1xf32>
    %687 = arith.subf %686, %649 : vector<2x1xf32>
    %688 = vector.broadcast %687 : vector<2x1xf32> to vector<2x32xf32>
    %689 = arith.mulf %688, %584 : vector<2x32xf32>
    %690 = arith.addf %685, %689 : vector<2x32xf32>
    %691 = vector.broadcast %649 : vector<2x1xf32> to vector<2x32xf32>
    %692 = arith.mulf %691, %681 : vector<2x32xf32>
    %cst_229 = arith.constant 1.000000e+00 : f32
    %693 = vector.broadcast %cst_229 : f32 to vector<2x1xf32>
    %694 = arith.subf %693, %649 : vector<2x1xf32>
    %695 = vector.broadcast %694 : vector<2x1xf32> to vector<2x32xf32>
    %696 = arith.mulf %695, %591 : vector<2x32xf32>
    %697 = arith.addf %692, %696 : vector<2x32xf32>
    %c1_230 = arith.constant 1 : index
    %c0_231 = arith.constant 0 : index
    %c0_232 = arith.constant 0 : index
    %698 = vector.load %arg0[%c1_230, %c0_231, %c0_232] : memref<8x2x16xf32, #tpu.memory_space<vmem>>, vector<1x2x16xf32>
    %699 = vector.shape_cast %698 : vector<1x2x16xf32> to vector<2x16xf32>
    %cst_233 = arith.constant dense<0.000000e+00> : vector<2x128xf32>
    %700 = tpu.matmul %699, %3, %cst_233 {dimension_numbers = #tpu.dot_dimension_numbers<[1], [0], [0], [1], [0, 0, 1, 1], [], []>} : vector<2x16xf32>, vector<16x128xf32>, vector<2x128xf32> -> vector<2x128xf32>
    %cst_234 = arith.constant dense<0.000000e+00> : vector<2x128xf32>
    %701 = tpu.matmul %630, %4, %cst_234 {dimension_numbers = #tpu.dot_dimension_numbers<[1], [0], [0], [1], [0, 0, 1, 1], [], []>} : vector<2x32xf32>, vector<32x128xf32>, vector<2x128xf32> -> vector<2x128xf32>
    %702 = arith.addf %700, %701 : vector<2x128xf32>
    %703 = vector.broadcast %5 : vector<1x128xf32> to vector<2x128xf32>
    %704 = arith.addf %702, %703 : vector<2x128xf32>
    %705 = vector.extract_strided_slice %704 {offsets = [0, 0], sizes = [2, 32], strides = [1, 1]} : vector<2x128xf32> to vector<2x32xf32>
    %706 = arith.negf %705 : vector<2x32xf32>
    %707 = math.exp %706 : vector<2x32xf32>
    %cst_235 = arith.constant 1.000000e+00 : f32
    %708 = vector.broadcast %cst_235 : f32 to vector<2x32xf32>
    %709 = arith.addf %708, %707 : vector<2x32xf32>
    %710 = arith.divf %708, %709 : vector<2x32xf32>
    %711 = vector.extract_strided_slice %704 {offsets = [0, 32], sizes = [2, 32], strides = [1, 1]} : vector<2x128xf32> to vector<2x32xf32>
    %712 = arith.negf %711 : vector<2x32xf32>
    %713 = math.exp %712 : vector<2x32xf32>
    %cst_236 = arith.constant 1.000000e+00 : f32
    %714 = vector.broadcast %cst_236 : f32 to vector<2x32xf32>
    %715 = arith.addf %714, %713 : vector<2x32xf32>
    %716 = arith.divf %714, %715 : vector<2x32xf32>
    %717 = vector.extract_strided_slice %704 {offsets = [0, 64], sizes = [2, 32], strides = [1, 1]} : vector<2x128xf32> to vector<2x32xf32>
    %718 = math.tanh %717 : vector<2x32xf32>
    %719 = vector.extract_strided_slice %704 {offsets = [0, 96], sizes = [2, 32], strides = [1, 1]} : vector<2x128xf32> to vector<2x32xf32>
    %720 = arith.negf %719 : vector<2x32xf32>
    %721 = math.exp %720 : vector<2x32xf32>
    %cst_237 = arith.constant 1.000000e+00 : f32
    %722 = vector.broadcast %cst_237 : f32 to vector<2x32xf32>
    %723 = arith.addf %722, %721 : vector<2x32xf32>
    %724 = arith.divf %722, %723 : vector<2x32xf32>
    %725 = arith.mulf %716, %637 : vector<2x32xf32>
    %726 = arith.mulf %710, %718 : vector<2x32xf32>
    %727 = arith.addf %725, %726 : vector<2x32xf32>
    %728 = math.tanh %727 : vector<2x32xf32>
    %729 = arith.mulf %724, %728 : vector<2x32xf32>
    %730 = vector.broadcast %651 : vector<2x1xf32> to vector<2x32xf32>
    %731 = arith.mulf %730, %729 : vector<2x32xf32>
    %cst_238 = arith.constant 1.000000e+00 : f32
    %732 = vector.broadcast %cst_238 : f32 to vector<2x1xf32>
    %733 = arith.subf %732, %651 : vector<2x1xf32>
    %734 = vector.broadcast %733 : vector<2x1xf32> to vector<2x32xf32>
    %735 = arith.mulf %734, %630 : vector<2x32xf32>
    %736 = arith.addf %731, %735 : vector<2x32xf32>
    %737 = vector.broadcast %651 : vector<2x1xf32> to vector<2x32xf32>
    %738 = arith.mulf %737, %727 : vector<2x32xf32>
    %cst_239 = arith.constant 1.000000e+00 : f32
    %739 = vector.broadcast %cst_239 : f32 to vector<2x1xf32>
    %740 = arith.subf %739, %651 : vector<2x1xf32>
    %741 = vector.broadcast %740 : vector<2x1xf32> to vector<2x32xf32>
    %742 = arith.mulf %741, %637 : vector<2x32xf32>
    %743 = arith.addf %738, %742 : vector<2x32xf32>
    %744 = vector.broadcast %649 : vector<2x1xf32> to vector<2x32xf32>
    %745 = arith.mulf %744, %690 : vector<2x32xf32>
    %746 = vector.broadcast %651 : vector<2x1xf32> to vector<2x32xf32>
    %747 = arith.mulf %746, %736 : vector<2x32xf32>
    %748 = vector.shape_cast %745 : vector<2x32xf32> to vector<2x1x32xf32>
    %c0_240 = arith.constant 0 : index
    %c6_241 = arith.constant 6 : index
    %c0_242 = arith.constant 0 : index
    %749 = vector.load %arg9[%c0_240, %c6_241, %c0_242] : memref<2x8x64xf32, #tpu.memory_space<vmem>>, vector<2x1x32xf32>
    tpu.vector_store %arg9[%c0_240, %c6_241, %c0_242], %748 {strides = array<i32>} : memref<2x8x64xf32, #tpu.memory_space<vmem>>, vector<2x1x32xf32>,
    %750 = vector.shape_cast %747 : vector<2x32xf32> to vector<2x1x32xf32>
    %c0_243 = arith.constant 0 : index
    %c1_244 = arith.constant 1 : index
    %c32_245 = arith.constant 32 : index
    %751 = vector.load %arg9[%c0_243, %c1_244, %c32_245] : memref<2x8x64xf32, #tpu.memory_space<vmem>>, vector<2x1x32xf32>
    tpu.vector_store %arg9[%c0_243, %c1_244, %c32_245], %750 {strides = array<i32>} : memref<2x8x64xf32, #tpu.memory_space<vmem>>, vector<2x1x32xf32>,
    %cst_246 = arith.constant dense<0.000000e+00> : vector<2x64xf32>
    %752 = tpu.matmul %745, %6, %cst_246 {dimension_numbers = #tpu.dot_dimension_numbers<[1], [0], [0], [1], [0, 0, 1, 1], [], []>} : vector<2x32xf32>, vector<32x64xf32>, vector<2x64xf32> -> vector<2x64xf32>
    %cst_247 = arith.constant dense<0.000000e+00> : vector<2x64xf32>
    %753 = tpu.matmul %747, %7, %cst_247 {dimension_numbers = #tpu.dot_dimension_numbers<[1], [0], [0], [1], [0, 0, 1, 1], [], []>} : vector<2x32xf32>, vector<32x64xf32>, vector<2x64xf32> -> vector<2x64xf32>
    %c7_248 = arith.constant 7 : index
    %c0_249 = arith.constant 0 : index
    %c0_250 = arith.constant 0 : index
    %754 = vector.load %arg1[%c7_248, %c0_249, %c0_250] : memref<8x2x1xf32, #tpu.memory_space<vmem>>, vector<1x2x1xf32>
    %755 = vector.shape_cast %754 : vector<1x2x1xf32> to vector<2x1xf32>
    %c0_251 = arith.constant 0 : index
    %c0_252 = arith.constant 0 : index
    %c0_253 = arith.constant 0 : index
    %756 = vector.load %arg1[%c0_251, %c0_252, %c0_253] : memref<8x2x1xf32, #tpu.memory_space<vmem>>, vector<1x2x1xf32>
    %757 = vector.shape_cast %756 : vector<1x2x1xf32> to vector<2x1xf32>
    %c7_254 = arith.constant 7 : index
    %c0_255 = arith.constant 0 : index
    %c0_256 = arith.constant 0 : index
    %758 = vector.load %arg0[%c7_254, %c0_255, %c0_256] : memref<8x2x16xf32, #tpu.memory_space<vmem>>, vector<1x2x16xf32>
    %759 = vector.shape_cast %758 : vector<1x2x16xf32> to vector<2x16xf32>
    %cst_257 = arith.constant dense<0.000000e+00> : vector<2x128xf32>
    %760 = tpu.matmul %759, %0, %cst_257 {dimension_numbers = #tpu.dot_dimension_numbers<[1], [0], [0], [1], [0, 0, 1, 1], [], []>} : vector<2x16xf32>, vector<16x128xf32>, vector<2x128xf32> -> vector<2x128xf32>
    %cst_258 = arith.constant dense<0.000000e+00> : vector<2x128xf32>
    %761 = tpu.matmul %690, %1, %cst_258 {dimension_numbers = #tpu.dot_dimension_numbers<[1], [0], [0], [1], [0, 0, 1, 1], [], []>} : vector<2x32xf32>, vector<32x128xf32>, vector<2x128xf32> -> vector<2x128xf32>
    %762 = arith.addf %760, %761 : vector<2x128xf32>
    %763 = vector.broadcast %2 : vector<1x128xf32> to vector<2x128xf32>
    %764 = arith.addf %762, %763 : vector<2x128xf32>
    %765 = vector.extract_strided_slice %764 {offsets = [0, 0], sizes = [2, 32], strides = [1, 1]} : vector<2x128xf32> to vector<2x32xf32>
    %766 = arith.negf %765 : vector<2x32xf32>
    %767 = math.exp %766 : vector<2x32xf32>
    %cst_259 = arith.constant 1.000000e+00 : f32
    %768 = vector.broadcast %cst_259 : f32 to vector<2x32xf32>
    %769 = arith.addf %768, %767 : vector<2x32xf32>
    %770 = arith.divf %768, %769 : vector<2x32xf32>
    %771 = vector.extract_strided_slice %764 {offsets = [0, 32], sizes = [2, 32], strides = [1, 1]} : vector<2x128xf32> to vector<2x32xf32>
    %772 = arith.negf %771 : vector<2x32xf32>
    %773 = math.exp %772 : vector<2x32xf32>
    %cst_260 = arith.constant 1.000000e+00 : f32
    %774 = vector.broadcast %cst_260 : f32 to vector<2x32xf32>
    %775 = arith.addf %774, %773 : vector<2x32xf32>
    %776 = arith.divf %774, %775 : vector<2x32xf32>
    %777 = vector.extract_strided_slice %764 {offsets = [0, 64], sizes = [2, 32], strides = [1, 1]} : vector<2x128xf32> to vector<2x32xf32>
    %778 = math.tanh %777 : vector<2x32xf32>
    %779 = vector.extract_strided_slice %764 {offsets = [0, 96], sizes = [2, 32], strides = [1, 1]} : vector<2x128xf32> to vector<2x32xf32>
    %780 = arith.negf %779 : vector<2x32xf32>
    %781 = math.exp %780 : vector<2x32xf32>
    %cst_261 = arith.constant 1.000000e+00 : f32
    %782 = vector.broadcast %cst_261 : f32 to vector<2x32xf32>
    %783 = arith.addf %782, %781 : vector<2x32xf32>
    %784 = arith.divf %782, %783 : vector<2x32xf32>
    %785 = arith.mulf %776, %697 : vector<2x32xf32>
    %786 = arith.mulf %770, %778 : vector<2x32xf32>
    %787 = arith.addf %785, %786 : vector<2x32xf32>
    %788 = math.tanh %787 : vector<2x32xf32>
    %789 = arith.mulf %784, %788 : vector<2x32xf32>
    %790 = vector.broadcast %755 : vector<2x1xf32> to vector<2x32xf32>
    %791 = arith.mulf %790, %789 : vector<2x32xf32>
    %cst_262 = arith.constant 1.000000e+00 : f32
    %792 = vector.broadcast %cst_262 : f32 to vector<2x1xf32>
    %793 = arith.subf %792, %755 : vector<2x1xf32>
    %794 = vector.broadcast %793 : vector<2x1xf32> to vector<2x32xf32>
    %795 = arith.mulf %794, %690 : vector<2x32xf32>
    %796 = arith.addf %791, %795 : vector<2x32xf32>
    %797 = vector.broadcast %755 : vector<2x1xf32> to vector<2x32xf32>
    %798 = arith.mulf %797, %787 : vector<2x32xf32>
    %cst_263 = arith.constant 1.000000e+00 : f32
    %799 = vector.broadcast %cst_263 : f32 to vector<2x1xf32>
    %800 = arith.subf %799, %755 : vector<2x1xf32>
    %801 = vector.broadcast %800 : vector<2x1xf32> to vector<2x32xf32>
    %802 = arith.mulf %801, %697 : vector<2x32xf32>
    %803 = arith.addf %798, %802 : vector<2x32xf32>
    %c0_264 = arith.constant 0 : index
    %c0_265 = arith.constant 0 : index
    %c0_266 = arith.constant 0 : index
    %804 = vector.load %arg0[%c0_264, %c0_265, %c0_266] : memref<8x2x16xf32, #tpu.memory_space<vmem>>, vector<1x2x16xf32>
    %805 = vector.shape_cast %804 : vector<1x2x16xf32> to vector<2x16xf32>
    %cst_267 = arith.constant dense<0.000000e+00> : vector<2x128xf32>
    %806 = tpu.matmul %805, %3, %cst_267 {dimension_numbers = #tpu.dot_dimension_numbers<[1], [0], [0], [1], [0, 0, 1, 1], [], []>} : vector<2x16xf32>, vector<16x128xf32>, vector<2x128xf32> -> vector<2x128xf32>
    %cst_268 = arith.constant dense<0.000000e+00> : vector<2x128xf32>
    %807 = tpu.matmul %736, %4, %cst_268 {dimension_numbers = #tpu.dot_dimension_numbers<[1], [0], [0], [1], [0, 0, 1, 1], [], []>} : vector<2x32xf32>, vector<32x128xf32>, vector<2x128xf32> -> vector<2x128xf32>
    %808 = arith.addf %806, %807 : vector<2x128xf32>
    %809 = vector.broadcast %5 : vector<1x128xf32> to vector<2x128xf32>
    %810 = arith.addf %808, %809 : vector<2x128xf32>
    %811 = vector.extract_strided_slice %810 {offsets = [0, 0], sizes = [2, 32], strides = [1, 1]} : vector<2x128xf32> to vector<2x32xf32>
    %812 = arith.negf %811 : vector<2x32xf32>
    %813 = math.exp %812 : vector<2x32xf32>
    %cst_269 = arith.constant 1.000000e+00 : f32
    %814 = vector.broadcast %cst_269 : f32 to vector<2x32xf32>
    %815 = arith.addf %814, %813 : vector<2x32xf32>
    %816 = arith.divf %814, %815 : vector<2x32xf32>
    %817 = vector.extract_strided_slice %810 {offsets = [0, 32], sizes = [2, 32], strides = [1, 1]} : vector<2x128xf32> to vector<2x32xf32>
    %818 = arith.negf %817 : vector<2x32xf32>
    %819 = math.exp %818 : vector<2x32xf32>
    %cst_270 = arith.constant 1.000000e+00 : f32
    %820 = vector.broadcast %cst_270 : f32 to vector<2x32xf32>
    %821 = arith.addf %820, %819 : vector<2x32xf32>
    %822 = arith.divf %820, %821 : vector<2x32xf32>
    %823 = vector.extract_strided_slice %810 {offsets = [0, 64], sizes = [2, 32], strides = [1, 1]} : vector<2x128xf32> to vector<2x32xf32>
    %824 = math.tanh %823 : vector<2x32xf32>
    %825 = vector.extract_strided_slice %810 {offsets = [0, 96], sizes = [2, 32], strides = [1, 1]} : vector<2x128xf32> to vector<2x32xf32>
    %826 = arith.negf %825 : vector<2x32xf32>
    %827 = math.exp %826 : vector<2x32xf32>
    %cst_271 = arith.constant 1.000000e+00 : f32
    %828 = vector.broadcast %cst_271 : f32 to vector<2x32xf32>
    %829 = arith.addf %828, %827 : vector<2x32xf32>
    %830 = arith.divf %828, %829 : vector<2x32xf32>
    %831 = arith.mulf %822, %743 : vector<2x32xf32>
    %832 = arith.mulf %816, %824 : vector<2x32xf32>
    %833 = arith.addf %831, %832 : vector<2x32xf32>
    %834 = math.tanh %833 : vector<2x32xf32>
    %835 = arith.mulf %830, %834 : vector<2x32xf32>
    %836 = vector.broadcast %757 : vector<2x1xf32> to vector<2x32xf32>
    %837 = arith.mulf %836, %835 : vector<2x32xf32>
    %cst_272 = arith.constant 1.000000e+00 : f32
    %838 = vector.broadcast %cst_272 : f32 to vector<2x1xf32>
    %839 = arith.subf %838, %757 : vector<2x1xf32>
    %840 = vector.broadcast %839 : vector<2x1xf32> to vector<2x32xf32>
    %841 = arith.mulf %840, %736 : vector<2x32xf32>
    %842 = arith.addf %837, %841 : vector<2x32xf32>
    %843 = vector.broadcast %757 : vector<2x1xf32> to vector<2x32xf32>
    %844 = arith.mulf %843, %833 : vector<2x32xf32>
    %cst_273 = arith.constant 1.000000e+00 : f32
    %845 = vector.broadcast %cst_273 : f32 to vector<2x1xf32>
    %846 = arith.subf %845, %757 : vector<2x1xf32>
    %847 = vector.broadcast %846 : vector<2x1xf32> to vector<2x32xf32>
    %848 = arith.mulf %847, %743 : vector<2x32xf32>
    %849 = arith.addf %844, %848 : vector<2x32xf32>
    %850 = vector.broadcast %755 : vector<2x1xf32> to vector<2x32xf32>
    %851 = arith.mulf %850, %796 : vector<2x32xf32>
    %852 = vector.broadcast %757 : vector<2x1xf32> to vector<2x32xf32>
    %853 = arith.mulf %852, %842 : vector<2x32xf32>
    %854 = vector.shape_cast %851 : vector<2x32xf32> to vector<2x1x32xf32>
    %c0_274 = arith.constant 0 : index
    %c7_275 = arith.constant 7 : index
    %c0_276 = arith.constant 0 : index
    %855 = vector.load %arg9[%c0_274, %c7_275, %c0_276] : memref<2x8x64xf32, #tpu.memory_space<vmem>>, vector<2x1x32xf32>
    tpu.vector_store %arg9[%c0_274, %c7_275, %c0_276], %854 {strides = array<i32>} : memref<2x8x64xf32, #tpu.memory_space<vmem>>, vector<2x1x32xf32>,
    %856 = vector.shape_cast %853 : vector<2x32xf32> to vector<2x1x32xf32>
    %c0_277 = arith.constant 0 : index
    %c0_278 = arith.constant 0 : index
    %c32_279 = arith.constant 32 : index
    %857 = vector.load %arg9[%c0_277, %c0_278, %c32_279] : memref<2x8x64xf32, #tpu.memory_space<vmem>>, vector<2x1x32xf32>
    tpu.vector_store %arg9[%c0_277, %c0_278, %c32_279], %856 {strides = array<i32>} : memref<2x8x64xf32, #tpu.memory_space<vmem>>, vector<2x1x32xf32>,
    %cst_280 = arith.constant dense<0.000000e+00> : vector<2x64xf32>
    %858 = tpu.matmul %851, %6, %cst_280 {dimension_numbers = #tpu.dot_dimension_numbers<[1], [0], [0], [1], [0, 0, 1, 1], [], []>} : vector<2x32xf32>, vector<32x64xf32>, vector<2x64xf32> -> vector<2x64xf32>
    %cst_281 = arith.constant dense<0.000000e+00> : vector<2x64xf32>
    %859 = tpu.matmul %853, %7, %cst_281 {dimension_numbers = #tpu.dot_dimension_numbers<[1], [0], [0], [1], [0, 0, 1, 1], [], []>} : vector<2x32xf32>, vector<32x64xf32>, vector<2x64xf32> -> vector<2x64xf32>
    %860 = arith.addf %116, %859 : vector<2x64xf32>
    %861 = vector.shape_cast %860 : vector<2x64xf32> to vector<2x1x64xf32>
    %c0_282 = arith.constant 0 : index
    %c0_283 = arith.constant 0 : index
    %c0_284 = arith.constant 0 : index
    %862 = vector.load %arg10[%c0_282, %c0_283, %c0_284] : memref<2x8x64xf32, #tpu.memory_space<vmem>>, vector<2x1x64xf32>
    tpu.vector_store %arg10[%c0_282, %c0_283, %c0_284], %861 {strides = array<i32>} : memref<2x8x64xf32, #tpu.memory_space<vmem>>, vector<2x1x64xf32>,
    %863 = arith.addf %222, %753 : vector<2x64xf32>
    %864 = vector.shape_cast %863 : vector<2x64xf32> to vector<2x1x64xf32>
    %c0_285 = arith.constant 0 : index
    %c1_286 = arith.constant 1 : index
    %c0_287 = arith.constant 0 : index
    %865 = vector.load %arg10[%c0_285, %c1_286, %c0_287] : memref<2x8x64xf32, #tpu.memory_space<vmem>>, vector<2x1x64xf32>
    tpu.vector_store %arg10[%c0_285, %c1_286, %c0_287], %864 {strides = array<i32>} : memref<2x8x64xf32, #tpu.memory_space<vmem>>, vector<2x1x64xf32>,
    %866 = arith.addf %328, %647 : vector<2x64xf32>
    %867 = vector.shape_cast %866 : vector<2x64xf32> to vector<2x1x64xf32>
    %c0_288 = arith.constant 0 : index
    %c2_289 = arith.constant 2 : index
    %c0_290 = arith.constant 0 : index
    %868 = vector.load %arg10[%c0_288, %c2_289, %c0_290] : memref<2x8x64xf32, #tpu.memory_space<vmem>>, vector<2x1x64xf32>
    tpu.vector_store %arg10[%c0_288, %c2_289, %c0_290], %867 {strides = array<i32>} : memref<2x8x64xf32, #tpu.memory_space<vmem>>, vector<2x1x64xf32>,
    %869 = arith.addf %434, %541 : vector<2x64xf32>
    %870 = vector.shape_cast %869 : vector<2x64xf32> to vector<2x1x64xf32>
    %c0_291 = arith.constant 0 : index
    %c3_292 = arith.constant 3 : index
    %c0_293 = arith.constant 0 : index
    %871 = vector.load %arg10[%c0_291, %c3_292, %c0_293] : memref<2x8x64xf32, #tpu.memory_space<vmem>>, vector<2x1x64xf32>
    tpu.vector_store %arg10[%c0_291, %c3_292, %c0_293], %870 {strides = array<i32>} : memref<2x8x64xf32, #tpu.memory_space<vmem>>, vector<2x1x64xf32>,
    %872 = arith.addf %540, %435 : vector<2x64xf32>
    %873 = vector.shape_cast %872 : vector<2x64xf32> to vector<2x1x64xf32>
    %c0_294 = arith.constant 0 : index
    %c4_295 = arith.constant 4 : index
    %c0_296 = arith.constant 0 : index
    %874 = vector.load %arg10[%c0_294, %c4_295, %c0_296] : memref<2x8x64xf32, #tpu.memory_space<vmem>>, vector<2x1x64xf32>
    tpu.vector_store %arg10[%c0_294, %c4_295, %c0_296], %873 {strides = array<i32>} : memref<2x8x64xf32, #tpu.memory_space<vmem>>, vector<2x1x64xf32>,
    %875 = arith.addf %646, %329 : vector<2x64xf32>
    %876 = vector.shape_cast %875 : vector<2x64xf32> to vector<2x1x64xf32>
    %c0_297 = arith.constant 0 : index
    %c5_298 = arith.constant 5 : index
    %c0_299 = arith.constant 0 : index
    %877 = vector.load %arg10[%c0_297, %c5_298, %c0_299] : memref<2x8x64xf32, #tpu.memory_space<vmem>>, vector<2x1x64xf32>
    tpu.vector_store %arg10[%c0_297, %c5_298, %c0_299], %876 {strides = array<i32>} : memref<2x8x64xf32, #tpu.memory_space<vmem>>, vector<2x1x64xf32>,
    %878 = arith.addf %752, %223 : vector<2x64xf32>
    %879 = vector.shape_cast %878 : vector<2x64xf32> to vector<2x1x64xf32>
    %c0_300 = arith.constant 0 : index
    %c6_301 = arith.constant 6 : index
    %c0_302 = arith.constant 0 : index
    %880 = vector.load %arg10[%c0_300, %c6_301, %c0_302] : memref<2x8x64xf32, #tpu.memory_space<vmem>>, vector<2x1x64xf32>
    tpu.vector_store %arg10[%c0_300, %c6_301, %c0_302], %879 {strides = array<i32>} : memref<2x8x64xf32, #tpu.memory_space<vmem>>, vector<2x1x64xf32>,
    %881 = arith.addf %858, %117 : vector<2x64xf32>
    %882 = vector.shape_cast %881 : vector<2x64xf32> to vector<2x1x64xf32>
    %c0_303 = arith.constant 0 : index
    %c7_304 = arith.constant 7 : index
    %c0_305 = arith.constant 0 : index
    %883 = vector.load %arg10[%c0_303, %c7_304, %c0_305] : memref<2x8x64xf32, #tpu.memory_space<vmem>>, vector<2x1x64xf32>
    tpu.vector_store %arg10[%c0_303, %c7_304, %c0_305], %882 {strides = array<i32>} : memref<2x8x64xf32, #tpu.memory_space<vmem>>, vector<2x1x64xf32>,
    %c0_306 = arith.constant 0 : index
    %c0_307 = arith.constant 0 : index
    %884 = vector.load %arg11[%c0_306, %c0_307] : memref<2x64xf32, #tpu.memory_space<vmem>>, vector<2x32xf32>
    tpu.vector_store %arg11[%c0_306, %c0_307], %796 {strides = array<i32>} : memref<2x64xf32, #tpu.memory_space<vmem>>, vector<2x32xf32>,
    %c0_308 = arith.constant 0 : index
    %c32_309 = arith.constant 32 : index
    %885 = vector.load %arg11[%c0_308, %c32_309] : memref<2x64xf32, #tpu.memory_space<vmem>>, vector<2x32xf32>
    tpu.vector_store %arg11[%c0_308, %c32_309], %842 {strides = array<i32>} : memref<2x64xf32, #tpu.memory_space<vmem>>, vector<2x32xf32>,
    %c0_310 = arith.constant 0 : index
    %c0_311 = arith.constant 0 : index
    %886 = vector.load %arg12[%c0_310, %c0_311] : memref<2x64xf32, #tpu.memory_space<vmem>>, vector<2x32xf32>
    tpu.vector_store %arg12[%c0_310, %c0_311], %803 {strides = array<i32>} : memref<2x64xf32, #tpu.memory_space<vmem>>, vector<2x32xf32>,
    %c0_312 = arith.constant 0 : index
    %c32_313 = arith.constant 32 : index
    %887 = vector.load %arg12[%c0_312, %c32_313] : memref<2x64xf32, #tpu.memory_space<vmem>>, vector<2x32xf32>
    tpu.vector_store %arg12[%c0_312, %c32_313], %849 {strides = array<i32>} : memref<2x64xf32, #tpu.memory_space<vmem>>, vector<2x32xf32>,
    return
  }
}

module attributes {stable_mosaic.version = 11 : i64} {
  func.func @_decoder_kernel(%arg0: i32, %arg1: memref<6xi32, #tpu.memory_space<smem>>, %arg2: memref<1x2x1xi32, #tpu.memory_space<vmem>>, %arg3: memref<50x16xf32, #tpu.memory_space<vmem>>, %arg4: memref<2x64xf32, #tpu.memory_space<vmem>>, %arg5: memref<2x64xf32, #tpu.memory_space<vmem>>, %arg6: memref<2x8x64xf32, #tpu.memory_space<vmem>>, %arg7: memref<2x8x64xf32, #tpu.memory_space<vmem>>, %arg8: memref<2x8xf32, #tpu.memory_space<vmem>>, %arg9: memref<64x64xf32, #tpu.memory_space<vmem>>, %arg10: memref<1x64xf32, #tpu.memory_space<vmem>>, %arg11: memref<1x64xf32, #tpu.memory_space<vmem>>, %arg12: memref<16x256xf32, #tpu.memory_space<vmem>>, %arg13: memref<64x256xf32, #tpu.memory_space<vmem>>, %arg14: memref<64x256xf32, #tpu.memory_space<vmem>>, %arg15: memref<1x256xf32, #tpu.memory_space<vmem>>, %arg16: memref<64x128xf32, #tpu.memory_space<vmem>>, %arg17: memref<1x128xf32, #tpu.memory_space<vmem>>, %arg18: memref<1x2x128xf32, #tpu.memory_space<vmem>>, %arg19: memref<2x64xf32, #tpu.memory_space<vmem>>, %arg20: memref<2x64xf32, #tpu.memory_space<vmem>>, %arg21: memref<2x1xi32, #tpu.memory_space<vmem>>) attributes {dimension_semantics = [#tpu.dimension_semantics<arbitrary>], iteration_bounds = array<i64: 6>, scalar_prefetch = 1 : i64, scratch_operands = 3 : i64, tpu.core_type = #tpu.core_type<tc>, window_params = [{transform_indices = @transform_0, window_bounds = array<i64: 1, 2, 1>}, {pipeline_mode = #tpu.pipeline_mode<synchronous>, transform_indices = @transform_1, window_bounds = array<i64: 50, 16>}, {pipeline_mode = #tpu.pipeline_mode<synchronous>, transform_indices = @transform_2, window_bounds = array<i64: 2, 64>}, {pipeline_mode = #tpu.pipeline_mode<synchronous>, transform_indices = @transform_3, window_bounds = array<i64: 2, 64>}, {pipeline_mode = #tpu.pipeline_mode<synchronous>, transform_indices = @transform_4, window_bounds = array<i64: 2, 8, 64>}, {pipeline_mode = #tpu.pipeline_mode<synchronous>, transform_indices = @transform_5, window_bounds = array<i64: 2, 8, 64>}, {pipeline_mode = #tpu.pipeline_mode<synchronous>, transform_indices = @transform_6, window_bounds = array<i64: 2, 8>}, {pipeline_mode = #tpu.pipeline_mode<synchronous>, transform_indices = @transform_7, window_bounds = array<i64: 64, 64>}, {pipeline_mode = #tpu.pipeline_mode<synchronous>, transform_indices = @transform_8, window_bounds = array<i64: 1, 64>}, {pipeline_mode = #tpu.pipeline_mode<synchronous>, transform_indices = @transform_9, window_bounds = array<i64: 1, 64>}, {pipeline_mode = #tpu.pipeline_mode<synchronous>, transform_indices = @transform_10, window_bounds = array<i64: 16, 256>}, {pipeline_mode = #tpu.pipeline_mode<synchronous>, transform_indices = @transform_11, window_bounds = array<i64: 64, 256>}, {pipeline_mode = #tpu.pipeline_mode<synchronous>, transform_indices = @transform_12, window_bounds = array<i64: 64, 256>}, {pipeline_mode = #tpu.pipeline_mode<synchronous>, transform_indices = @transform_13, window_bounds = array<i64: 1, 256>}, {pipeline_mode = #tpu.pipeline_mode<synchronous>, transform_indices = @transform_14, window_bounds = array<i64: 64, 128>}, {pipeline_mode = #tpu.pipeline_mode<synchronous>, transform_indices = @transform_15, window_bounds = array<i64: 1, 128>}, {transform_indices = @transform_16, window_bounds = array<i64: 1, 2, 128>}]} {
    %c0_i32 = arith.constant 0 : i32
    %0 = arith.cmpi eq, %arg0, %c0_i32 : i32
    %1 = arith.extui %0 : i1 to i32
    %c0_i32_0 = arith.constant 0 : i32
    %2 = arith.cmpi ne, %1, %c0_i32_0 : i32
    scf.if %2 {
      %c0_61 = arith.constant 0 : index
      %c0_62 = arith.constant 0 : index
      %107 = vector.load %arg4[%c0_61, %c0_62] : memref<2x64xf32, #tpu.memory_space<vmem>>, vector<2x64xf32>
      %c0_63 = arith.constant 0 : index
      %c0_64 = arith.constant 0 : index
      %108 = vector.load %arg19[%c0_63, %c0_64] : memref<2x64xf32, #tpu.memory_space<vmem>>, vector<2x64xf32>
      tpu.vector_store %arg19[%c0_63, %c0_64], %107 {strides = array<i32>} : memref<2x64xf32, #tpu.memory_space<vmem>>, vector<2x64xf32>,
      %c0_65 = arith.constant 0 : index
      %c0_66 = arith.constant 0 : index
      %109 = vector.load %arg5[%c0_65, %c0_66] : memref<2x64xf32, #tpu.memory_space<vmem>>, vector<2x64xf32>
      %c0_67 = arith.constant 0 : index
      %c0_68 = arith.constant 0 : index
      %110 = vector.load %arg20[%c0_67, %c0_68] : memref<2x64xf32, #tpu.memory_space<vmem>>, vector<2x64xf32>
      tpu.vector_store %arg20[%c0_67, %c0_68], %109 {strides = array<i32>} : memref<2x64xf32, #tpu.memory_space<vmem>>, vector<2x64xf32>,
      %c1_i32 = arith.constant 1 : i32
      %111 = vector.broadcast %c1_i32 : i32 to vector<2x1xi32>
      %c0_69 = arith.constant 0 : index
      %c0_70 = arith.constant 0 : index
      %112 = vector.load %arg21[%c0_69, %c0_70] : memref<2x1xi32, #tpu.memory_space<vmem>>, vector<2x1xi32>
      tpu.vector_store %arg21[%c0_69, %c0_70], %111 {strides = array<i32>} : memref<2x1xi32, #tpu.memory_space<vmem>>, vector<2x1xi32>,
    } else {
    }
    %c0 = arith.constant 0 : index
    %c0_1 = arith.constant 0 : index
    %3 = vector.load %arg19[%c0, %c0_1] : memref<2x64xf32, #tpu.memory_space<vmem>>, vector<2x64xf32>
    %c0_2 = arith.constant 0 : index
    %c0_3 = arith.constant 0 : index
    %4 = vector.load %arg20[%c0_2, %c0_3] : memref<2x64xf32, #tpu.memory_space<vmem>>, vector<2x64xf32>
    %c0_4 = arith.constant 0 : index
    %c0_5 = arith.constant 0 : index
    %5 = vector.load %arg21[%c0_4, %c0_5] : memref<2x1xi32, #tpu.memory_space<vmem>>, vector<2x1xi32>
    %6 = tpu.iota {dimensions = array<i32: 1>} : vector<2x50xi32>
    %7 = vector.broadcast %5 : vector<2x1xi32> to vector<2x50xi32>
    %8 = arith.cmpi eq, %6, %7 : vector<2x50xi32>
    %9 = arith.extui %8 : vector<2x50xi1> to vector<2x50xi32>
    %10 = arith.sitofp %9 : vector<2x50xi32> to vector<2x50xf32>
    %c0_6 = arith.constant 0 : index
    %c0_7 = arith.constant 0 : index
    %11 = vector.load %arg3[%c0_6, %c0_7] : memref<50x16xf32, #tpu.memory_space<vmem>>, vector<50x16xf32>
    %cst = arith.constant dense<0.000000e+00> : vector<2x16xf32>
    %12 = tpu.matmul %10, %11, %cst {dimension_numbers = #tpu.dot_dimension_numbers<[1], [0], [0], [1], [0, 0, 1, 1], [], []>} : vector<2x50xf32>, vector<50x16xf32>, vector<2x16xf32> -> vector<2x16xf32>
    %c0_8 = arith.constant 0 : index
    %c0_9 = arith.constant 0 : index
    %13 = vector.load %arg9[%c0_8, %c0_9] : memref<64x64xf32, #tpu.memory_space<vmem>>, vector<64x64xf32>
    %cst_10 = arith.constant dense<0.000000e+00> : vector<2x64xf32>
    %14 = tpu.matmul %3, %13, %cst_10 {dimension_numbers = #tpu.dot_dimension_numbers<[1], [0], [0], [1], [0, 0, 1, 1], [], []>} : vector<2x64xf32>, vector<64x64xf32>, vector<2x64xf32> -> vector<2x64xf32>
    %c0_11 = arith.constant 0 : index
    %c0_12 = arith.constant 0 : index
    %15 = vector.load %arg10[%c0_11, %c0_12] : memref<1x64xf32, #tpu.memory_space<vmem>>, vector<1x64xf32>
    %16 = vector.broadcast %15 : vector<1x64xf32> to vector<2x64xf32>
    %17 = arith.addf %14, %16 : vector<2x64xf32>
    %c0_13 = arith.constant 0 : index
    %c0_14 = arith.constant 0 : index
    %c0_15 = arith.constant 0 : index
    %18 = vector.load %arg7[%c0_13, %c0_14, %c0_15] : memref<2x8x64xf32, #tpu.memory_space<vmem>>, vector<2x8x64xf32>
    %19 = vector.shape_cast %17 : vector<2x64xf32> to vector<2x1x64xf32>
    %20 = vector.broadcast %19 : vector<2x1x64xf32> to vector<2x8x64xf32>
    %21 = arith.addf %18, %20 : vector<2x8x64xf32>
    %22 = math.tanh %21 : vector<2x8x64xf32>
    %c0_16 = arith.constant 0 : index
    %c0_17 = arith.constant 0 : index
    %23 = vector.load %arg11[%c0_16, %c0_17] : memref<1x64xf32, #tpu.memory_space<vmem>>, vector<1x64xf32>
    %24 = vector.shape_cast %23 : vector<1x64xf32> to vector<1x1x64xf32>
    %25 = vector.broadcast %24 : vector<1x1x64xf32> to vector<2x8x64xf32>
    %26 = arith.mulf %22, %25 : vector<2x8x64xf32>
    %cst_18 = arith.constant dense<0.000000e+00> : vector<2x8xf32>
    %27 = vector.multi_reduction <add>, %26, %cst_18 [2] : vector<2x8x64xf32> to vector<2x8xf32>
    %c0_19 = arith.constant 0 : index
    %c0_20 = arith.constant 0 : index
    %28 = vector.load %arg8[%c0_19, %c0_20] : memref<2x8xf32, #tpu.memory_space<vmem>>, vector<2x8xf32>
    %29 = arith.addf %27, %28 : vector<2x8xf32>
    %cst_21 = arith.constant dense<0xFF800000> : vector<2xf32>
    %30 = vector.multi_reduction <maximumf>, %29, %cst_21 [1] : vector<2x8xf32> to vector<2xf32>
    %31 = vector.shape_cast %30 : vector<2xf32> to vector<2x1xf32>
    %32 = vector.broadcast %31 : vector<2x1xf32> to vector<2x8xf32>
    %33 = arith.subf %29, %32 : vector<2x8xf32>
    %34 = math.exp %33 : vector<2x8xf32>
    %cst_22 = arith.constant dense<0.000000e+00> : vector<2xf32>
    %35 = vector.multi_reduction <add>, %34, %cst_22 [1] : vector<2x8xf32> to vector<2xf32>
    %36 = vector.shape_cast %35 : vector<2xf32> to vector<2x1xf32>
    %37 = tpu.reciprocal %36 {approx = true} : vector<2x1xf32> -> vector<2x1xf32>
    %38 = vector.broadcast %37 : vector<2x1xf32> to vector<2x8xf32>
    %39 = arith.mulf %34, %38 : vector<2x8xf32>
    %40 = vector.shape_cast %39 : vector<2x8xf32> to vector<2x8x1xf32>
    %c0_23 = arith.constant 0 : index
    %c0_24 = arith.constant 0 : index
    %c0_25 = arith.constant 0 : index
    %41 = vector.load %arg6[%c0_23, %c0_24, %c0_25] : memref<2x8x64xf32, #tpu.memory_space<vmem>>, vector<2x8x64xf32>
    %42 = vector.broadcast %40 : vector<2x8x1xf32> to vector<2x8x64xf32>
    %43 = arith.mulf %42, %41 : vector<2x8x64xf32>
    %cst_26 = arith.constant dense<0.000000e+00> : vector<2x64xf32>
    %44 = vector.multi_reduction <add>, %43, %cst_26 [1] : vector<2x8x64xf32> to vector<2x64xf32>
    %c0_27 = arith.constant 0 : index
    %c0_28 = arith.constant 0 : index
    %45 = vector.load %arg12[%c0_27, %c0_28] : memref<16x256xf32, #tpu.memory_space<vmem>>, vector<16x256xf32>
    %cst_29 = arith.constant dense<0.000000e+00> : vector<2x256xf32>
    %46 = tpu.matmul %12, %45, %cst_29 {dimension_numbers = #tpu.dot_dimension_numbers<[1], [0], [0], [1], [0, 0, 1, 1], [], []>} : vector<2x16xf32>, vector<16x256xf32>, vector<2x256xf32> -> vector<2x256xf32>
    %c0_30 = arith.constant 0 : index
    %c0_31 = arith.constant 0 : index
    %47 = vector.load %arg13[%c0_30, %c0_31] : memref<64x256xf32, #tpu.memory_space<vmem>>, vector<64x256xf32>
    %cst_32 = arith.constant dense<0.000000e+00> : vector<2x256xf32>
    %48 = tpu.matmul %44, %47, %cst_32 {dimension_numbers = #tpu.dot_dimension_numbers<[1], [0], [0], [1], [0, 0, 1, 1], [], []>} : vector<2x64xf32>, vector<64x256xf32>, vector<2x256xf32> -> vector<2x256xf32>
    %49 = arith.addf %46, %48 : vector<2x256xf32>
    %c0_33 = arith.constant 0 : index
    %c0_34 = arith.constant 0 : index
    %50 = vector.load %arg14[%c0_33, %c0_34] : memref<64x256xf32, #tpu.memory_space<vmem>>, vector<64x256xf32>
    %cst_35 = arith.constant dense<0.000000e+00> : vector<2x256xf32>
    %51 = tpu.matmul %3, %50, %cst_35 {dimension_numbers = #tpu.dot_dimension_numbers<[1], [0], [0], [1], [0, 0, 1, 1], [], []>} : vector<2x64xf32>, vector<64x256xf32>, vector<2x256xf32> -> vector<2x256xf32>
    %52 = arith.addf %49, %51 : vector<2x256xf32>
    %c0_36 = arith.constant 0 : index
    %c0_37 = arith.constant 0 : index
    %53 = vector.load %arg15[%c0_36, %c0_37] : memref<1x256xf32, #tpu.memory_space<vmem>>, vector<1x256xf32>
    %54 = vector.broadcast %53 : vector<1x256xf32> to vector<2x256xf32>
    %55 = arith.addf %52, %54 : vector<2x256xf32>
    %56 = vector.extract_strided_slice %55 {offsets = [0, 0], sizes = [2, 64], strides = [1, 1]} : vector<2x256xf32> to vector<2x64xf32>
    %57 = arith.negf %56 : vector<2x64xf32>
    %58 = math.exp %57 : vector<2x64xf32>
    %cst_38 = arith.constant 1.000000e+00 : f32
    %59 = vector.broadcast %cst_38 : f32 to vector<2x64xf32>
    %60 = arith.addf %59, %58 : vector<2x64xf32>
    %61 = arith.divf %59, %60 : vector<2x64xf32>
    %62 = vector.extract_strided_slice %55 {offsets = [0, 64], sizes = [2, 64], strides = [1, 1]} : vector<2x256xf32> to vector<2x64xf32>
    %63 = arith.negf %62 : vector<2x64xf32>
    %64 = math.exp %63 : vector<2x64xf32>
    %cst_39 = arith.constant 1.000000e+00 : f32
    %65 = vector.broadcast %cst_39 : f32 to vector<2x64xf32>
    %66 = arith.addf %65, %64 : vector<2x64xf32>
    %67 = arith.divf %65, %66 : vector<2x64xf32>
    %68 = vector.extract_strided_slice %55 {offsets = [0, 128], sizes = [2, 64], strides = [1, 1]} : vector<2x256xf32> to vector<2x64xf32>
    %69 = math.tanh %68 : vector<2x64xf32>
    %70 = vector.extract_strided_slice %55 {offsets = [0, 192], sizes = [2, 64], strides = [1, 1]} : vector<2x256xf32> to vector<2x64xf32>
    %71 = arith.negf %70 : vector<2x64xf32>
    %72 = math.exp %71 : vector<2x64xf32>
    %cst_40 = arith.constant 1.000000e+00 : f32
    %73 = vector.broadcast %cst_40 : f32 to vector<2x64xf32>
    %74 = arith.addf %73, %72 : vector<2x64xf32>
    %75 = arith.divf %73, %74 : vector<2x64xf32>
    %76 = arith.mulf %67, %4 : vector<2x64xf32>
    %77 = arith.mulf %61, %69 : vector<2x64xf32>
    %78 = arith.addf %76, %77 : vector<2x64xf32>
    %79 = math.tanh %78 : vector<2x64xf32>
    %80 = arith.mulf %75, %79 : vector<2x64xf32>
    %c0_41 = arith.constant 0 : index
    %c0_42 = arith.constant 0 : index
    %81 = vector.load %arg19[%c0_41, %c0_42] : memref<2x64xf32, #tpu.memory_space<vmem>>, vector<2x64xf32>
    tpu.vector_store %arg19[%c0_41, %c0_42], %80 {strides = array<i32>} : memref<2x64xf32, #tpu.memory_space<vmem>>, vector<2x64xf32>,
    %c0_43 = arith.constant 0 : index
    %c0_44 = arith.constant 0 : index
    %82 = vector.load %arg20[%c0_43, %c0_44] : memref<2x64xf32, #tpu.memory_space<vmem>>, vector<2x64xf32>
    tpu.vector_store %arg20[%c0_43, %c0_44], %78 {strides = array<i32>} : memref<2x64xf32, #tpu.memory_space<vmem>>, vector<2x64xf32>,
    %c0_45 = arith.constant 0 : index
    %c0_46 = arith.constant 0 : index
    %83 = vector.load %arg16[%c0_45, %c0_46] : memref<64x128xf32, #tpu.memory_space<vmem>>, vector<64x128xf32>
    %cst_47 = arith.constant dense<0.000000e+00> : vector<2x128xf32>
    %84 = tpu.matmul %80, %83, %cst_47 {dimension_numbers = #tpu.dot_dimension_numbers<[1], [0], [0], [1], [0, 0, 1, 1], [], []>} : vector<2x64xf32>, vector<64x128xf32>, vector<2x128xf32> -> vector<2x128xf32>
    %c0_48 = arith.constant 0 : index
    %c0_49 = arith.constant 0 : index
    %85 = vector.load %arg17[%c0_48, %c0_49] : memref<1x128xf32, #tpu.memory_space<vmem>>, vector<1x128xf32>
    %86 = vector.broadcast %85 : vector<1x128xf32> to vector<2x128xf32>
    %87 = arith.addf %84, %86 : vector<2x128xf32>
    %c0_50 = arith.constant 0 : index
    %c0_51 = arith.constant 0 : index
    %c0_52 = arith.constant 0 : index
    %88 = vector.load %arg18[%c0_50, %c0_51, %c0_52] : memref<1x2x128xf32, #tpu.memory_space<vmem>>, vector<1x2x128xf32>
    %89 = vector.shape_cast %88 : vector<1x2x128xf32> to vector<2x128xf32>
    %90 = vector.shape_cast %87 : vector<2x128xf32> to vector<1x2x128xf32>
    tpu.vector_store %arg18[%c0_50, %c0_51, %c0_52], %90 {strides = array<i32>} : memref<1x2x128xf32, #tpu.memory_space<vmem>>, vector<1x2x128xf32>,
    %91 = tpu.iota {dimensions = array<i32: 1>} : vector<2x128xi32>
    %cst_53 = arith.constant dense<0xFF800000> : vector<2xf32>
    %92 = vector.multi_reduction <maximumf>, %87, %cst_53 [1] : vector<2x128xf32> to vector<2xf32>
    %93 = vector.shape_cast %92 : vector<2xf32> to vector<2x1xf32>
    %94 = vector.broadcast %93 : vector<2x1xf32> to vector<2x128xf32>
    %95 = arith.cmpf oeq, %87, %94 : vector<2x128xf32>
    %c128_i32 = arith.constant 128 : i32
    %96 = vector.broadcast %c128_i32 : i32 to vector<2x128xi32>
    %97 = arith.select %95, %91, %96 : vector<2x128xi1>, vector<2x128xi32>
    %cst_54 = arith.constant dense<2147483647> : vector<2xi32>
    %98 = vector.multi_reduction <minsi>, %97, %cst_54 [1] : vector<2x128xi32> to vector<2xi32>
    %99 = vector.shape_cast %98 : vector<2xi32> to vector<2x1xi32>
    %100 = arith.index_cast %arg0 : i32 to index
    %101 = memref.load %arg1[%100] : memref<6xi32, #tpu.memory_space<smem>>
    %c0_i32_55 = arith.constant 0 : i32
    %102 = arith.cmpi sgt, %101, %c0_i32_55 : i32
    %c0_56 = arith.constant 0 : index
    %c0_57 = arith.constant 0 : index
    %c0_58 = arith.constant 0 : index
    %103 = vector.load %arg2[%c0_56, %c0_57, %c0_58] : memref<1x2x1xi32, #tpu.memory_space<vmem>>, vector<1x2x1xi32>
    %104 = vector.shape_cast %103 : vector<1x2x1xi32> to vector<2x1xi32>
    %105 = arith.select %102, %104, %99 : vector<2x1xi32>
    %c0_59 = arith.constant 0 : index
    %c0_60 = arith.constant 0 : index
    %106 = vector.load %arg21[%c0_59, %c0_60] : memref<2x1xi32, #tpu.memory_space<vmem>>, vector<2x1xi32>
    tpu.vector_store %arg21[%c0_59, %c0_60], %105 {strides = array<i32>} : memref<2x1xi32, #tpu.memory_space<vmem>>, vector<2x1xi32>,
    return
  }
  func.func @transform_0(%arg0: i32, %arg1: memref<6xi32, #tpu.memory_space<smem>>) -> (i32, i32, i32) {
    %c0_i32 = arith.constant 0 : i32
    %c0_i32_0 = arith.constant 0 : i32
    %c0_i32_1 = arith.constant 0 : i32
    return %arg0, %c0_i32, %c0_i32_0 : i32, i32, i32
  }
  func.func @transform_1(%arg0: i32, %arg1: memref<6xi32, #tpu.memory_space<smem>>) -> (i32, i32) {
    %c0_i32 = arith.constant 0 : i32
    %c0_i32_0 = arith.constant 0 : i32
    %c0_i32_1 = arith.constant 0 : i32
    return %c0_i32, %c0_i32_0 : i32, i32
  }
  func.func @transform_2(%arg0: i32, %arg1: memref<6xi32, #tpu.memory_space<smem>>) -> (i32, i32) {
    %c0_i32 = arith.constant 0 : i32
    %c0_i32_0 = arith.constant 0 : i32
    %c0_i32_1 = arith.constant 0 : i32
    return %c0_i32, %c0_i32_0 : i32, i32
  }
  func.func @transform_3(%arg0: i32, %arg1: memref<6xi32, #tpu.memory_space<smem>>) -> (i32, i32) {
    %c0_i32 = arith.constant 0 : i32
    %c0_i32_0 = arith.constant 0 : i32
    %c0_i32_1 = arith.constant 0 : i32
    return %c0_i32, %c0_i32_0 : i32, i32
  }
  func.func @transform_4(%arg0: i32, %arg1: memref<6xi32, #tpu.memory_space<smem>>) -> (i32, i32, i32) {
    %c0_i32 = arith.constant 0 : i32
    %c0_i32_0 = arith.constant 0 : i32
    %c0_i32_1 = arith.constant 0 : i32
    %c0_i32_2 = arith.constant 0 : i32
    return %c0_i32, %c0_i32_0, %c0_i32_1 : i32, i32, i32
  }
  func.func @transform_5(%arg0: i32, %arg1: memref<6xi32, #tpu.memory_space<smem>>) -> (i32, i32, i32) {
    %c0_i32 = arith.constant 0 : i32
    %c0_i32_0 = arith.constant 0 : i32
    %c0_i32_1 = arith.constant 0 : i32
    %c0_i32_2 = arith.constant 0 : i32
    return %c0_i32, %c0_i32_0, %c0_i32_1 : i32, i32, i32
  }
  func.func @transform_6(%arg0: i32, %arg1: memref<6xi32, #tpu.memory_space<smem>>) -> (i32, i32) {
    %c0_i32 = arith.constant 0 : i32
    %c0_i32_0 = arith.constant 0 : i32
    %c0_i32_1 = arith.constant 0 : i32
    return %c0_i32, %c0_i32_0 : i32, i32
  }
  func.func @transform_7(%arg0: i32, %arg1: memref<6xi32, #tpu.memory_space<smem>>) -> (i32, i32) {
    %c0_i32 = arith.constant 0 : i32
    %c0_i32_0 = arith.constant 0 : i32
    %c0_i32_1 = arith.constant 0 : i32
    return %c0_i32, %c0_i32_0 : i32, i32
  }
  func.func @transform_8(%arg0: i32, %arg1: memref<6xi32, #tpu.memory_space<smem>>) -> (i32, i32) {
    %c0_i32 = arith.constant 0 : i32
    %c0_i32_0 = arith.constant 0 : i32
    %c0_i32_1 = arith.constant 0 : i32
    return %c0_i32, %c0_i32_0 : i32, i32
  }
  func.func @transform_9(%arg0: i32, %arg1: memref<6xi32, #tpu.memory_space<smem>>) -> (i32, i32) {
    %c0_i32 = arith.constant 0 : i32
    %c0_i32_0 = arith.constant 0 : i32
    %c0_i32_1 = arith.constant 0 : i32
    return %c0_i32, %c0_i32_0 : i32, i32
  }
  func.func @transform_10(%arg0: i32, %arg1: memref<6xi32, #tpu.memory_space<smem>>) -> (i32, i32) {
    %c0_i32 = arith.constant 0 : i32
    %c0_i32_0 = arith.constant 0 : i32
    %c0_i32_1 = arith.constant 0 : i32
    return %c0_i32, %c0_i32_0 : i32, i32
  }
  func.func @transform_11(%arg0: i32, %arg1: memref<6xi32, #tpu.memory_space<smem>>) -> (i32, i32) {
    %c0_i32 = arith.constant 0 : i32
    %c0_i32_0 = arith.constant 0 : i32
    %c0_i32_1 = arith.constant 0 : i32
    return %c0_i32, %c0_i32_0 : i32, i32
  }
  func.func @transform_12(%arg0: i32, %arg1: memref<6xi32, #tpu.memory_space<smem>>) -> (i32, i32) {
    %c0_i32 = arith.constant 0 : i32
    %c0_i32_0 = arith.constant 0 : i32
    %c0_i32_1 = arith.constant 0 : i32
    return %c0_i32, %c0_i32_0 : i32, i32
  }
  func.func @transform_13(%arg0: i32, %arg1: memref<6xi32, #tpu.memory_space<smem>>) -> (i32, i32) {
    %c0_i32 = arith.constant 0 : i32
    %c0_i32_0 = arith.constant 0 : i32
    %c0_i32_1 = arith.constant 0 : i32
    return %c0_i32, %c0_i32_0 : i32, i32
  }
  func.func @transform_14(%arg0: i32, %arg1: memref<6xi32, #tpu.memory_space<smem>>) -> (i32, i32) {
    %c0_i32 = arith.constant 0 : i32
    %c0_i32_0 = arith.constant 0 : i32
    %c0_i32_1 = arith.constant 0 : i32
    return %c0_i32, %c0_i32_0 : i32, i32
  }
  func.func @transform_15(%arg0: i32, %arg1: memref<6xi32, #tpu.memory_space<smem>>) -> (i32, i32) {
    %c0_i32 = arith.constant 0 : i32
    %c0_i32_0 = arith.constant 0 : i32
    %c0_i32_1 = arith.constant 0 : i32
    return %c0_i32, %c0_i32_0 : i32, i32
  }
  func.func @transform_16(%arg0: i32, %arg1: memref<6xi32, #tpu.memory_space<smem>>) -> (i32, i32, i32) {
    %c0_i32 = arith.constant 0 : i32
    %c0_i32_0 = arith.constant 0 : i32
    %c0_i32_1 = arith.constant 0 : i32
    return %arg0, %c0_i32, %c0_i32_0 : i32, i32, i32
  }
}

</mosaic_0001>

<bundles_post_ra>
// kernel: _forward_impl.3
= control target key start
LH: loop header
LB: loop body
LE: loop exit
PB: predicated region body
PF: predicated region fallthrough
CT: control target
= control target key end

     0   :  { %s2027_s0 = inlined_call_operand.vmem [shape: s32[6], index: 0, kind: input, shape index: {}]   ;;  %s2028_s1 = inlined_call_operand.vmem [shape: s32[6,2,1], index: 1, kind: input, shape index: {}]   ;;  %s2029_s2 = inlined_call_operand.vmem [shape: f32[50,16], index: 2, kind: input, shape index: {}]   ;;  %s2030_s3 = inlined_call_operand.vmem [shape: f32[2,64], index: 3, kind: input, shape index: {}]   ;;  %s2031_s4 = inlined_call_operand.vmem [shape: f32[2,64], index: 4, kind: input, shape index: {}]   ;;  %s2032_s5 = inlined_call_operand.vmem [shape: f32[2,8,64], index: 5, kind: input, shape index: {}]   ;;  %s2033_s6 = inlined_call_operand.vmem [shape: f32[2,8,64], index: 6, kind: input, shape index: {}]   ;;  %s2034_s7 = inlined_call_operand.vmem [shape: f32[2,8], index: 7, kind: input, shape index: {}]   ;;  %s2035_s8 = inlined_call_operand.vmem [shape: f32[64,64], index: 8, kind: input, shape index: {}]   ;;  %s2036_s9 = inlined_call_operand.vmem [shape: f32[1,64], index: 9, kind: input, shape index: {}]   ;;  %s2037_s10 = inlined_call_operand.vmem [shape: f32[1,64], index: 10, kind: input, shape index: {}]   ;;  %s2038_s11 = inlined_call_operand.vmem [shape: f32[16,256], index: 11, kind: input, shape index: {}]   ;;  %s2039_s12 = inlined_call_operand.vmem [shape: f32[64,256], index: 12, kind: input, shape index: {}]   ;;  %s2040_s13 = inlined_call_operand.vmem [shape: f32[64,256], index: 13, kind: input, shape index: {}]   ;;  %s2041_s14 = inlined_call_operand.vmem [shape: f32[1,256], index: 14, kind: input, shape index: {}]   ;;  %s2042_s15 = inlined_call_operand.vmem [shape: f32[64,128], index: 15, kind: input, shape index: {}]   ;;  %s2043_s16 = inlined_call_operand.vmem [shape: f32[1,128], index: 16, kind: input, shape index: {}]   ;;  %s2044_s17 = inlined_call_operand.vmem [shape: f32[6,2,128], index: 17, kind: output, shape index: {}]  }
   0x1   :  { %2046 = sst [smem:[#allocation8_spill]] %s2027_s0 }
   0x2   :  { %2047 = sst [smem:[#allocation9_spill]] %s2028_s1  ;;  %s2049_s26 = sld [smem:[#allocation8_spill]] }
   0x3   :  { %2048 = sst [smem:[#allocation10_spill]] %s2032_s5 }
   0x8   :  { %s22_s5 = sshll.u32 %s2049_s26, 4  ;;  %s23_s5 = int_to_ptr.vmem [resolvable:$true] %s22_s5 }
   0x9   :  { %s1595_s27 = scalar_lea.vmem %s23_s5, 16  ;;  %p1600_p1 = scmp.lt.s32.totalorder %s23_s5, %s23_s5 }
   0xa   :  { %p1596_p0 = scmp.ne.s32.totalorder %s23_s5, %s1595_s27  ;;  %p1601_p2 = scmp.lt.s32.totalorder %s1595_s27, %s1595_s27 }
   0xc   :  { %p1602_p3 = por %p1601_p2, %p1600_p1 }
   0xe   :  { %p1603_p4 = pnand %p1602_p3, %p1596_p0 }
  0x10   :  { %1606 = shalt.err (!%p1603_p4)  }
  0x11   :  { %s1617_s28 = smov [#allocation6]  }
  0x12   :  { %25 = dma.vmem_to_smem %s23_s5, 16, %s1617_s28, [#allocation5] }
  0x13   :  { %1611 = dma.done.wait [#allocation5], 16 }
  0x14   :  { %1612 = vsyncadd [#allocation5], 4294967280 }
  0x15   :  { %27 = sfence }
  0x16   :  { %s1718_s29 = smov 0  }
  0x17 LB: > { %s1724_s0 = sadd.s32 4294967295, %s1615_s29   ;;  %p1382_p5 = scmp.ge.s32.totalorder %s1615_s29, 1  ;;  %s1615_s29 = sphi %s1718_s29, %s33_s29  }
  0x18   : > { %p468_p6 = scmp.lt.s32.totalorder %s1615_s29, 7 }
  0x1a   : > { %p469_p7 = pnand %p1382_p5, %p468_p6 }
  0x1b   : > { %p516_p8 = scmp.lt.s32.totalorder (!%p469_p7), %s1724_s0, 5  ;;  %s2050_s1 = sld [smem:[#allocation9_spill]] (!%p469_p7) }
  0x1c   : > { %472 = sbr.rel (%p469_p7) target bundleno = 2478 (0x9ae), region = 84  ;;  %p1385_p9 = scmp.ne.s32.totalorder (!%p469_p7), %s1724_s0, 0 }
  0x23   : > { %s517_s5 = scalar_select %p516_p8, %s1724_s0, 5 }
  0x24   : > { %527 = sbr.rel (%p1385_p9) target bundleno = 43 (0x2b), region = 88  ;;  %v528_v0 = vld [vmem:[%s2030_s3] sm:$0x3] (!%p1385_p9)  ;;  %vm529_vm0 = vcmask (!%p1385_p9), 517120   ;;  %vm533_vm1 = vcmask (!%p1385_p9), 1024   ;;  %v1618_v2 = vmov (!%p1385_p9), 1  }
  0x25   : > { %s1383_s30 = sshll.u32 %s517_s5, 1  ;;  %v531_v1 = vld [vmem:[%s2031_s4] sm:$0x3] (!%p1385_p9)  ;;  %530 = vst.msk [vmem:[#allocation2] sm:$0x3] (!%p1385_p9), %vm529_vm0, %v528_v0 }
  0x26   : > { %s1733_s20 = scalar_lea.vmem %s2050_s1, %s1383_s30  ;;  %s1738_s23 = scalar_lea.vmem %s2044_s17, %s1383_s30  ;;  %532 = vst.msk [vmem:[#allocation3] sm:$0x3] (!%p1385_p9), %vm529_vm0, %v531_v1 }
  0x27   : > { %534 = vst.msk [vmem:[#allocation4] sm:$0x3] (!%p1385_p9), %vm533_vm1, %v1618_v2 }
  0x2b PF: > { %v546_v4 = vld [vmem:[%s2029_s2] sm:$0xff]  ;;  %v547_v5 = vld [vmem:[%s2029_s2 + $0x8] sm:$0xff]  ;;  %v1619_v6 = vmov 0   ;;  %v1620_v7 = vmov 0.0|0.0   ;;  %v548_v9 = vld [vmem:[%s2029_s2 + $0x10] sm:$0xff]  ;;  %vm1621_vm2 = vmmov 0   ;;  %v538_v17 = vlaneseq }
  0x2c   : > { %1571 = vset.pattern.permute.xlu0 %v1619_v6  ;;  %1482 = vmatprep.subr.bf16.mxu1 %v1620_v7  ;;  %v1483_v8 = vpack.c.bf16 %v547_v5, %v546_v4  ;;  %v549_v10 = vld [vmem:[%s2029_s2 + $0x18] sm:$0xff]  ;;  %v1622_v12 = vmov 0.0   ;;  %v550_v13 = vld [vmem:[%s2029_s2 + $0x20] sm:$0xff]  ;;  %v551_v14 = vld [vmem:[%s2029_s2 + $0x28] sm:$0xff]  ;;  %vm557_vm3 = vcmask 1041408   ;;  %vm553_vm4 = vcmask 408576  }
  0x2d   : > { %1572 = vset.pattern.permute.xlu1 %v1619_v6  ;;  %v1486_v11 = vpack.c.bf16 %v549_v10, %v548_v9  ;;  %1441 = vmatprep.mubr.msk.f32.mxu1 %vm1621_vm2, %v1622_v12  ;;  %v1489_v15 = vpack.c.bf16 %v551_v14, %v550_v13  ;;  %v552_v16 = vld [vmem:[%s2029_s2 + $0x30] sm:$0x3]  ;;  %v1777_v18 = vand.u32 127, %v538_v17  ;;  %v631_v19 = vld [vmem:[%s2035_s8] sm:$0xff]  ;;  %v632_v20 = vld [vmem:[%s2035_s8 + $0x8] sm:$0xff]  ;;  %vm646_vm6 = vcmask 523264  }
  0x2e   : > { %v537_v3 = vld [vmem:[#allocation4] sm:$0x3]  ;;  %1484 = vmatpush3.bf16.msra.mxu1 %v1483_v8  ;;  %986 = vmatprep.mubr.f32.mxu0 %v1622_v12  ;;  %v1492_v22 = vpack.c.bf16 %v632_v20, %v631_v19  ;;  %v633_v23 = vld [vmem:[%s2035_s8 + $0x10] sm:$0xff]  ;;  %v634_v24 = vld [vmem:[%s2035_s8 + $0x18] sm:$0xff]  ;;  %v727_v34 = vshrl.u32 %v538_v17, 7  ;;  %vm810_vm7 = vcmask 1041409  }
  0x2f   : > { %541 = vperm.xlu0 %1571, %v537_v3   ;;  %1485 = vmatprep.subr.bf16.mxu1 %v1620_v7  ;;  %v1495_v26 = vpack.c.bf16 %v634_v24, %v633_v23  ;;  %v635_v27 = vld [vmem:[%s2035_s8 + $0x20] sm:$0xff]  ;;  %v636_v28 = vld [vmem:[%s2035_s8 + $0x28] sm:$0xff]  ;;  %v637_v30 = vld [vmem:[%s2035_s8 + $0x30] sm:$0xff]  ;;  %v1623_v40 = vmov 1966171168   ;;  %vm813_vm8 = vcmask 58368  }
  0x30   : > { %v1498_v29 = vpack.c.bf16 %v636_v28, %v635_v27  ;;  %v638_v31 = vld [vmem:[%s2035_s8 + $0x38] sm:$0xff]  ;;  %v1810_v33 = vld [vmem:[#allocation2] sm:$0x3]  ;;  %v1817_v35 = vsub.s32 0, %v727_v34  ;;  %v724_v41 = vunpack.c.l.s4 %v1623_v40  ;;  %v721_v54 = vld [vmem:[%s2033_s6 + $0x8] sm:$0xff]  ;;  %v1841_v1 = vsub.s32 1, %v727_v34 }
  0x31   : > { %v1501_v32 = vpack.c.bf16 %v638_v31, %v637_v30  ;;  %v774_v36 = vld [vmem:[%s2034_s7] sm:$0x3]  ;;  %s1624_s19 = smov 64   ;;  %s2051_s22 = sld [smem:[#allocation10_spill]]  ;;  %vm993_vm9 = vcmask 130048   ;;  %vm1201_vm10 = vcmask 517120  }
  0x32   : > { %1487 = vmatpush3.bf16.msra.mxu1 %v1486_v11  ;;  %v779_v37 = vrot.slane %v774_v36, %v1817_v35  ;;  %v725_v42 = vunpack.c.0.s8 %v724_v41  ;;  %v1389_v43 = vld [vmem:[%s2036_s9] ss:$0 sm:$0xff]  ;;  %v786_v2 = vrot.slane %v774_v36, %v1841_v1  ;;  %v804_v11 = vsub.s32 %v1777_v18, %v727_v34 }
  0x33   : > { %1488 = vmatprep.subr.bf16.mxu1 %v1620_v7  ;;  %v720_v51 = vld [vmem:[%s2033_s6] sm:$0xff]  ;;  %vm1323_vm14 = vcmask 1024  }
  0x34   : > { %781 = vbcast.lane.b32.xlu1 %v779_v37, 256  ;;  %v728_v44 = vsub.s32 %v725_v42, %v727_v34  ;;  %v1391_v58 = vld [vmem:[%s2037_s10] ss:$0 sm:$0xff] }
  0x36   : > { %1490 = vmatpush3.bf16.msra.mxu1 %v1489_v15 }
  0x37   : > { %1439 = vmatprep.subr.mxu1 %v1622_v12 }
  0x3a   : > { %1440 = vmatpush3.msk.msra.mxu1 %vm557_vm3, %v552_v16 }
  0x3b   : > { %1491 = vmatprep.subr.bf16.mxu1 %v1620_v7 }
  0xa6   : > { %v782_v3 = vpop.permute.xlu1 %781 }
  0xae   : > { %v542_v21 = vpop.permute.xlu0 %541 }
  0xaf   : > { %vm543_vm5 = vcmp.eq.s32.totalorder %v1777_v18, %v542_v21 }
  0xb0   : > { %v1386_v25 = vsel %vm543_vm5, 1.0, %v1622_v12 }
  0xb1   : > { %1442 = vmatmul.mubr.msk.f32.vlgmr.msra.gmra.mrb[0].mxu1 %vm553_vm4, %v1386_v25 }
  0xb2   : > { %1493 = vmatpush3.bf16.msra.mxu1 %v1492_v22  ;;  %1460 = vmatprep.mubr.msk.f32.mxu1 %vm1621_vm2, %v1622_v12 }
  0xb3   : > { %1494 = vmatprep.subr.bf16.mxu1 %v1620_v7 }
  0xb6   : > { %1496 = vmatpush3.bf16.msra.mxu1 %v1495_v26 }
  0xb7   : > { %1497 = vmatprep.subr.bf16.mxu1 %v1620_v7 }
  0xba   : > { %1499 = vmatpush3.bf16.msra.mxu1 %v1498_v29 }
  0xbb   : > { %1500 = vmatprep.subr.bf16.mxu1 %v1620_v7 }
  0xbe   : > { %1502 = vmatpush3.bf16.msra.mxu1 %v1501_v32 }
  0xbf   : > { %1539 = vmatprep.subr.bf16.mxu1 %v1620_v7 }
  0xc1   : > { %1461 = vmatmul.mubr.msk.f32.vlgmr.msra.gmra.mrb[2].mxu1 %vm646_vm6, %v1810_v33 }
  0xc2   : > { %1479 = vmatprep.mubr.msk.f32.mxu1 %vm1621_vm2, %v1622_v12 }
 0x184   : > { %v1823_v38 = vpop.f32.mrb[0].mxu1 }
 0x185   : > { %v1443_v39 = vpop.f32.mrb[1].mxu1 }
 0x194   : > { %v716_v45 = vpop.f32.mrb[2].mxu1 }
 0x195   : > { %v717_v46 = vadd.f32 %v1389_v43, %v716_v45  ;;  %v1462_v47 = vpop.f32.mrb[3].mxu1  ;;  %v902_v43 = vld [vmem:[%s2039_s12 + $0x8] sm:$0xff] }
 0x196   : > { %v903_v47 = vld [vmem:[%s2039_s12 + $0x10] sm:$0xff] }
 0x197   : > { %v729_v48 = vrot.slane %v717_v46, %v728_v44  ;;  %v901_v46 = vld [vmem:[%s2039_s12] sm:$0xff] }
 0x199   : > { %v730_v49 = vcombine.high %v729_v48, %v729_v48  ;;  %v737_v50 = vrot.slane %v729_v48, %v728_v44  ;;  %v1505_v48 = vpack.c.bf16 %v903_v47, %v901_v46  ;;  %v1072_v47 = vld [vmem:[%s2040_s13 + $0x20] sm:$0xff] }
 0x19b   : > { %v744_v52 = vrot.slane %v730_v49, %v728_v44  ;;  %v748_v53 = vrot.slane %v737_v50, %v1817_v35  ;;  %v904_v44 = vld [vmem:[%s2039_s12 + $0x18] sm:$0xff]  ;;  %v906_v49 = vld [vmem:[%s2039_s12 + $0x28] sm:$0xff] }
 0x19c   : > { %v1503_v45 = vpack.c.bf16 %v904_v44, %v902_v43  ;;  %v908_v50 = vld [vmem:[%s2039_s12 + $0x38] sm:$0xff]  ;;  %v1073_v43 = vld [vmem:[%s2040_s13 + $0x28] sm:$0xff] }
 0x19d   : > { %v752_v55 = vrot.slane %v744_v52, %v1817_v35  ;;  %v755_v56 = vadd.f32 %v748_v53, %v720_v51  ;;  %v1507_v51 = vpack.c.bf16 %v908_v50, %v906_v49  ;;  %v905_v52 = vld [vmem:[%s2039_s12 + $0x20] sm:$0xff]  ;;  %v907_v53 = vld [vmem:[%s2039_s12 + $0x30] sm:$0xff]  ;;  %v1075_v44 = vld [vmem:[%s2040_s13 + $0x38] sm:$0xff] }
 0x19e   : > { %1504 = vmatprep.subr.bf16.mxu0 %v1503_v45  ;;  %v1527_v46 = vpack.c.bf16 %v1075_v44, %v1073_v43  ;;  %v1077_v49 = vld [vmem:[%s2040_s13 + $0x48] sm:$0xff]  ;;  %v1079_v50 = vld [vmem:[%s2040_s13 + $0x58] sm:$0xff] }
 0x19f   : > { %v756_v57 = vadd.f32 %v752_v55, %v721_v54  ;;  %1573 = vtanh.f32 %v755_v56  ;;  %1506 = vmatpush1.bf16.msra.mxu0 %v1505_v48  ;;  %v1509_v54 = vpack.c.bf16 %v907_v53, %v905_v52  ;;  %v910_v55 = vld [vmem:[%s2039_s12 + $0x48] sm:$0xff]  ;;  %v912_v56 = vld [vmem:[%s2039_s12 + $0x58] sm:$0xff]  ;;  %v1074_v48 = vld [vmem:[%s2040_s13 + $0x30] sm:$0xff]  ;;  %v1531_v52 = vpack.c.bf16 %v1079_v50, %v1077_v49 }
 0x1a0   : > { %1508 = vmatprep.subr.bf16.mxu0 %v1507_v51  ;;  %v1529_v51 = vpack.c.bf16 %v1074_v48, %v1072_v47  ;;  %v1076_v53 = vld [vmem:[%s2040_s13 + $0x40] sm:$0xff] }
 0x1a1   : > { %1575 = vtanh.f32 %v756_v57  ;;  %v1511_v57 = vpack.c.bf16 %v912_v56, %v910_v55  ;;  %v1081_v55 = vld [vmem:[%s2040_s13 + $0x68] sm:$0xff] }
 0x1a3   : > { %1510 = vmatpush1.bf16.msra.mxu0 %v1509_v54  ;;  %v1078_v54 = vld [vmem:[%s2040_s13 + $0x50] sm:$0xff] }
 0x1a4   : > { %1512 = vmatprep.subr.bf16.mxu0 %v1511_v57  ;;  %v1080_v57 = vld [vmem:[%s2040_s13 + $0x60] sm:$0xff] }
 0x1a9   : > { %v1574_v59 = vpop.eup %1573 }
 0x1aa   : > { %v766_v60 = vmul.f32 %v1574_v59, %v1391_v58  ;;  %v911_v59 = vld [vmem:[%s2039_s12 + $0x50] sm:$0xff] }
 0x1ab   : > { %v1576_v61 = vpop.eup %1575 }
 0x1ac   : > { %v768_v62 = vsel %vm646_vm6, %v766_v60, 0.0  ;;  %v767_v63 = vmul.f32 %v1576_v61, %v1391_v58  ;;  %v909_v58 = vld [vmem:[%s2039_s12 + $0x40] sm:$0xff]  ;;  %v914_v61 = vld [vmem:[%s2039_s12 + $0x68] sm:$0xff] }
 0x1ad   : > { %769 = vadd.xlane.f32.xlu0 %v768_v62  ;;  %v1513_v60 = vpack.c.bf16 %v911_v59, %v909_v58  ;;  %v916_v62 = vld [vmem:[%s2039_s12 + $0x78] sm:$0xff]  ;;  %v1082_v58 = vld [vmem:[%s2040_s13 + $0x70] sm:$0xff] }
 0x1ae   : > { %v771_v0 = vsel %vm646_vm6, %v767_v63, 0.0  ;;  %v1515_v63 = vpack.c.bf16 %v916_v62, %v914_v61  ;;  %v1537_v59 = vpack.c.bf16 %v1082_v58, %v1080_v57 }
 0x1af   : > { %772 = vadd.xlane.f32.xlu1 %v771_v0  ;;  %1514 = vmatpush1.bf16.msra.mxu0 %v1513_v60  ;;  %v913_v0 = vld [vmem:[%s2039_s12 + $0x60] sm:$0xff] }
 0x1b0   : > { %1516 = vmatprep.subr.bf16.mxu0 %v1515_v63  ;;  %v1157_v60 = vld [vmem:[%s2041_s14] sm:$0x3] }
 0x1b1   : > { %v1162_v61 = vrot.slane %v1157_v60, %v1817_v35 }
 0x1c0   : > { %788 = vbcast.lane.b32.xlu1 %v786_v2, 256  ;;  %v915_v2 = vld [vmem:[%s2039_s12 + $0x70] sm:$0xff] }
 0x23a   : > { %v770_v4 = vpop.xlane.xlu0 %769 }
 0x23b   : > { %v792_v5 = vadd.f32 %v782_v3, %v770_v4  ;;  %v1517_v3 = vpack.c.bf16 %v915_v2, %v913_v0  ;;  %v898_v4 = vld [vmem:[%s2038_s11 + $0x8] sm:$0xff] }
 0x23c   : > { %v773_v6 = vpop.xlane.xlu1 %772 }
 0x23d   : > { %797 = vperm.xlu1 %1572, %v792_v5   ;;  %1518 = vmatpush1.bf16.msra.mxu0 %v1517_v3  ;;  %v1166_v3 = vrot.slane %v1157_v60, %v1841_v1 }
 0x240   : > { %v789_v8 = vpop.permute.xlu1 %788 }
 0x241   : > { %v793_v9 = vadd.f32 %v789_v8, %v773_v6  ;;  %v536_v8 = vld [vmem:[#allocation3] sm:$0x3] }
 0x243   : > { %800 = vperm.xlu1 %1572, %v793_v9  }
 0x2bc   : > { %v798_v10 = vpop.permute.xlu1 %797 }
 0x2bd   : > { %v805_v14 = vrot.slane %v798_v10, %v804_v11 }
 0x2c2   : > { %v801_v13 = vpop.permute.xlu1 %800 }
 0x2c3   : > { %v809_v15 = vrot.slane %v801_v13, %v804_v11  ;;  %v870_v13 = vld [vmem:[%s2051_s22 + $0x8] sm:$0xff] }
 0x2c5   : > { %v811_v16 = vsel %vm810_vm7, %v809_v15, %v805_v14 }
 0x2c6   : > { %v814_v17 = vsel %vm813_vm8, %v811_v16, -inf }
 0x2c7   : > { %815 = vmax.xlane.f32.xlu1 %v814_v17 }
 0x354   : > { %v816_v19 = vpop.xlane.xlu1 %815 }
 0x355   : > { %v821_v20 = vrot.slane %v816_v19, %v1817_v35  ;;  %v825_v21 = vrot.slane %v816_v19, %v1841_v1 }
 0x357   : > { %v828_v22 = vsub.f32 %v792_v5, %v821_v20  ;;  %v829_v23 = vsub.f32 %v793_v9, %v825_v21  ;;  %v900_v5 = vld [vmem:[%s2038_s11 + $0x18] sm:$0xff]  ;;  %v869_v9 = vld [vmem:[%s2051_s22] sm:$0xff] }
 0x358   : > { %v1519_v6 = vpack.c.bf16 %v900_v5, %v898_v4 }
 0x359   : > { %v830_v24 = vmul.f32 1.442695, %v828_v22  ;;  %v832_v25 = vmul.f32 1.442695, %v829_v23 }
 0x35a   : > { %1520 = vmatprep.subr.bf16.mxu0 %v1519_v6 }
 0x35b   : > { %1577 = vpow2.f32 %v830_v24 }
 0x35c   : > { %1579 = vpow2.f32 %v832_v25 }
 0x365   : > { %v1578_v26 = vpop.eup %1577 }
 0x366   : > { %837 = vperm.xlu0 %1571, %v1578_v26   ;;  %v1580_v27 = vpop.eup %1579 }
 0x36a   : > { %840 = vperm.xlu0 %1571, %v1580_v27  }
 0x3e5   : > { %v838_v28 = vpop.permute.xlu0 %837 }
 0x3e6   : > { %v845_v30 = vrot.slane %v838_v28, %v804_v11  ;;  %v897_v28 = vld [vmem:[%s2038_s11] sm:$0xff] }
 0x3e9   : > { %v841_v29 = vpop.permute.xlu0 %840 }
 0x3ea   : > { %v849_v31 = vrot.slane %v841_v29, %v804_v11  ;;  %v899_v29 = vld [vmem:[%s2038_s11 + $0x10] sm:$0xff] }
 0x3ec   : > { %v850_v32 = vsel %vm810_vm7, %v849_v31, %v845_v30  ;;  %v1069_v31 = vld [vmem:[%s2040_s13 + $0x8] sm:$0xff] }
 0x3ed   : > { %v852_v34 = vsel %vm813_vm8, %v850_v32, 0.0  ;;  %v1071_v32 = vld [vmem:[%s2040_s13 + $0x18] sm:$0xff] }
 0x3ee   : > { %853 = vadd.xlane.f32.xlu0 %v852_v34 }
 0x47b   : > { %v854_v36 = vpop.xlane.xlu0 %853 }
 0x47c   : > { %1581 = vrcp.f32 %v854_v36 }
 0x486   : > { %v1582_v37 = vpop.eup %1581 }
 0x487   : > { %v860_v39 = vrot.slane %v1582_v37, %v1817_v35  ;;  %v864_v41 = vrot.slane %v1582_v37, %v1841_v1  ;;  %v1521_v37 = vpack.c.bf16 %v899_v29, %v897_v28  ;;  %v1208_v35 = vld [vmem:[%s2042_s15] sm:$0xff]  ;;  %v1210_v1 = vld [vmem:[%s2042_s15 + $0x10] sm:$0xff] }
 0x489   : > { %v867_v40 = vmul.f32 %v1578_v26, %v860_v39  ;;  %v868_v42 = vmul.f32 %v1580_v27, %v864_v41  ;;  %v1523_v39 = vpack.c.bf16 %v1071_v32, %v1069_v31  ;;  %v1068_v41 = vld [vmem:[%s2040_s13] sm:$0xff] }
 0x48b   : > { %873 = vperm.xlu1 %1572, %v867_v40  }
 0x48f   : > { %878 = vperm.xlu1 %1572, %v868_v42   ;;  %v1070_v42 = vld [vmem:[%s2040_s13 + $0x10] sm:$0xff] }
 0x490   : > { %v1525_v45 = vpack.c.bf16 %v1070_v42, %v1068_v41 }
 0x493   : > { %1185 = vrot.lane.b32.xlu1 %v536_v8, %s1624_s19 }
 0x50a   : > { %v874_v10 = vpop.permute.xlu1 %873 }
 0x50b   : > { %v881_v11 = vmul.f32 %v874_v10, %v869_v9  ;;  %v1209_v10 = vld [vmem:[%s2042_s15 + $0x8] sm:$0xff] }
 0x50d   : > { %v883_v14 = vsel %vm646_vm6, %v881_v11, 0.0  ;;  %v1540_v11 = vpack.c.bf16 %v1209_v10, %v1208_v35 }
 0x50e   : > { %v884_v15 = vrot.slane %v883_v14, 4  ;;  %v879_v16 = vpop.permute.xlu1 %878 }
 0x50f   : > { %v882_v17 = vmul.f32 %v879_v16, %v870_v13  ;;  %v1211_v13 = vld [vmem:[%s2042_s15 + $0x18] sm:$0xff]  ;;  %1541 = vmatpush3.bf16.msra.mxu1 %v1540_v11  ;;  %v1213_v16 = vld [vmem:[%s2042_s15 + $0x28] sm:$0xff] }
 0x510   : > { %v885_v19 = vadd.f32 %v884_v15, %v883_v14  ;;  %v1543_v14 = vpack.c.bf16 %v1211_v13, %v1210_v1  ;;  %1542 = vmatprep.subr.bf16.mxu1 %v1620_v7  ;;  %v1212_v15 = vld [vmem:[%s2042_s15 + $0x20] sm:$0xff] }
 0x511   : > { %v890_v20 = vsel %vm646_vm6, %v882_v17, 0.0  ;;  %v1546_v17 = vpack.c.bf16 %v1213_v16, %v1212_v15 }
 0x512   : > { %v886_v21 = vrot.slane %v885_v19, 2  ;;  %v891_v22 = vrot.slane %v890_v20, 4 }
 0x513   : > { %1544 = vmatpush3.bf16.msra.mxu1 %v1543_v14 }
 0x514   : > { %v887_v23 = vadd.f32 %v886_v21, %v885_v19  ;;  %v892_v24 = vadd.f32 %v891_v22, %v890_v20  ;;  %1545 = vmatprep.subr.bf16.mxu1 %v1620_v7  ;;  %v1214_v19 = vld [vmem:[%s2042_s15 + $0x30] sm:$0xff]  ;;  %v1215_v20 = vld [vmem:[%s2042_s15 + $0x38] sm:$0xff] }
 0x515   : > { %v1549_v21 = vpack.c.bf16 %v1215_v20, %v1214_v19 }
 0x516   : > { %v893_v25 = vrot.slane %v892_v24, 2  ;;  %v888_v26 = vrot.slane %v887_v23, 1 }
 0x517   : > { %1547 = vmatpush3.bf16.msra.mxu1 %v1546_v17 }
 0x518   : > { %v894_v27 = vadd.f32 %v893_v25, %v892_v24  ;;  %v889_v34 = vadd.f32 %v888_v26, %v887_v23  ;;  %1548 = vmatprep.subr.bf16.mxu1 %v1620_v7  ;;  %v1186_v24 = vpop.permute.xlu1 %1185  ;;  %v1397_v7 = vld [vmem:[%s2043_s16] ss:$0 sm:$0xff] }
 0x51a   : > { %v895_v30 = vrot.slane %v894_v27, 1 }
 0x51b   : > { %1550 = vmatpush3.bf16.msra.mxu1 %v1549_v21 }
 0x51c   : > { %v896_v36 = vadd.f32 %v895_v30, %v894_v27 }
 0x51e   : > { %v919_v40 = vsel %vm810_vm7, %v896_v36, %v889_v34 }
 0x51f   : > { %1392 = vmatmul.mubr.msk.f32.vlgmr.msra.gmra.mrb[0].mxu0 %vm646_vm6, %v919_v40 }
 0x520   : > { %1522 = vmatpush1.bf16.msra.mxu0 %v1521_v37  ;;  %1061 = vmatprep.mubr.f32.mxu0 %v1622_v12 }
 0x521   : > { %1524 = vmatprep.subr.bf16.mxu0 %v1523_v39 }
 0x527   : > { %1393 = vmatmul.mubr.msk.f32.vlgmr.msra.gmra.mrb[0].mxu0 %vm993_vm9, %v1823_v38  ;;  %v1083_v38 = vld [vmem:[%s2040_s13 + $0x78] sm:$0xff] }
 0x528   : > { %1526 = vmatpush1.bf16.msra.mxu0 %v1525_v45  ;;  %1148 = vmatprep.mubr.f32.mxu0 %v1622_v12  ;;  %v1533_v12 = vpack.c.bf16 %v1078_v54, %v1076_v53  ;;  %v1535_v56 = vpack.c.bf16 %v1083_v38, %v1081_v55  ;;  %v1318_v53 = vld [vmem:[%s1733_s20] sm:$0x3] }
 0x529   : > { %1528 = vmatprep.subr.bf16.mxu0 %v1527_v46 }
 0x52c   : > { %1530 = vmatpush1.bf16.msra.mxu0 %v1529_v51 }
 0x52d   : > { %1532 = vmatprep.subr.bf16.mxu0 %v1531_v52 }
 0x530   : > { %1534 = vmatpush1.bf16.msra.mxu0 %v1533_v12 }
 0x531   : > { %1536 = vmatprep.subr.bf16.mxu0 %v1535_v56 }
 0x534   : > { %1538 = vmatpush1.bf16.msra.mxu0 %v1537_v59 }
 0x537   : > { %1394 = vmatmul.mubr.msk.f32.vlgmr.msra.gmra.mrb[0].mxu0 %vm646_vm6, %v1810_v33 }
 0x60a   : > { %v1150_v62 = vpop.f32.mrb[0].mxu0 }
 0x60b   : > { %v1169_v63 = vadd.f32 %v1162_v61, %v1150_v62  ;;  %v1152_v0 = vpop.f32.mrb[1].mxu0 }
 0x60c   : > { %v1170_v4 = vadd.f32 %v1166_v3, %v1152_v0 }
 0x60d   : > { %v1395_v2 = vmul.f32 -1.442695, %v1169_v63 }
 0x60e   : > { %v1396_v22 = vmul.f32 -1.442695, %v1170_v4 }
 0x60f   : > { %1583 = vpow2.f32 %v1395_v2 }
 0x610   : > { %1585 = vtanh.f32 %v1170_v4 }
 0x619   : > { %v1584_v5 = vpop.eup %1583 }
 0x61a   : > { %v1174_v6 = vadd.f32 1.0, %v1584_v5  ;;  %v1586_v8 = vpop.eup %1585 }
 0x61c   : > { %1587 = vrcp.f32 %v1174_v6 }
 0x61d   : > { %1589 = vpow2.f32 %v1396_v22 }
 0x626   : > { %v1588_v33 = vpop.eup %1587 }
 0x627   : > { %v1189_v9 = vmul.f32 %v1588_v33, %v1586_v8  ;;  %v1590_v23 = vpop.eup %1589  ;;  %v1188_v26 = vmul.f32 %v1588_v33, %v1186_v24 }
 0x628   : > { %v1181_v25 = vadd.f32 1.0, %v1590_v23 }
 0x629   : > { %1191 = vrot.lane.b32.xlu0 %v1189_v9, %s1624_s19 }
 0x62a   : > { %1591 = vrcp.f32 %v1181_v25 }
 0x634   : > { %v1592_v29 = vpop.eup %1591 }
 0x69b   : > { %v1192_v27 = vpop.permute.xlu0 %1191 }
 0x69c   : > { %v1194_v28 = vadd.f32 %v1192_v27, %v1188_v26 }
 0x69e   : > { %1593 = vtanh.f32 %v1194_v28 }
 0x6a8   : > { %v1594_v30 = vpop.eup %1593 }
 0x6a9   : > { %v1196_v31 = vmul.f32 %v1594_v30, %v1592_v29 }
 0x6ab   : > { %1198 = vrot.lane.b32.xlu1 %v1196_v31, %s1624_s19 }
 0x71d   : > { %v1199_v32 = vpop.permute.xlu1 %1198 }
 0x71e   : > { %1202 = vst.msk [vmem:[#allocation2] sm:$0x3] %vm1201_vm10, %v1199_v32  ;;  %1480 = vmatmul.mubr.msk.f32.vlgmr.msra.gmra.mrb[4].mxu1 %vm646_vm6, %v1199_v32 }
 0x7f1   : > { %v1291_v34 = vpop.f32.mrb[4].mxu1 }
 0x7f2   : > { %v1292_v36 = vadd.f32 %v1397_v7, %v1291_v34  ;;  %v1481_v37 = vpop.f32.mrb[5].mxu1 }
 0x7f4   : > { %1295 = vst [vmem:[%s1738_s23] sm:$0x3] %v1292_v36  ;;  %v1296_v39 = vsel %vm557_vm3, %v1292_v36, -inf  ;;  %s1316_s23 = sld [smem:[#allocation6 + %s1724_s0]] }
 0x7f5   : > { %1297 = vmax.xlane.f32.xlu1 %v1296_v39 }
 0x7fa   : > { %p1317_p10 = scmp.gt.s32.totalorder %s1316_s23, 0 }
 0x7fc   : > { %s1319_s1 = scalar_select %p1317_p10, 1, 0 }
 0x7fe   : > { %v1320_v50 = vstv %s1319_s1 }
 0x7ff   : > { %vm1321_vm13 = vcmp.eq.s32.totalorder %v1320_v50, 1 }
 0x882   : > { %v1298_v40 = vpop.xlane.xlu1 %1297 }
 0x883   : > { %vm1299_vm11 = vcmp.eq.f32.partialorder %v1292_v36, %v1298_v40 }
 0x884   : > { %v1300_v41 = vsel %vm1299_vm11, %v1777_v18, 128 }
 0x885   : > { %v1301_v42 = vsel %vm557_vm3, %v1300_v41, 2147483647 }
 0x886   : > { %v1303_v43 = vshra.s32 %v1301_v42, 16  ;;  %v1302_v45 = vand.u32 65535, %v1301_v42 }
 0x888   : > { %v1305_v44 = vcvt.s32.f32 %v1303_v43  ;;  %v1304_v47 = vcvt.s32.f32 %v1302_v45 }
 0x88a   : > { %1306 = vmin.xlane.f32.xlu0 %v1305_v44 }
 0x917   : > { %v1307_v46 = vpop.xlane.xlu0 %1306 }
 0x918   : > { %vm1308_vm12 = vcmp.eq.f32.partialorder %v1305_v44, %v1307_v46  ;;  %v1313_v49 = vcvt.f32.s32 %v1307_v46 }
 0x919   : > { %v1309_v48 = vsel %vm1308_vm12, %v1304_v47, inf }
 0x91a   : > { %1310 = vmin.xlane.f32.xlu1 %v1309_v48  ;;  %v1314_v51 = vshll.u32 %v1313_v49, 16 }
 0x92b   : > { %1204 = vrot.lane.b32.xlu1 %v1194_v28, %s1624_s19 }
 0x9a7   : > { %v1311_v18 = vpop.xlane.xlu1 %1310 }
 0x9a8   : > { %v1312_v52 = vcvt.f32.s32 %v1311_v18 }
 0x9aa   : > { %v1315_v54 = vadd.s32 %v1314_v51, %v1312_v52 }
 0x9ab   : > { %v1205_v55 = vpop.permute.xlu1 %1204 }
 0x9ac   : > { %v1322_v38 = vsel %vm1321_vm13, %v1318_v53, %v1315_v54  ;;  %1207 = vst.msk [vmem:[#allocation3] sm:$0x3] %vm1201_vm10, %v1205_v55 }
 0x9ad   : > { %1324 = vst.msk [vmem:[#allocation4] sm:$0x3] %vm1323_vm14, %v1322_v38 }
 0x9ae PF: > { %s33_s29 = sadd.s32 1, %s1615_s29  }
 0x9af   : > { %p30_p11 = scmp.ge.s32.totalorder %s33_s29, 8  }
 0x9b1   :  { %32 = sbr.rel (!%p30_p11) target bundleno = 23 (0x17), region = 118 }

// kernel: _forward_impl.2
= control target key start
LH: loop header
LB: loop body
LE: loop exit
PB: predicated region body
PF: predicated region fallthrough
CT: control target
= control target key end

     0   :  { %v6383_v0 = vmov 0.0|0.0   ;;  %vm6384_vm0 = vmmov 0   ;;  %v6385_v4 = vmov 0.0   ;;  %vm136_vm1 = vcmask 130048   ;;  %s6387_s13 = smov 64   ;;  %s6388_s16 = smov 32   ;;  %s7820_s3 = inlined_call_operand.vmem [shape: f32[32,128], index: 3, kind: input, shape index: {}]   ;;  %s7821_s2 = inlined_call_operand.vmem [shape: f32[16,128], index: 2, kind: input, shape index: {}]   ;;  %s7822_s6 = inlined_call_operand.vmem [shape: f32[32,128], index: 6, kind: input, shape index: {}]   ;;  %s7823_s0 = inlined_call_operand.vmem [shape: f32[8,2,16], index: 0, kind: input, shape index: {}]   ;;  %s7824_s5 = inlined_call_operand.vmem [shape: f32[16,128], index: 5, kind: input, shape index: {}]   ;;  %s7825_s7 = inlined_call_operand.vmem [shape: f32[1,128], index: 7, kind: input, shape index: {}]   ;;  %s7826_s4 = inlined_call_operand.vmem [shape: f32[1,128], index: 4, kind: input, shape index: {}]   ;;  %s7827_s1 = inlined_call_operand.vmem [shape: f32[8,2,1], index: 1, kind: input, shape index: {}]   ;;  %s7828_s8 = inlined_call_operand.vmem [shape: f32[64,64], index: 8, kind: input, shape index: {}]   ;;  %s7829_s9 = inlined_call_operand.vmem [shape: f32[2,8,64], index: 9, kind: output, shape index: {0}]   ;;  %s7830_s11 = inlined_call_operand.vmem [shape: f32[2,64], index: 11, kind: output, shape index: {2}]   ;;  %s7831_s12 = inlined_call_operand.vmem [shape: f32[2,64], index: 12, kind: output, shape index: {3}]   ;;  %s7832_s10 = inlined_call_operand.vmem [shape: f32[2,8,64], index: 10, kind: output, shape index: {1}]  }
   0x1   :  { %5990 = vmatprep.subr.bf16.mxu1 %v6383_v0  ;;  %v38_v1 = vld [vmem:[%s7820_s3] sm:$0xff]  ;;  %v39_v2 = vld [vmem:[%s7820_s3 + $0x8] sm:$0xff]  ;;  %v40_v3 = vld [vmem:[%s7820_s3 + $0x10] sm:$0xff]  ;;  %5534 = vmatprep.mubr.msk.f32.mxu1 %vm6384_vm0, %v6385_v4  ;;  %v6386_v22 = vmov 0   ;;  %vm62_vm2 = vcmask 261120   ;;  %vm488_vm3 = vcmask 253952  }
   0x2   :  { %v6468_v5 = vpack.c.bf16 %v39_v2, %v38_v1  ;;  %v41_v6 = vld [vmem:[%s7820_s3 + $0x18] sm:$0xff]  ;;  %v36_v7 = vld [vmem:[%s7821_s2] sm:$0xff]  ;;  %v37_v8 = vld [vmem:[%s7821_s2 + $0x8] sm:$0xff]  ;;  %6020 = vmatprep.subr.bf16.mxu0 %v6383_v0  ;;  %5588 = vmatprep.mubr.msk.f32.mxu0 %vm6384_vm0, %v6385_v4  ;;  %vm528_vm4 = vcmask 516352   ;;  %s6390_s3 = smov 96   ;;  %vm5196_vm5 = vcmask 254976  }
   0x3   :  { %v6482_v9 = vpack.c.bf16 %v37_v8, %v36_v7  ;;  %v6485_v10 = vpack.c.bf16 %v41_v6, %v40_v3  ;;  %v45_v11 = vld [vmem:[%s7822_s6] sm:$0xff]  ;;  %v46_v12 = vld [vmem:[%s7822_s6 + $0x8] sm:$0xff]  ;;  %v47_v15 = vld [vmem:[%s7822_s6 + $0x10] sm:$0xff]  ;;  %6251 = vset.pattern.permute.xlu0 %v6386_v22  ;;  %6252 = vset.pattern.permute.xlu1 %v6386_v22  ;;  %vm5202_vm6 = vcmask 517376   ;;  %vm4482_vm7 = vcmask 516096  }
   0x4   :  { %5992 = vmatpush3.bf16.msra.mxu1 %v6468_v5  ;;  %v61_v13 = vld [vmem:[%s7823_s0] sm:$0x3]  ;;  %v6505_v14 = vpack.c.bf16 %v46_v12, %v45_v11  ;;  %v48_v16 = vld [vmem:[%s7822_s6 + $0x18] sm:$0xff]  ;;  %v44_v19 = vld [vmem:[%s7824_s5 + $0x8] sm:$0xff] }
   0x5   :  { %5993 = vmatprep.subr.bf16.mxu1 %v6383_v0  ;;  %6022 = vmatpush3.bf16.msra.mxu0 %v6482_v9  ;;  %v6516_v17 = vpack.c.bf16 %v48_v16, %v47_v15  ;;  %v43_v18 = vld [vmem:[%s7824_s5] sm:$0xff]  ;;  %v5230_v21 = vld [vmem:[%s7823_s0 + $0xe] sm:$0x3]  ;;  %v56_v2 = vld [vmem:[%s7828_s8 + $0x30] sm:$0xff] }
   0x6   :  { %6029 = vmatprep.subr.bf16.mxu0 %v6383_v0  ;;  %v6528_v20 = vpack.c.bf16 %v44_v19, %v43_v18  ;;  %v6545_v30 = vld [vmem:[%s7825_s7] ss:$0 sm:$0xff]  ;;  %v5226_v39 = vld [vmem:[%s7827_s1 + $0xe] sm:$0x3]  ;;  %v57_v6 = vld [vmem:[%s7828_s8 + $0x38] sm:$0xff] }
   0x7   :  { %v6550_v34 = vld [vmem:[%s7826_s4] ss:$0 sm:$0xff]  ;;  %v439_v53 = vsub.f32 1.0, %v5226_v39  ;;  %v55_v1 = vld [vmem:[%s7828_s8 + $0x28] sm:$0xff]  ;;  %v6584_v7 = vpack.c.bf16 %v57_v6, %v56_v2  ;;  %v5237_v22 = vld [vmem:[%s7823_s0 + $0x2] sm:$0x3] }
   0x8   :  { %5995 = vmatpush3.bf16.msra.mxu1 %v6485_v10  ;;  %v58_v40 = vld [vmem:[%s7827_s1] sm:$0x3]  ;;  %5589 = vmatmul.mubr.msk.f32.vlgmr.msra.gmra.mrb[0].mxu0 %vm136_vm1, %v5237_v22 }
   0x9   :  { %5996 = vmatprep.subr.bf16.mxu1 %v6383_v0  ;;  %v247_v61 = vsub.f32 1.0, %v58_v40  ;;  %v54_v63 = vld [vmem:[%s7828_s8 + $0x20] sm:$0xff]  ;;  %6031 = vmatpush3.bf16.msra.mxu0 %v6528_v20 }
   0xa   :  { %v6578_v3 = vpack.c.bf16 %v55_v1, %v54_v63  ;;  %5606 = vmatprep.mubr.msk.f32.mxu0 %vm6384_vm0, %v6385_v4  ;;  %6044 = vmatprep.subr.bf16.mxu0 %v6383_v0 }
   0xb   :  { %5535 = vmatmul.mubr.f32.vlgmr.msra.gmra.mrb[0].mxu1 %v6385_v4 }
   0xc   :  { %5998 = vmatpush3.bf16.msra.mxu1 %v6482_v9  ;;  %5541 = vmatprep.mubr.msk.f32.mxu1 %vm6384_vm0, %v6385_v4 }
   0xd   :  { %5999 = vmatprep.subr.bf16.mxu1 %v6383_v0 }
   0xf   :  { %5542 = vmatmul.mubr.msk.f32.vlgmr.msra.gmra.mrb[2].mxu1 %vm136_vm1, %v61_v13 }
  0x10   :  { %6001 = vmatpush3.bf16.msra.mxu1 %v6505_v14  ;;  %5552 = vmatprep.mubr.msk.f32.mxu1 %vm6384_vm0, %v6385_v4 }
  0x11   :  { %6002 = vmatprep.subr.bf16.mxu1 %v6383_v0 }
  0x14   :  { %6004 = vmatpush3.bf16.msra.mxu1 %v6516_v17 }
  0x15   :  { %6005 = vmatprep.subr.bf16.mxu1 %v6383_v0 }
  0x17   :  { %5553 = vmatmul.mubr.f32.vlgmr.msra.gmra.mrb[4].mxu1 %v6385_v4 }
  0x18   :  { %6007 = vmatpush3.bf16.msra.mxu1 %v6528_v20  ;;  %5559 = vmatprep.mubr.msk.f32.mxu1 %vm6384_vm0, %v6385_v4 }
  0x19   :  { %6008 = vmatprep.subr.bf16.mxu1 %v6383_v0 }
  0x1b   :  { %5560 = vmatmul.mubr.msk.f32.vlgmr.msra.gmra.mrb[6].mxu1 %vm136_vm1, %v5230_v21 }
  0x1c   :  { %5570 = vmatprep.mubr.msk.f32.mxu1 %vm6384_vm0, %v6385_v4  ;;  %6010 = vmatpush3.bf16.msra.mxu1 %v6578_v3 }
  0x1d   :  { %6011 = vmatprep.subr.bf16.mxu1 %v6383_v0 }
  0x20   :  { %6013 = vmatpush3.bf16.msra.mxu1 %v6584_v7 }
  0x21   :  { %6014 = vmatprep.subr.bf16.mxu1 %v6383_v0 }
  0xde   :  { %v132_v23 = vpop.f32.mrb[0].mxu1 }
  0xdf   :  { %v5536_v24 = vpop.f32.mrb[1].mxu1 }
  0xe2   :  { %v206_v25 = vpop.f32.mrb[2].mxu1 }
  0xe3   :  { %v207_v26 = vadd.f32 %v206_v25, %v132_v23  ;;  %v5543_v27 = vpop.f32.mrb[3].mxu1  ;;  %v5241_v25 = vld [vmem:[%s7823_s0 + $0xc] sm:$0x3] }
  0xe4   :  { %5607 = vmatmul.mubr.msk.f32.vlgmr.msra.gmra.mrb[2].mxu0 %vm136_vm1, %v5241_v25 }
  0xe5   :  { %v216_v36 = vadd.f32 %v6550_v34, %v207_v26  ;;  %6046 = vmatpush3.bf16.msra.mxu0 %v6482_v9  ;;  %5635 = vmatprep.mubr.msk.f32.mxu0 %vm6384_vm0, %v6385_v4 }
  0xe6   :  { %6053 = vmatprep.subr.bf16.mxu0 %v6383_v0 }
  0xe7   :  { %v5229_v42 = vmul.f32 -1.442695, %v216_v36 }
  0xea   :  { %v325_v28 = vpop.f32.mrb[4].mxu1 }
  0xeb   :  { %v5554_v29 = vpop.f32.mrb[5].mxu1 }
  0xee   :  { %v398_v31 = vpop.f32.mrb[6].mxu1 }
  0xef   :  { %v399_v32 = vadd.f32 %v398_v31, %v325_v28  ;;  %v5561_v33 = vpop.f32.mrb[7].mxu1 }
  0xf1   :  { %v408_v35 = vadd.f32 %v6545_v30, %v399_v32 }
  0xf3   :  { %6253 = vtanh.f32 %v408_v35  ;;  %v5233_v41 = vmul.f32 -1.442695, %v408_v35 }
  0xf4   :  { %6255 = vtanh.f32 %v216_v36 }
  0xf5   :  { %6257 = vpow2.f32 %v5233_v41 }
  0xf6   :  { %6259 = vpow2.f32 %v5229_v42 }
  0xfd   :  { %v6254_v37 = vpop.eup %6253 }
  0xfe   :  { %418 = vrot.lane.b32.xlu0 %v6254_v37, %s6387_s13  ;;  %v6256_v38 = vpop.eup %6255  ;;  %v755_v37 = vpop.f32.mrb[0].mxu0 }
  0xff   :  { %v6258_v43 = vpop.eup %6257 }
 0x100   :  { %v412_v44 = vadd.f32 1.0, %v6258_v43  ;;  %v6260_v45 = vpop.eup %6259 }
 0x101   :  { %v220_v46 = vadd.f32 1.0, %v6260_v45 }
 0x102   :  { %226 = vrot.lane.b32.xlu0 %v6256_v38, %s6387_s13  ;;  %6261 = vrcp.f32 %v412_v44  ;;  %v5590_v38 = vpop.f32.mrb[1].mxu0 }
 0x103   :  { %6263 = vrcp.f32 %v220_v46 }
 0x106   :  { %435 = vperm.xlu0 %6251, %v5226_v39  }
 0x10a   :  { %243 = vperm.xlu0 %6251, %v58_v40  }
 0x10c   :  { %v6262_v47 = vpop.eup %6261 }
 0x10d   :  { %v6264_v50 = vpop.eup %6263  ;;  %v416_v54 = vmul.f32 0.0, %v6262_v47 }
 0x10e   :  { %v224_v57 = vmul.f32 0.0, %v6264_v50 }
 0x170   :  { %v419_v48 = vpop.permute.xlu0 %418 }
 0x171   :  { %v421_v49 = vmul.f32 %v6262_v47, %v419_v48 }
 0x173   :  { %423 = vrot.lane.b32.xlu1 %v421_v49, %s6388_s16 }
 0x174   :  { %v227_v51 = vpop.permute.xlu0 %226 }
 0x175   :  { %v229_v52 = vmul.f32 %v6264_v50, %v227_v51 }
 0x177   :  { %231 = vrot.lane.b32.xlu1 %v229_v52, %s6388_s16 }
 0x17b   :  { %442 = vperm.xlu1 %6252, %v439_v53  }
 0x185   :  { %v6589_v12 = vpop.permute.xlu0 %435 }
 0x189   :  { %v6597_v19 = vpop.permute.xlu0 %243 }
 0x1b7   :  { %v947_v39 = vpop.f32.mrb[2].mxu0 }
 0x1b8   :  { %v5608_v40 = vpop.f32.mrb[3].mxu0 }
 0x1e5   :  { %v424_v55 = vpop.permute.xlu1 %423 }
 0x1e6   :  { %v6564_v56 = vadd.f32 %v424_v55, %v416_v54 }
 0x1e8   :  { %6265 = vtanh.f32 %v6564_v56 }
 0x1e9   :  { %v232_v58 = vpop.permute.xlu1 %231 }
 0x1ea   :  { %v234_v59 = vadd.f32 %v232_v58, %v224_v57 }
 0x1ec   :  { %6267 = vtanh.f32 %v234_v59  ;;  %v255_v28 = vmul.f32 %v6597_v19, %v234_v59 }
 0x1f2   :  { %v6266_v60 = vpop.eup %6265 }
 0x1f3   :  { %429 = vrot.lane.b32.xlu1 %v6266_v60, %s6387_s13 }
 0x1f6   :  { %v6268_v62 = vpop.eup %6267 }
 0x1f7   :  { %237 = vrot.lane.b32.xlu0 %v6268_v62, %s6387_s13  ;;  %250 = vperm.xlu1 %6252, %v247_v61   ;;  %v5236_v62 = vld [vmem:[%s7827_s1 + $0xc] sm:$0x3] }
 0x1f8   :  { %v982_v1 = vsub.f32 1.0, %v5236_v62 }
 0x1fa   :  { %v443_v8 = vpop.permute.xlu1 %442 }
 0x1fb   :  { %v6591_v15 = vmul.f32 0.0, %v443_v8  ;;  %v5235_v8 = vld [vmem:[%s7827_s1 + $0x2] sm:$0x3] }
 0x265   :  { %v430_v11 = vpop.permute.xlu1 %429 }
 0x266   :  { %v432_v13 = vmul.f32 %v6262_v47, %v430_v11 }
 0x268   :  { %v438_v16 = vmul.f32 %v6589_v12, %v432_v13 }
 0x269   :  { %v238_v23 = vpop.permute.xlu0 %237 }
 0x26a   :  { %v6595_v18 = vadd.f32 %v6591_v15, %v438_v16  ;;  %v240_v24 = vmul.f32 %v6264_v50, %v238_v23  ;;  %v447_v23 = vmul.f32 %v6589_v12, %v6564_v56 }
 0x26c   :  { %v6601_v21 = vmul.f32 %v6595_v18, %v6589_v12  ;;  %v246_v27 = vmul.f32 %v6597_v19, %v240_v24  ;;  %v6673_v24 = vadd.f32 %v447_v23, %v6591_v15 }
 0x26e   :  { %531 = vrot.lane.b32.xlu1 %v6601_v21, %s6388_s16 }
 0x272   :  { %804 = vrot.lane.b32.xlu1 %v6595_v18, %s6388_s16 }
 0x276   :  { %v251_v26 = vpop.permute.xlu1 %250 }
 0x277   :  { %v253_v29 = vmul.f32 0.0, %v251_v26 }
 0x279   :  { %v6625_v31 = vadd.f32 %v253_v29, %v246_v27  ;;  %v6627_v32 = vadd.f32 %v255_v28, %v253_v29 }
 0x27b   :  { %612 = vrot.lane.b32.xlu0 %v6625_v31, %s6388_s16 }
 0x2e0   :  { %v532_v33 = vpop.permute.xlu1 %531 }
 0x2e1   :  { %5571 = vmatmul.mubr.msk.f32.vlgmr.msra.gmra.mrb[8].mxu1 %vm62_vm2, %v532_v33  ;;  %v790_v33 = vsub.f32 1.0, %v5235_v8 }
 0x2e2   :  { %6016 = vmatpush3.bf16.msra.mxu1 %v6468_v5  ;;  %5581 = vmatprep.mubr.msk.f32.mxu1 %vm6384_vm0, %v6385_v4 }
 0x2e3   :  { %6017 = vmatprep.subr.bf16.mxu1 %v6383_v0 }
 0x2e4   :  { %v805_v36 = vpop.permute.xlu1 %804 }
 0x2e6   :  { %6019 = vmatpush3.bf16.msra.mxu1 %v6485_v10 }
 0x2e7   :  { %6023 = vmatprep.subr.bf16.mxu1 %v6383_v0 }
 0x2ed   :  { %v613_v35 = vpop.permute.xlu0 %612 }
 0x2ee   :  { %5582 = vmatmul.mubr.msk.f32.vlgmr.msra.gmra.mrb[10].mxu1 %vm62_vm2, %v613_v35 }
 0x2ef   :  { %6025 = vmatpush3.bf16.msra.mxu1 %v6505_v14  ;;  %5599 = vmatprep.mubr.msk.f32.mxu1 %vm6384_vm0, %v6385_v4 }
 0x2f0   :  { %6026 = vmatprep.subr.bf16.mxu1 %v6383_v0 }
 0x2f3   :  { %6028 = vmatpush3.bf16.msra.mxu1 %v6516_v17 }
 0x2f4   :  { %6032 = vmatprep.subr.bf16.mxu1 %v6383_v0 }
 0x2f6   :  { %5600 = vmatmul.mubr.msk.f32.vlgmr.msra.gmra.mrb[12].mxu1 %vm62_vm2, %v805_v36 }
 0x2f7   :  { %6034 = vmatpush3.bf16.msra.mxu1 %v6578_v3  ;;  %5617 = vmatprep.mubr.msk.f32.mxu1 %vm6384_vm0, %v6385_v4 }
 0x2f8   :  { %6035 = vmatprep.subr.bf16.mxu1 %v6383_v0 }
 0x2fb   :  { %6037 = vmatpush3.bf16.msra.mxu1 %v6584_v7 }
 0x2fc   :  { %6038 = vmatprep.subr.bf16.mxu1 %v6383_v0 }
 0x3b4   :  { %v6652_v41 = vpop.f32.mrb[8].mxu1 }
 0x3b5   :  { %v5572_v42 = vpop.f32.mrb[9].mxu1 }
 0x3b6   :  { %v5248_v42 = vld [vmem:[%s7823_s0 + $0x4] sm:$0x3] }
 0x3b7   :  { %5636 = vmatmul.mubr.msk.f32.vlgmr.msra.gmra.mrb[4].mxu0 %vm136_vm1, %v5248_v42 }
 0x3b8   :  { %6055 = vmatpush3.bf16.msra.mxu0 %v6528_v20  ;;  %5653 = vmatprep.mubr.msk.f32.mxu0 %vm6384_vm0, %v6385_v4 }
 0x3b9   :  { %6068 = vmatprep.subr.bf16.mxu0 %v6383_v0 }
 0x3c1   :  { %v682_v43 = vpop.f32.mrb[10].mxu1 }
 0x3c2   :  { %v756_v44 = vadd.f32 %v755_v37, %v682_v43  ;;  %v5583_v45 = vpop.f32.mrb[11].mxu1 }
 0x3c4   :  { %v759_v46 = vadd.f32 %v6550_v34, %v756_v44  ;;  %v5252_v44 = vld [vmem:[%s7823_s0 + $0xa] sm:$0x3] }
 0x3c5   :  { %5654 = vmatmul.mubr.msk.f32.vlgmr.msra.gmra.mrb[6].mxu0 %vm136_vm1, %v5252_v44 }
 0x3c6   :  { %6269 = vtanh.f32 %v759_v46  ;;  %v5240_v53 = vmul.f32 -1.442695, %v759_v46  ;;  %6070 = vmatpush3.bf16.msra.mxu0 %v6482_v9  ;;  %5682 = vmatprep.mubr.msk.f32.mxu0 %vm6384_vm0, %v6385_v4 }
 0x3c7   :  { %6077 = vmatprep.subr.bf16.mxu0 %v6383_v0 }
 0x3c9   :  { %v874_v47 = vpop.f32.mrb[12].mxu1 }
 0x3ca   :  { %v948_v48 = vadd.f32 %v947_v39, %v874_v47  ;;  %v5601_v49 = vpop.f32.mrb[13].mxu1 }
 0x3cc   :  { %v951_v50 = vadd.f32 %v6545_v30, %v948_v48 }
 0x3ce   :  { %6271 = vtanh.f32 %v951_v50  ;;  %v5244_v54 = vmul.f32 -1.442695, %v951_v50 }
 0x3cf   :  { %6273 = vpow2.f32 %v5240_v53 }
 0x3d0   :  { %v6270_v51 = vpop.eup %6269  ;;  %6275 = vpow2.f32 %v5244_v54 }
 0x3d1   :  { %769 = vrot.lane.b32.xlu1 %v6270_v51, %s6387_s13 }
 0x3d8   :  { %v6272_v52 = vpop.eup %6271 }
 0x3d9   :  { %961 = vrot.lane.b32.xlu0 %v6272_v52, %s6387_s13  ;;  %v6274_v55 = vpop.eup %6273 }
 0x3da   :  { %v763_v57 = vadd.f32 1.0, %v6274_v55  ;;  %v6276_v58 = vpop.eup %6275 }
 0x3db   :  { %v955_v59 = vadd.f32 1.0, %v6276_v58 }
 0x3dc   :  { %6277 = vrcp.f32 %v763_v57 }
 0x3dd   :  { %6279 = vrcp.f32 %v955_v59 }
 0x3e6   :  { %v6278_v60 = vpop.eup %6277 }
 0x3e7   :  { %v6280_v2 = vpop.eup %6279  ;;  %v767_v13 = vmul.f32 %v6278_v60, %v6627_v32 }
 0x3e8   :  { %v959_v25 = vmul.f32 %v6280_v2, %v6673_v24 }
 0x443   :  { %v770_v61 = vpop.permute.xlu1 %769 }
 0x444   :  { %v772_v63 = vmul.f32 %v6278_v60, %v770_v61 }
 0x446   :  { %774 = vrot.lane.b32.xlu1 %v772_v63, %s6388_s16 }
 0x44a   :  { %985 = vperm.xlu1 %6252, %v982_v1  }
 0x44b   :  { %v962_v6 = vpop.permute.xlu0 %961 }
 0x44c   :  { %v964_v11 = vmul.f32 %v6280_v2, %v962_v6 }
 0x44e   :  { %966 = vrot.lane.b32.xlu0 %v964_v11, %s6388_s16  ;;  %786 = vperm.xlu1 %6252, %v5235_v8  }
 0x452   :  { %978 = vperm.xlu0 %6251, %v5236_v62  }
 0x48a   :  { %v1297_v52 = vpop.f32.mrb[4].mxu0 }
 0x48b   :  { %v5637_v53 = vpop.f32.mrb[5].mxu0 }
 0x498   :  { %v1489_v54 = vpop.f32.mrb[6].mxu0 }
 0x499   :  { %v5655_v55 = vpop.f32.mrb[7].mxu0 }
 0x4b8   :  { %v775_v16 = vpop.permute.xlu1 %774 }
 0x4b9   :  { %v6667_v22 = vadd.f32 %v775_v16, %v767_v13 }
 0x4bb   :  { %6281 = vtanh.f32 %v6667_v22 }
 0x4c0   :  { %v967_v26 = vpop.permute.xlu0 %966 }
 0x4c1   :  { %v6676_v27 = vadd.f32 %v967_v26, %v959_v25 }
 0x4c3   :  { %6283 = vtanh.f32 %v6676_v27 }
 0x4c5   :  { %v6282_v28 = vpop.eup %6281 }
 0x4c6   :  { %780 = vrot.lane.b32.xlu1 %v6282_v28, %s6387_s13 }
 0x4c9   :  { %v6683_v12 = vpop.permute.xlu1 %985 }
 0x4ca   :  { %v988_v36 = vmul.f32 %v6683_v12, %v6595_v18  ;;  %v991_v53 = vmul.f32 %v6683_v12, %v6673_v24 }
 0x4cd   :  { %v6284_v29 = vpop.eup %6283  ;;  %v6690_v39 = vpop.permute.xlu1 %786 }
 0x4ce   :  { %972 = vrot.lane.b32.xlu0 %v6284_v29, %s6387_s13 }
 0x4d1   :  { %v6681_v56 = vpop.permute.xlu0 %978 }
 0x4d2   :  { %793 = vperm.xlu0 %6251, %v790_v33  }
 0x538   :  { %v781_v18 = vpop.permute.xlu1 %780 }
 0x539   :  { %v783_v43 = vmul.f32 %v6278_v60, %v781_v18  ;;  %v5246_v18 = vld [vmem:[%s7827_s1 + $0x4] sm:$0x3] }
 0x53b   :  { %v789_v46 = vmul.f32 %v6690_v39, %v783_v43 }
 0x540   :  { %v973_v15 = vpop.permute.xlu0 %972 }
 0x541   :  { %v975_v35 = vmul.f32 %v6280_v2, %v973_v15  ;;  %v5247_v15 = vld [vmem:[%s7827_s1 + $0xa] sm:$0x3] }
 0x543   :  { %v981_v37 = vmul.f32 %v6681_v56, %v975_v35 }
 0x545   :  { %v6688_v38 = vadd.f32 %v988_v36, %v981_v37  ;;  %v1524_v36 = vsub.f32 1.0, %v5247_v15 }
 0x547   :  { %v6694_v40 = vmul.f32 %v6688_v38, %v6681_v56 }
 0x549   :  { %1073 = vrot.lane.b32.xlu0 %v6694_v40, %s6388_s16 }
 0x54d   :  { %1346 = vrot.lane.b32.xlu0 %v6688_v38, %s6388_s16 }
 0x551   :  { %v6712_v45 = vpop.permute.xlu0 %793 }
 0x552   :  { %v796_v47 = vmul.f32 %v6712_v45, %v6625_v31  ;;  %v799_v44 = vmul.f32 %v6712_v45, %v6627_v32 }
 0x554   :  { %v6721_v48 = vadd.f32 %v796_v47, %v789_v46  ;;  %v798_v46 = vmul.f32 %v6690_v39, %v6667_v22 }
 0x556   :  { %1154 = vrot.lane.b32.xlu1 %v6721_v48, %s6388_s16  ;;  %v6764_v47 = vadd.f32 %v799_v44, %v798_v46 }
 0x5bb   :  { %v1074_v49 = vpop.permute.xlu0 %1073 }
 0x5bc   :  { %5618 = vmatmul.mubr.msk.f32.vlgmr.msra.gmra.mrb[14].mxu1 %vm62_vm2, %v1074_v49 }
 0x5bd   :  { %6040 = vmatpush3.bf16.msra.mxu1 %v6468_v5  ;;  %5628 = vmatprep.mubr.msk.f32.mxu1 %vm6384_vm0, %v6385_v4 }
 0x5be   :  { %6041 = vmatprep.subr.bf16.mxu1 %v6383_v0 }
 0x5bf   :  { %v1347_v51 = vpop.permute.xlu0 %1346 }
 0x5c1   :  { %6043 = vmatpush3.bf16.msra.mxu1 %v6485_v10 }
 0x5c2   :  { %6047 = vmatprep.subr.bf16.mxu1 %v6383_v0 }
 0x5c8   :  { %v1155_v50 = vpop.permute.xlu1 %1154 }
 0x5c9   :  { %5629 = vmatmul.mubr.msk.f32.vlgmr.msra.gmra.mrb[16].mxu1 %vm62_vm2, %v1155_v50 }
 0x5ca   :  { %6049 = vmatpush3.bf16.msra.mxu1 %v6505_v14  ;;  %5646 = vmatprep.mubr.msk.f32.mxu1 %vm6384_vm0, %v6385_v4 }
 0x5cb   :  { %6050 = vmatprep.subr.bf16.mxu1 %v6383_v0 }
 0x5ce   :  { %6052 = vmatpush3.bf16.msra.mxu1 %v6516_v17 }
 0x5cf   :  { %6056 = vmatprep.subr.bf16.mxu1 %v6383_v0 }
 0x5d1   :  { %5647 = vmatmul.mubr.msk.f32.vlgmr.msra.gmra.mrb[18].mxu1 %vm62_vm2, %v1347_v51  ;;  %v990_v51 = vmul.f32 %v6681_v56, %v6676_v27  ;;  %v1332_v56 = vsub.f32 1.0, %v5246_v18 }
 0x5d2   :  { %6058 = vmatpush3.bf16.msra.mxu1 %v6578_v3  ;;  %5664 = vmatprep.mubr.msk.f32.mxu1 %vm6384_vm0, %v6385_v4 }
 0x5d3   :  { %6059 = vmatprep.subr.bf16.mxu1 %v6383_v0 }
 0x5d6   :  { %6061 = vmatpush3.bf16.msra.mxu1 %v6584_v7 }
 0x5d7   :  { %6062 = vmatprep.subr.bf16.mxu1 %v6383_v0 }
 0x68f   :  { %v6746_v57 = vpop.f32.mrb[14].mxu1 }
 0x690   :  { %v5619_v58 = vpop.f32.mrb[15].mxu1 }
 0x69c   :  { %v1224_v59 = vpop.f32.mrb[16].mxu1 }
 0x69d   :  { %v1298_v60 = vadd.f32 %v1297_v52, %v1224_v59  ;;  %v5630_v61 = vpop.f32.mrb[17].mxu1 }
 0x69f   :  { %v1301_v62 = vadd.f32 %v6550_v34, %v1298_v60 }
 0x6a1   :  { %6285 = vtanh.f32 %v1301_v62  ;;  %v5251_v13 = vmul.f32 -1.442695, %v1301_v62 }
 0x6a4   :  { %v1416_v63 = vpop.f32.mrb[18].mxu1 }
 0x6a5   :  { %v1490_v1 = vadd.f32 %v1489_v54, %v1416_v63  ;;  %v5648_v2 = vpop.f32.mrb[19].mxu1  ;;  %v6774_v54 = vadd.f32 %v991_v53, %v990_v51 }
 0x6a6   :  { %v5259_v2 = vld [vmem:[%s7823_s0 + $0x6] sm:$0x3] }
 0x6a7   :  { %v1493_v6 = vadd.f32 %v6545_v30, %v1490_v1  ;;  %5683 = vmatmul.mubr.msk.f32.vlgmr.msra.gmra.mrb[8].mxu0 %vm136_vm1, %v5259_v2  ;;  %v5258_v2 = vld [vmem:[%s7827_s1 + $0x8] sm:$0x3] }
 0x6a8   :  { %6079 = vmatpush3.bf16.msra.mxu0 %v6528_v20  ;;  %5700 = vmatprep.mubr.msk.f32.mxu0 %vm6384_vm0, %v6385_v4 }
 0x6a9   :  { %6287 = vtanh.f32 %v1493_v6  ;;  %v5255_v16 = vmul.f32 -1.442695, %v1493_v6  ;;  %6080 = vmatprep.subr.bf16.mxu0 %v6383_v0 }
 0x6aa   :  { %6289 = vpow2.f32 %v5251_v13 }
 0x6ab   :  { %v6286_v8 = vpop.eup %6285  ;;  %6291 = vpow2.f32 %v5255_v16 }
 0x6ac   :  { %1311 = vrot.lane.b32.xlu0 %v6286_v8, %s6387_s13  ;;  %v5263_v8 = vld [vmem:[%s7823_s0 + $0x8] sm:$0x3] }
 0x6ad   :  { %5701 = vmatmul.mubr.msk.f32.vlgmr.msra.gmra.mrb[10].mxu0 %vm136_vm1, %v5263_v8  ;;  %v5257_v8 = vld [vmem:[%s7827_s1 + $0x6] sm:$0x3] }
 0x6ae   :  { %6082 = vmatpush3.bf16.msra.mxu0 %v6578_v3  ;;  %5711 = vmatprep.mubr.msk.f32.mxu0 %vm6384_vm0, %v6385_v4 }
 0x6af   :  { %6083 = vmatprep.subr.bf16.mxu0 %v6383_v0 }
 0x6b2   :  { %6085 = vmatpush3.bf16.msra.mxu0 %v6584_v7 }
 0x6b3   :  { %v6288_v11 = vpop.eup %6287  ;;  %6092 = vmatprep.subr.bf16.mxu0 %v6383_v0 }
 0x6b4   :  { %1503 = vrot.lane.b32.xlu1 %v6288_v11, %s6387_s13  ;;  %v6290_v23 = vpop.eup %6289 }
 0x6b5   :  { %v1305_v25 = vadd.f32 1.0, %v6290_v23  ;;  %v6292_v26 = vpop.eup %6291 }
 0x6b6   :  { %v1497_v28 = vadd.f32 1.0, %v6292_v26 }
 0x6b7   :  { %6293 = vrcp.f32 %v1305_v25 }
 0x6b8   :  { %6295 = vrcp.f32 %v1497_v28 }
 0x6c1   :  { %v6294_v29 = vpop.eup %6293 }
 0x6c2   :  { %v6296_v37 = vpop.eup %6295  ;;  %v1309_v49 = vmul.f32 %v6294_v29, %v6764_v47 }
 0x6c3   :  { %v1501_v32 = vmul.f32 %v6296_v37, %v6774_v54 }
 0x71e   :  { %v1312_v33 = vpop.permute.xlu0 %1311 }
 0x71f   :  { %v1314_v35 = vmul.f32 %v6294_v29, %v1312_v33 }
 0x721   :  { %1316 = vrot.lane.b32.xlu0 %v1314_v35, %s6388_s16 }
 0x725   :  { %1527 = vperm.xlu0 %6251, %v1524_v36  }
 0x726   :  { %v1504_v42 = vpop.permute.xlu1 %1503 }
 0x727   :  { %v1506_v43 = vmul.f32 %v6296_v37, %v1504_v42 }
 0x729   :  { %1508 = vrot.lane.b32.xlu1 %v1506_v43, %s6388_s16  ;;  %1328 = vperm.xlu0 %6251, %v5246_v18  }
 0x72d   :  { %1520 = vperm.xlu1 %6252, %v5247_v15  }
 0x793   :  { %v1317_v50 = vpop.permute.xlu0 %1316 }
 0x794   :  { %v6769_v52 = vadd.f32 %v1317_v50, %v1309_v49 }
 0x796   :  { %6297 = vtanh.f32 %v6769_v52 }
 0x79b   :  { %v1509_v22 = vpop.permute.xlu1 %1508 }
 0x79c   :  { %v6777_v45 = vadd.f32 %v1509_v22, %v1501_v32 }
 0x79e   :  { %6299 = vtanh.f32 %v6777_v45 }
 0x7a0   :  { %v6298_v55 = vpop.eup %6297 }
 0x7a1   :  { %1322 = vrot.lane.b32.xlu0 %v6298_v55, %s6387_s13 }
 0x7a4   :  { %v6784_v12 = vpop.permute.xlu0 %1527 }
 0x7a5   :  { %v1530_v60 = vmul.f32 %v6784_v12, %v6688_v38 }
 0x7a8   :  { %v6300_v27 = vpop.eup %6299  ;;  %v6791_v63 = vpop.permute.xlu0 %1328 }
 0x7a9   :  { %1514 = vrot.lane.b32.xlu1 %v6300_v27, %s6387_s13 }
 0x7ac   :  { %v6782_v24 = vpop.permute.xlu1 %1520 }
 0x7ad   :  { %1335 = vperm.xlu1 %6252, %v1332_v56  }
 0x813   :  { %v1323_v38 = vpop.permute.xlu0 %1322 }
 0x814   :  { %v1325_v6 = vmul.f32 %v6294_v29, %v1323_v38  ;;  %v1839_v29 = vpop.f32.mrb[8].mxu0 }
 0x815   :  { %v5684_v33 = vpop.f32.mrb[9].mxu0 }
 0x816   :  { %v1331_v13 = vmul.f32 %v6791_v63, %v1325_v6  ;;  %v2031_v15 = vpop.f32.mrb[10].mxu0  ;;  %v2066_v6 = vsub.f32 1.0, %v5258_v2 }
 0x817   :  { %v5702_v35 = vpop.f32.mrb[11].mxu0 }
 0x81b   :  { %v1515_v58 = vpop.permute.xlu1 %1514 }
 0x81c   :  { %v1517_v59 = vmul.f32 %v6296_v37, %v1515_v58 }
 0x81e   :  { %v1523_v61 = vmul.f32 %v6782_v24, %v1517_v59 }
 0x820   :  { %v6789_v62 = vadd.f32 %v1530_v60, %v1523_v61 }
 0x822   :  { %v6795_v1 = vmul.f32 %v6789_v62, %v6782_v24 }
 0x824   :  { %1615 = vrot.lane.b32.xlu1 %v6795_v1, %s6388_s16 }
 0x828   :  { %1888 = vrot.lane.b32.xlu1 %v6789_v62, %s6388_s16 }
 0x82c   :  { %v6813_v11 = vpop.permute.xlu1 %1335 }
 0x82d   :  { %v1338_v16 = vmul.f32 %v6813_v11, %v6721_v48 }
 0x82f   :  { %v6822_v23 = vadd.f32 %v1338_v16, %v1331_v13  ;;  %v1874_v13 = vsub.f32 1.0, %v5257_v8 }
 0x831   :  { %1696 = vrot.lane.b32.xlu0 %v6822_v23, %s6388_s16 }
 0x896   :  { %v1616_v25 = vpop.permute.xlu1 %1615 }
 0x897   :  { %5665 = vmatmul.mubr.msk.f32.vlgmr.msra.gmra.mrb[20].mxu1 %vm62_vm2, %v1616_v25 }
 0x898   :  { %6064 = vmatpush3.bf16.msra.mxu1 %v6468_v5  ;;  %5675 = vmatprep.mubr.msk.f32.mxu1 %vm6384_vm0, %v6385_v4 }
 0x899   :  { %6065 = vmatprep.subr.bf16.mxu1 %v6383_v0 }
 0x89a   :  { %v1889_v28 = vpop.permute.xlu1 %1888 }
 0x89c   :  { %6067 = vmatpush3.bf16.msra.mxu1 %v6485_v10 }
 0x89d   :  { %6071 = vmatprep.subr.bf16.mxu1 %v6383_v0 }
 0x8a3   :  { %v1697_v26 = vpop.permute.xlu0 %1696 }
 0x8a4   :  { %5676 = vmatmul.mubr.msk.f32.vlgmr.msra.gmra.mrb[22].mxu1 %vm62_vm2, %v1697_v26 }
 0x8a5   :  { %6073 = vmatpush3.bf16.msra.mxu1 %v6505_v14  ;;  %5693 = vmatprep.mubr.msk.f32.mxu1 %vm6384_vm0, %v6385_v4 }
 0x8a6   :  { %6074 = vmatprep.subr.bf16.mxu1 %v6383_v0 }
 0x8a9   :  { %6076 = vmatpush3.bf16.msra.mxu1 %v6516_v17 }
 0x8aa   :  { %6086 = vmatprep.subr.bf16.mxu1 %v6383_v0 }
 0x8ac   :  { %5694 = vmatmul.mubr.msk.f32.vlgmr.msra.gmra.mrb[24].mxu1 %vm62_vm2, %v1889_v28  ;;  %v1341_v28 = vmul.f32 %v6813_v11, %v6764_v47 }
 0x8ad   :  { %6088 = vmatpush3.bf16.msra.mxu1 %v6468_v5  ;;  %5722 = vmatprep.mubr.msk.f32.mxu1 %vm6384_vm0, %v6385_v4 }
 0x8ae   :  { %6089 = vmatprep.subr.bf16.mxu1 %v6383_v0 }
 0x8b1   :  { %6091 = vmatpush3.bf16.msra.mxu1 %v6485_v10 }
 0x8b2   :  { %6095 = vmatprep.subr.bf16.mxu1 %v6383_v0 }
 0x96a   :  { %v6849_v36 = vpop.f32.mrb[20].mxu1 }
 0x96b   :  { %v5666_v37 = vpop.f32.mrb[21].mxu1 }
 0x96c   :  { %v1532_v37 = vmul.f32 %v6782_v24, %v6777_v45 }
 0x977   :  { %v1766_v42 = vpop.f32.mrb[22].mxu1 }
 0x978   :  { %v1840_v18 = vadd.f32 %v1839_v29, %v1766_v42  ;;  %v5677_v43 = vpop.f32.mrb[23].mxu1  ;;  %v1340_v29 = vmul.f32 %v6791_v63, %v6769_v52 }
 0x97a   :  { %v1843_v44 = vadd.f32 %v6550_v34, %v1840_v18  ;;  %v6867_v33 = vadd.f32 %v1341_v28, %v1340_v29  ;;  %v1533_v18 = vmul.f32 %v6784_v12, %v6774_v54 }
 0x97c   :  { %6301 = vtanh.f32 %v1843_v44  ;;  %v5262_v22 = vmul.f32 -1.442695, %v1843_v44  ;;  %v6877_v43 = vadd.f32 %v1533_v18, %v1532_v37 }
 0x97f   :  { %v1958_v46 = vpop.f32.mrb[24].mxu1 }
 0x980   :  { %v2032_v49 = vadd.f32 %v2031_v15, %v1958_v46  ;;  %v5695_v50 = vpop.f32.mrb[25].mxu1 }
 0x982   :  { %v2035_v51 = vadd.f32 %v6545_v30, %v2032_v49 }
 0x984   :  { %6303 = vtanh.f32 %v2035_v51  ;;  %v5266_v55 = vmul.f32 -1.442695, %v2035_v51 }
 0x985   :  { %6305 = vpow2.f32 %v5262_v22 }
 0x986   :  { %v6302_v53 = vpop.eup %6301  ;;  %6307 = vpow2.f32 %v5266_v55 }
 0x987   :  { %1853 = vrot.lane.b32.xlu1 %v6302_v53, %s6387_s13 }
 0x98e   :  { %v6304_v32 = vpop.eup %6303 }
 0x98f   :  { %2045 = vrot.lane.b32.xlu0 %v6304_v32, %s6387_s13  ;;  %v6306_v27 = vpop.eup %6305 }
 0x990   :  { %v1847_v56 = vadd.f32 1.0, %v6306_v27  ;;  %v6308_v58 = vpop.eup %6307 }
 0x991   :  { %v2039_v59 = vadd.f32 1.0, %v6308_v58 }
 0x992   :  { %6309 = vrcp.f32 %v1847_v56 }
 0x993   :  { %6311 = vrcp.f32 %v2039_v59 }
 0x99c   :  { %v6310_v60 = vpop.eup %6309 }
 0x99d   :  { %v6312_v16 = vpop.eup %6311  ;;  %v1851_v15 = vmul.f32 %v6310_v60, %v6867_v33 }
 0x99e   :  { %v2043_v47 = vmul.f32 %v6312_v16, %v6877_v43 }
 0x9f9   :  { %v1854_v61 = vpop.permute.xlu1 %1853 }
 0x9fa   :  { %v1856_v38 = vmul.f32 %v6310_v60, %v1854_v61  ;;  %v5270_v61 = vld [vmem:[%s7823_s0 + $0x8] sm:$0x3] }
 0x9fc   :  { %1858 = vrot.lane.b32.xlu1 %v1856_v38, %s6388_s16  ;;  %v5274_v38 = vld [vmem:[%s7823_s0 + $0x6] sm:$0x3] }
 0xa00   :  { %2069 = vperm.xlu1 %6252, %v2066_v6  }
 0xa01   :  { %v2046_v25 = vpop.permute.xlu0 %2045 }
 0xa02   :  { %v2048_v26 = vmul.f32 %v6312_v16, %v2046_v25 }
 0xa04   :  { %2050 = vrot.lane.b32.xlu0 %v2048_v26, %s6388_s16  ;;  %1877 = vperm.xlu1 %6252, %v1874_v13  }
 0xa08   :  { %2062 = vperm.xlu0 %6251, %v5258_v2  }
 0xa0c   :  { %1870 = vperm.xlu0 %6251, %v5257_v8  }
 0xa6e   :  { %v1859_v35 = vpop.permute.xlu1 %1858 }
 0xa6f   :  { %v6872_v42 = vadd.f32 %v1859_v35, %v1851_v15 }
 0xa71   :  { %6313 = vtanh.f32 %v6872_v42 }
 0xa76   :  { %v2051_v52 = vpop.permute.xlu0 %2050 }
 0xa77   :  { %v6880_v11 = vadd.f32 %v2051_v52, %v2043_v47 }
 0xa79   :  { %6315 = vtanh.f32 %v6880_v11 }
 0xa7b   :  { %v6314_v44 = vpop.eup %6313 }
 0xa7c   :  { %1864 = vrot.lane.b32.xlu1 %v6314_v44, %s6387_s13 }
 0xa7f   :  { %v6885_v24 = vpop.permute.xlu1 %2069 }
 0xa80   :  { %v2072_v27 = vmul.f32 %v6885_v24, %v6789_v62 }
 0xa83   :  { %v6316_v45 = vpop.eup %6315  ;;  %v6887_v54 = vpop.permute.xlu1 %1877 }
 0xa84   :  { %2056 = vrot.lane.b32.xlu0 %v6316_v45, %s6387_s13  ;;  %v1880_v51 = vmul.f32 %v6887_v54, %v6822_v23 }
 0xa87   :  { %v6889_v12 = vpop.permute.xlu0 %2062 }
 0xa8b   :  { %v6891_v50 = vpop.permute.xlu0 %1870 }
 0xaee   :  { %v1865_v46 = vpop.permute.xlu1 %1864 }
 0xaef   :  { %v1867_v49 = vmul.f32 %v6310_v60, %v1865_v46 }
 0xaf1   :  { %v1873_v53 = vmul.f32 %v6891_v50, %v1867_v49 }
 0xaf3   :  { %v6896_v32 = vadd.f32 %v1880_v51, %v1873_v53 }
 0xaf5   :  { %2235 = vrot.lane.b32.xlu1 %v6896_v32, %s6388_s16 }
 0xaf6   :  { %v2057_v22 = vpop.permute.xlu0 %2056 }
 0xaf7   :  { %v2059_v55 = vmul.f32 %v6312_v16, %v2057_v22 }
 0xaf9   :  { %v2065_v56 = vmul.f32 %v6889_v12, %v2059_v55 }
 0xafb   :  { %v6903_v58 = vadd.f32 %v2072_v27, %v2065_v56 }
 0xafd   :  { %v6907_v59 = vmul.f32 %v6903_v58, %v6889_v12 }
 0xaff   :  { %2157 = vrot.lane.b32.xlu0 %v6907_v59, %s6388_s16 }
 0xb03   :  { %2426 = vrot.lane.b32.xlu0 %v6903_v58, %s6388_s16 }
 0xb67   :  { %v2236_v60 = vpop.permute.xlu1 %2235 }
 0xb68   :  { %5723 = vmatmul.mubr.msk.f32.vlgmr.msra.gmra.mrb[26].mxu1 %vm62_vm2, %v2236_v60 }
 0xb69   :  { %6097 = vmatpush3.bf16.msra.mxu1 %v6505_v14  ;;  %5740 = vmatprep.mubr.msk.f32.mxu1 %vm6384_vm0, %v6385_v4 }
 0xb6a   :  { %6098 = vmatprep.subr.bf16.mxu1 %v6383_v0 }
 0xb6d   :  { %6100 = vmatpush3.bf16.msra.mxu1 %v6516_v17 }
 0xb6e   :  { %6110 = vmatprep.subr.bf16.mxu1 %v6383_v0 }
 0xb71   :  { %v2158_v62 = vpop.permute.xlu0 %2157 }
 0xb72   :  { %5712 = vmatmul.mubr.msk.f32.vlgmr.msra.gmra.mrb[12].mxu0 %vm62_vm2, %v2158_v62  ;;  %v5268_v62 = vld [vmem:[%s7827_s1 + $0x8] sm:$0x3] }
 0xb73   :  { %6094 = vmatpush3.bf16.msra.mxu0 %v6482_v9  ;;  %5729 = vmatprep.mubr.msk.f32.mxu0 %vm6384_vm0, %v6385_v4 }
 0xb74   :  { %6101 = vmatprep.subr.bf16.mxu0 %v6383_v0 }
 0xb75   :  { %v2427_v2 = vpop.permute.xlu0 %2426 }
 0xb76   :  { %5730 = vmatmul.mubr.msk.f32.vlgmr.msra.gmra.mrb[14].mxu0 %vm136_vm1, %v5270_v61  ;;  %5741 = vmatmul.mubr.msk.f32.vlgmr.msra.gmra.mrb[28].mxu1 %vm62_vm2, %v2427_v2  ;;  %v2413_v2 = vsub.f32 1.0, %v5268_v62 }
 0xb77   :  { %6103 = vmatpush3.bf16.msra.mxu0 %v6528_v20  ;;  %5747 = vmatprep.mubr.msk.f32.mxu0 %vm6384_vm0, %v6385_v4 }
 0xb78   :  { %6112 = vmatpush3.bf16.msra.mxu1 %v6468_v5  ;;  %6104 = vmatprep.subr.bf16.mxu0 %v6383_v0 }
 0xb79   :  { %6113 = vmatprep.subr.bf16.mxu1 %v6383_v0  ;;  %5769 = vmatprep.mubr.msk.f32.mxu1 %vm6384_vm0, %v6385_v4 }
 0xb7a   :  { %5748 = vmatmul.mubr.msk.f32.vlgmr.msra.gmra.mrb[16].mxu0 %vm136_vm1, %v5274_v38  ;;  %v1882_v38 = vmul.f32 %v6891_v50, %v6872_v42 }
 0xb7b   :  { %6106 = vmatpush3.bf16.msra.mxu0 %v6578_v3  ;;  %5758 = vmatprep.mubr.msk.f32.mxu0 %vm6384_vm0, %v6385_v4 }
 0xb7c   :  { %6115 = vmatpush3.bf16.msra.mxu1 %v6485_v10  ;;  %6107 = vmatprep.subr.bf16.mxu0 %v6383_v0 }
 0xb7d   :  { %6119 = vmatprep.subr.bf16.mxu1 %v6383_v0 }
 0xb7f   :  { %6109 = vmatpush3.bf16.msra.mxu0 %v6584_v7 }
 0xb80   :  { %6116 = vmatprep.subr.bf16.mxu0 %v6383_v0 }
 0xc3b   :  { %v2305_v6 = vpop.f32.mrb[26].mxu1 }
 0xc3c   :  { %v5724_v8 = vpop.f32.mrb[27].mxu1 }
 0xc3d   :  { %v2074_v8 = vmul.f32 %v6889_v12, %v6880_v11 }
 0xc49   :  { %v2378_v13 = vpop.f32.mrb[14].mxu0  ;;  %v2496_v16 = vpop.f32.mrb[28].mxu1 }
 0xc4a   :  { %v2379_v25 = vadd.f32 %v2378_v13, %v2305_v6  ;;  %v5731_v26 = vpop.f32.mrb[15].mxu0  ;;  %v5742_v28 = vpop.f32.mrb[29].mxu1  ;;  %v1883_v6 = vmul.f32 %v6887_v54, %v6867_v33 }
 0xc4c   :  { %v2382_v29 = vadd.f32 %v6550_v34, %v2379_v25  ;;  %v6968_v13 = vadd.f32 %v1883_v6, %v1882_v38 }
 0xc4d   :  { %v2569_v15 = vpop.f32.mrb[16].mxu0 }
 0xc4e   :  { %6317 = vtanh.f32 %v2382_v29  ;;  %v2570_v35 = vadd.f32 %v2569_v15, %v2496_v16  ;;  %v5749_v37 = vpop.f32.mrb[17].mxu0  ;;  %v5273_v44 = vmul.f32 -1.442695, %v2382_v29  ;;  %v2075_v16 = vmul.f32 %v6885_v24, %v6877_v43 }
 0xc50   :  { %v2573_v18 = vadd.f32 %v6545_v30, %v2570_v35  ;;  %v5269_v30 = vld [vmem:[%s7827_s1 + $0x6] sm:$0x3]  ;;  %v2076_v29 = vadd.f32 %v2075_v16, %v2074_v8 }
 0xc51   :  { %v2604_v27 = vsub.f32 1.0, %v5269_v30 }
 0xc52   :  { %6319 = vtanh.f32 %v2573_v18  ;;  %v5277_v45 = vmul.f32 -1.442695, %v2573_v18 }
 0xc53   :  { %6321 = vpow2.f32 %v5273_v44 }
 0xc54   :  { %6323 = vpow2.f32 %v5277_v45 }
 0xc58   :  { %v6318_v47 = vpop.eup %6317 }
 0xc59   :  { %2392 = vrot.lane.b32.xlu0 %v6318_v47, %s6387_s13 }
 0xc5c   :  { %v6320_v52 = vpop.eup %6319 }
 0xc5d   :  { %2583 = vrot.lane.b32.xlu1 %v6320_v52, %s6387_s13  ;;  %v6322_v46 = vpop.eup %6321 }
 0xc5e   :  { %v2386_v49 = vadd.f32 1.0, %v6322_v46  ;;  %v6324_v34 = vpop.eup %6323 }
 0xc5f   :  { %v2577_v51 = vadd.f32 1.0, %v6324_v34 }
 0xc60   :  { %6325 = vrcp.f32 %v2386_v49 }
 0xc61   :  { %6327 = vrcp.f32 %v2577_v51 }
 0xc6a   :  { %v6326_v53 = vpop.eup %6325 }
 0xc6b   :  { %v6328_v56 = vpop.eup %6327  ;;  %v2390_v25 = vmul.f32 %v6326_v53, %v6968_v13 }
 0xc6c   :  { %v2581_v42 = vmul.f32 %v6328_v56, %v2076_v29 }
 0xccb   :  { %v2393_v22 = vpop.permute.xlu0 %2392 }
 0xccc   :  { %v2395_v55 = vmul.f32 %v6326_v53, %v2393_v22 }
 0xcce   :  { %2397 = vrot.lane.b32.xlu0 %v2395_v55, %s6388_s16 }
 0xccf   :  { %v2584_v60 = vpop.permute.xlu1 %2583 }
 0xcd0   :  { %v2586_v61 = vmul.f32 %v6328_v56, %v2584_v60 }
 0xcd2   :  { %2607 = vperm.xlu0 %6251, %v2604_v27   ;;  %2588 = vrot.lane.b32.xlu1 %v2586_v61, %s6388_s16 }
 0xcd6   :  { %2416 = vperm.xlu0 %6251, %v2413_v2   ;;  %2600 = vperm.xlu1 %6252, %v5269_v30  }
 0xcda   :  { %2409 = vperm.xlu1 %6252, %v5268_v62   ;;  %v5285_v62 = vld [vmem:[%s7823_s0 + $0x4] sm:$0x3] }
 0xd40   :  { %v2398_v26 = vpop.permute.xlu0 %2397 }
 0xd41   :  { %v6973_v28 = vadd.f32 %v2398_v26, %v2390_v25  ;;  %v7041_v26 = vld [vmem:[%s7826_s4] ss:$0 sm:$0xff] }
 0xd43   :  { %6329 = vtanh.f32 %v6973_v28 }
 0xd44   :  { %v2589_v15 = vpop.permute.xlu1 %2588 }
 0xd45   :  { %v2591_v35 = vadd.f32 %v2589_v15, %v2581_v42 }
 0xd47   :  { %6331 = vtanh.f32 %v2591_v35 }
 0xd4d   :  { %v6330_v33 = vpop.eup %6329 }
 0xd4e   :  { %2403 = vrot.lane.b32.xlu0 %v6330_v33, %s6387_s13  ;;  %v7047_v33 = vld [vmem:[%s7825_s7] ss:$0 sm:$0xff] }
 0xd51   :  { %v6332_v11 = vpop.eup %6331  ;;  %v2608_v54 = vpop.permute.xlu0 %2607 }
 0xd52   :  { %2594 = vrot.lane.b32.xlu1 %v6332_v11, %s6387_s13  ;;  %v2613_v24 = vmul.f32 %v2608_v54, %v2076_v29  ;;  %v2610_v22 = vmul.f32 %v2608_v54, %v6903_v58 }
 0xd55   :  { %v2601_v43 = vpop.permute.xlu1 %2600  ;;  %v6980_v18 = vpop.permute.xlu0 %2416 }
 0xd56   :  { %v2612_v12 = vmul.f32 %v2601_v43, %v2591_v35  ;;  %v2419_v45 = vmul.f32 %v6980_v18, %v6896_v32 }
 0xd58   :  { %v6978_v37 = vadd.f32 %v2613_v24, %v2612_v12 }
 0xd59   :  { %v6982_v47 = vpop.permute.xlu1 %2409 }
 0xdc0   :  { %v2404_v52 = vpop.permute.xlu0 %2403 }
 0xdc1   :  { %v2406_v44 = vmul.f32 %v6326_v53, %v2404_v52 }
 0xdc3   :  { %v2412_v46 = vmul.f32 %v6982_v47, %v2406_v44 }
 0xdc4   :  { %v2595_v49 = vpop.permute.xlu1 %2594 }
 0xdc5   :  { %v2597_v34 = vmul.f32 %v6328_v56, %v2595_v49  ;;  %v6987_v51 = vadd.f32 %v2419_v45, %v2412_v46  ;;  %v5281_v56 = vld [vmem:[%s7823_s0 + $0xa] sm:$0x3] }
 0xdc7   :  { %v2603_v30 = vmul.f32 %v2601_v43, %v2597_v34  ;;  %2773 = vrot.lane.b32.xlu0 %v6987_v51, %s6388_s16 }
 0xdc9   :  { %v6992_v55 = vadd.f32 %v2610_v22, %v2603_v30  ;;  %v5280_v22 = vld [vmem:[%s7827_s1 + $0x4] sm:$0x3] }
 0xdcb   :  { %v6995_v27 = vmul.f32 %v6992_v55, %v2601_v43 }
 0xdcd   :  { %2695 = vrot.lane.b32.xlu1 %v6995_v27, %s6388_s16 }
 0xdd1   :  { %2964 = vrot.lane.b32.xlu1 %v6992_v55, %s6388_s16 }
 0xe39   :  { %v2774_v53 = vpop.permute.xlu0 %2773 }
 0xe3a   :  { %5770 = vmatmul.mubr.msk.f32.vlgmr.msra.gmra.mrb[30].mxu1 %vm62_vm2, %v2774_v53  ;;  %v3142_v53 = vsub.f32 1.0, %v5280_v22 }
 0xe3b   :  { %6121 = vmatpush3.bf16.msra.mxu1 %v6505_v14  ;;  %5787 = vmatprep.mubr.msk.f32.mxu1 %vm6384_vm0, %v6385_v4 }
 0xe3c   :  { %6122 = vmatprep.subr.bf16.mxu1 %v6383_v0 }
 0xe3f   :  { %v2696_v58 = vpop.permute.xlu1 %2695  ;;  %6124 = vmatpush3.bf16.msra.mxu1 %v6516_v17 }
 0xe40   :  { %5759 = vmatmul.mubr.msk.f32.vlgmr.msra.gmra.mrb[18].mxu0 %vm62_vm2, %v2696_v58  ;;  %6134 = vmatprep.subr.bf16.mxu1 %v6383_v0 }
 0xe41   :  { %6118 = vmatpush3.bf16.msra.mxu0 %v6482_v9  ;;  %5776 = vmatprep.mubr.msk.f32.mxu0 %vm6384_vm0, %v6385_v4 }
 0xe42   :  { %6125 = vmatprep.subr.bf16.mxu0 %v6383_v0 }
 0xe43   :  { %v2965_v60 = vpop.permute.xlu1 %2964 }
 0xe44   :  { %5777 = vmatmul.mubr.msk.f32.vlgmr.msra.gmra.mrb[20].mxu0 %vm136_vm1, %v5281_v56  ;;  %5788 = vmatmul.mubr.msk.f32.vlgmr.msra.gmra.mrb[32].mxu1 %vm62_vm2, %v2965_v60  ;;  %v5279_v60 = vld [vmem:[%s7827_s1 + $0xa] sm:$0x3] }
 0xe45   :  { %6127 = vmatpush3.bf16.msra.mxu0 %v6528_v20  ;;  %5794 = vmatprep.mubr.msk.f32.mxu0 %vm6384_vm0, %v6385_v4 }
 0xe46   :  { %6136 = vmatpush3.bf16.msra.mxu1 %v6468_v5  ;;  %6128 = vmatprep.subr.bf16.mxu0 %v6383_v0 }
 0xe47   :  { %6137 = vmatprep.subr.bf16.mxu1 %v6383_v0  ;;  %5816 = vmatprep.mubr.msk.f32.mxu1 %vm6384_vm0, %v6385_v4 }
 0xe48   :  { %5795 = vmatmul.mubr.msk.f32.vlgmr.msra.gmra.mrb[22].mxu0 %vm136_vm1, %v5285_v62 }
 0xe49   :  { %6130 = vmatpush3.bf16.msra.mxu0 %v6578_v3  ;;  %5805 = vmatprep.mubr.msk.f32.mxu0 %vm6384_vm0, %v6385_v4 }
 0xe4a   :  { %6139 = vmatpush3.bf16.msra.mxu1 %v6485_v10  ;;  %6131 = vmatprep.subr.bf16.mxu0 %v6383_v0 }
 0xe4b   :  { %6143 = vmatprep.subr.bf16.mxu1 %v6383_v0 }
 0xe4d   :  { %6133 = vmatpush3.bf16.msra.mxu0 %v6584_v7 }
 0xe4e   :  { %6140 = vmatprep.subr.bf16.mxu0 %v6383_v0 }
 0xf0d   :  { %v2843_v61 = vpop.f32.mrb[30].mxu1 }
 0xf0e   :  { %v5771_v2 = vpop.f32.mrb[31].mxu1 }
 0xf0f   :  { %v2421_v2 = vmul.f32 %v6982_v47, %v6973_v28 }
 0xf17   :  { %v2916_v38 = vpop.f32.mrb[20].mxu0  ;;  %v3034_v6 = vpop.f32.mrb[32].mxu1 }
 0xf18   :  { %v2917_v8 = vadd.f32 %v2916_v38, %v2843_v61  ;;  %v5778_v16 = vpop.f32.mrb[21].mxu0  ;;  %v5789_v25 = vpop.f32.mrb[33].mxu1  ;;  %v2951_v61 = vsub.f32 1.0, %v5279_v60  ;;  %v2422_v38 = vmul.f32 %v6980_v18, %v6968_v13 }
 0xf1a   :  { %v2920_v29 = vadd.f32 %v7041_v26, %v2917_v8 }
 0xf1b   :  { %v3107_v42 = vpop.f32.mrb[22].mxu0 }
 0xf1c   :  { %6333 = vtanh.f32 %v2920_v29  ;;  %v3108_v15 = vadd.f32 %v3107_v42, %v3034_v6  ;;  %v5796_v35 = vpop.f32.mrb[23].mxu0  ;;  %v5284_v24 = vmul.f32 -1.442695, %v2920_v29  ;;  %v7064_v6 = vadd.f32 %v2422_v38, %v2421_v2 }
 0xf1e   :  { %v3111_v11 = vadd.f32 %v7047_v33, %v3108_v15 }
 0xf20   :  { %6335 = vtanh.f32 %v3111_v11  ;;  %v5288_v12 = vmul.f32 -1.442695, %v3111_v11 }
 0xf21   :  { %6337 = vpow2.f32 %v5284_v24 }
 0xf22   :  { %6339 = vpow2.f32 %v5288_v12 }
 0xf26   :  { %v6334_v54 = vpop.eup %6333 }
 0xf27   :  { %2930 = vrot.lane.b32.xlu1 %v6334_v54, %s6387_s13 }
 0xf2a   :  { %v6336_v43 = vpop.eup %6335 }
 0xf2b   :  { %3121 = vrot.lane.b32.xlu0 %v6336_v43, %s6387_s13  ;;  %v6338_v52 = vpop.eup %6337 }
 0xf2c   :  { %v2924_v44 = vadd.f32 1.0, %v6338_v52  ;;  %v6340_v45 = vpop.eup %6339 }
 0xf2d   :  { %v3115_v46 = vadd.f32 1.0, %v6340_v45 }
 0xf2e   :  { %6341 = vrcp.f32 %v2924_v44 }
 0xf2f   :  { %6343 = vrcp.f32 %v3115_v46 }
 0xf38   :  { %v6342_v49 = vpop.eup %6341 }
 0xf39   :  { %v6344_v58 = vpop.eup %6343  ;;  %v2928_v8 = vmul.f32 %v6342_v49, %v7064_v6 }
 0xf3a   :  { %v3119_v29 = vmul.f32 %v6344_v58, %v6978_v37 }
 0xf99   :  { %v2931_v34 = vpop.permute.xlu1 %2930 }
 0xf9a   :  { %v2933_v30 = vmul.f32 %v6342_v49, %v2931_v34 }
 0xf9c   :  { %2935 = vrot.lane.b32.xlu1 %v2933_v30, %s6388_s16 }
 0xf9d   :  { %v3122_v56 = vpop.permute.xlu0 %3121 }
 0xf9e   :  { %v3124_v62 = vmul.f32 %v6344_v58, %v3122_v56 }
 0xfa0   :  { %3145 = vperm.xlu1 %6252, %v3142_v53   ;;  %3126 = vrot.lane.b32.xlu0 %v3124_v62, %s6388_s16 }
 0xfa4   :  { %2954 = vperm.xlu1 %6252, %v2951_v61   ;;  %3138 = vperm.xlu0 %6251, %v5280_v22   ;;  %v5296_v61 = vld [vmem:[%s7823_s0 + $0x2] sm:$0x3] }
 0xfa8   :  { %2947 = vperm.xlu0 %6251, %v5279_v60  }
0x100e   :  { %v2936_v16 = vpop.permute.xlu1 %2935 }
0x100f   :  { %v7067_v25 = vadd.f32 %v2936_v16, %v2928_v8 }
0x1011   :  { %6345 = vtanh.f32 %v7067_v25 }
0x1012   :  { %v3127_v42 = vpop.permute.xlu0 %3126 }
0x1013   :  { %v3129_v15 = vadd.f32 %v3127_v42, %v3119_v29 }
0x1015   :  { %6347 = vtanh.f32 %v3129_v15 }
0x101b   :  { %v6346_v35 = vpop.eup %6345 }
0x101c   :  { %2941 = vrot.lane.b32.xlu1 %v6346_v35, %s6387_s13 }
0x101f   :  { %v6348_v28 = vpop.eup %6347  ;;  %v3146_v13 = vpop.permute.xlu1 %3145 }
0x1020   :  { %3132 = vrot.lane.b32.xlu0 %v6348_v28, %s6387_s13  ;;  %v3151_v11 = vmul.f32 %v3146_v13, %v6978_v37  ;;  %v3148_v37 = vmul.f32 %v3146_v13, %v6992_v55 }
0x1023   :  { %v3139_v18 = vpop.permute.xlu0 %3138  ;;  %v7076_v24 = vpop.permute.xlu1 %2954 }
0x1024   :  { %v3150_v54 = vmul.f32 %v3139_v18, %v3129_v15  ;;  %v2957_v45 = vmul.f32 %v7076_v24, %v6987_v51 }
0x1026   :  { %v7074_v43 = vadd.f32 %v3151_v11, %v3150_v54 }
0x1027   :  { %v7078_v12 = vpop.permute.xlu0 %2947 }
0x108e   :  { %v2942_v52 = vpop.permute.xlu1 %2941 }
0x108f   :  { %v2944_v44 = vmul.f32 %v6342_v49, %v2942_v52 }
0x1091   :  { %v2950_v46 = vmul.f32 %v7078_v12, %v2944_v44 }
0x1092   :  { %v3133_v34 = vpop.permute.xlu0 %3132 }
0x1093   :  { %v3135_v22 = vmul.f32 %v6344_v58, %v3133_v34  ;;  %v7083_v30 = vadd.f32 %v2957_v45, %v2950_v46  ;;  %v5292_v58 = vld [vmem:[%s7823_s0 + $0xc] sm:$0x3] }
0x1095   :  { %v3141_v53 = vmul.f32 %v3139_v18, %v3135_v22  ;;  %3311 = vrot.lane.b32.xlu1 %v7083_v30, %s6388_s16 }
0x1097   :  { %v7088_v56 = vadd.f32 %v3148_v37, %v3141_v53  ;;  %v5291_v53 = vld [vmem:[%s7827_s1 + $0x2] sm:$0x3] }
0x1099   :  { %v7091_v60 = vmul.f32 %v7088_v56, %v3139_v18 }
0x109b   :  { %3233 = vrot.lane.b32.xlu0 %v7091_v60, %s6388_s16 }
0x109f   :  { %3502 = vrot.lane.b32.xlu0 %v7088_v56, %s6388_s16 }
0x1107   :  { %v3312_v49 = vpop.permute.xlu1 %3311 }
0x1108   :  { %5817 = vmatmul.mubr.msk.f32.vlgmr.msra.gmra.mrb[34].mxu1 %vm62_vm2, %v3312_v49 }
0x1109   :  { %6145 = vmatpush3.bf16.msra.mxu1 %v6505_v14  ;;  %5834 = vmatprep.mubr.msk.f32.mxu1 %vm6384_vm0, %v6385_v4 }
0x110a   :  { %6146 = vmatprep.subr.bf16.mxu1 %v6383_v0 }
0x110d   :  { %v3234_v55 = vpop.permute.xlu0 %3233  ;;  %6148 = vmatpush3.bf16.msra.mxu1 %v6516_v17 }
0x110e   :  { %5806 = vmatmul.mubr.msk.f32.vlgmr.msra.gmra.mrb[24].mxu0 %vm62_vm2, %v3234_v55  ;;  %6158 = vmatprep.subr.bf16.mxu1 %v6383_v0  ;;  %v3680_v55 = vsub.f32 1.0, %v5291_v53 }
0x110f   :  { %6142 = vmatpush3.bf16.msra.mxu0 %v6482_v9  ;;  %5823 = vmatprep.mubr.msk.f32.mxu0 %vm6384_vm0, %v6385_v4 }
0x1110   :  { %6149 = vmatprep.subr.bf16.mxu0 %v6383_v0 }
0x1111   :  { %v3503_v62 = vpop.permute.xlu0 %3502 }
0x1112   :  { %5824 = vmatmul.mubr.msk.f32.vlgmr.msra.gmra.mrb[26].mxu0 %vm136_vm1, %v5292_v58  ;;  %5835 = vmatmul.mubr.msk.f32.vlgmr.msra.gmra.mrb[36].mxu1 %vm62_vm2, %v3503_v62 }
0x1113   :  { %6151 = vmatpush3.bf16.msra.mxu0 %v6528_v20  ;;  %5841 = vmatprep.mubr.msk.f32.mxu0 %vm6384_vm0, %v6385_v4 }
0x1114   :  { %6160 = vmatpush3.bf16.msra.mxu1 %v6468_v5  ;;  %6152 = vmatprep.subr.bf16.mxu0 %v6383_v0 }
0x1115   :  { %6161 = vmatprep.subr.bf16.mxu1 %v6383_v0  ;;  %5863 = vmatprep.mubr.msk.f32.mxu1 %vm6384_vm0, %v6385_v4 }
0x1116   :  { %5842 = vmatmul.mubr.msk.f32.vlgmr.msra.gmra.mrb[28].mxu0 %vm136_vm1, %v5296_v61  ;;  %v5290_v61 = vld [vmem:[%s7827_s1 + $0xc] sm:$0x3] }
0x1117   :  { %6154 = vmatpush3.bf16.msra.mxu0 %v6578_v3  ;;  %5852 = vmatprep.mubr.msk.f32.mxu0 %vm6384_vm0, %v6385_v4 }
0x1118   :  { %6163 = vmatpush3.bf16.msra.mxu1 %v6485_v10  ;;  %6155 = vmatprep.subr.bf16.mxu0 %v6383_v0 }
0x1119   :  { %6167 = vmatprep.subr.bf16.mxu1 %v6383_v0 }
0x111b   :  { %6157 = vmatpush3.bf16.msra.mxu0 %v6584_v7 }
0x111c   :  { %6164 = vmatprep.subr.bf16.mxu0 %v6383_v0 }
0x11db   :  { %v3381_v5 = vpop.f32.mrb[34].mxu1 }
0x11dc   :  { %v5818_v2 = vpop.f32.mrb[35].mxu1 }
0x11dd   :  { %v3489_v2 = vsub.f32 1.0, %v5290_v61 }
0x11e5   :  { %v3454_v38 = vpop.f32.mrb[26].mxu0  ;;  %v3572_v8 = vpop.f32.mrb[36].mxu1 }
0x11e6   :  { %v3455_v16 = vadd.f32 %v3454_v38, %v3381_v5  ;;  %v5825_v29 = vpop.f32.mrb[27].mxu0  ;;  %v5836_v42 = vpop.f32.mrb[37].mxu1  ;;  %v2959_v38 = vmul.f32 %v7078_v12, %v7067_v25 }
0x11e8   :  { %v3458_v15 = vadd.f32 %v7041_v26, %v3455_v16 }
0x11e9   :  { %v3645_v35 = vpop.f32.mrb[28].mxu0 }
0x11ea   :  { %6349 = vtanh.f32 %v3458_v15  ;;  %v3646_v10 = vadd.f32 %v3645_v35, %v3572_v8  ;;  %v5843_v28 = vpop.f32.mrb[29].mxu0  ;;  %v5295_v54 = vmul.f32 -1.442695, %v3458_v15  ;;  %v2960_v8 = vmul.f32 %v7076_v24, %v7064_v6 }
0x11ec   :  { %v3649_v13 = vadd.f32 %v7047_v33, %v3646_v10  ;;  %v7150_v16 = vadd.f32 %v2960_v8, %v2959_v38 }
0x11ee   :  { %6351 = vtanh.f32 %v3649_v13  ;;  %v5299_v52 = vmul.f32 -1.442695, %v3649_v13 }
0x11ef   :  { %6353 = vpow2.f32 %v5295_v54 }
0x11f0   :  { %6355 = vpow2.f32 %v5299_v52 }
0x11f4   :  { %v6350_v18 = vpop.eup %6349 }
0x11f5   :  { %3468 = vrot.lane.b32.xlu0 %v6350_v18, %s6387_s13 }
0x11f8   :  { %v6352_v11 = vpop.eup %6351 }
0x11f9   :  { %3659 = vrot.lane.b32.xlu1 %v6352_v11, %s6387_s13  ;;  %v6354_v44 = vpop.eup %6353 }
0x11fa   :  { %v3462_v45 = vadd.f32 1.0, %v6354_v44  ;;  %v6356_v46 = vpop.eup %6355 }
0x11fb   :  { %v3653_v34 = vadd.f32 1.0, %v6356_v46 }
0x11fc   :  { %6357 = vrcp.f32 %v3462_v45 }
0x11fd   :  { %6359 = vrcp.f32 %v3653_v34 }
0x1206   :  { %v6358_v22 = vpop.eup %6357 }
0x1207   :  { %v6360_v58 = vpop.eup %6359  ;;  %v3466_v29 = vmul.f32 %v6358_v22, %v7150_v16 }
0x1208   :  { %v3657_v35 = vmul.f32 %v6360_v58, %v7074_v43 }
0x1267   :  { %v3469_v37 = vpop.permute.xlu0 %3468 }
0x1268   :  { %v3471_v49 = vmul.f32 %v6358_v22, %v3469_v37 }
0x126a   :  { %3473 = vrot.lane.b32.xlu0 %v3471_v49, %s6388_s16 }
0x126b   :  { %v3660_v62 = vpop.permute.xlu1 %3659 }
0x126c   :  { %v3662_v5 = vmul.f32 %v6360_v58, %v3660_v62 }
0x126e   :  { %3683 = vperm.xlu0 %6251, %v3680_v55   ;;  %3664 = vrot.lane.b32.xlu1 %v3662_v5, %s6388_s16 }
0x1272   :  { %3492 = vperm.xlu0 %6251, %v3489_v2   ;;  %3676 = vperm.xlu1 %6252, %v5291_v53  }
0x1276   :  { %3485 = vperm.xlu1 %6252, %v5290_v61  }
0x12dc   :  { %v3474_v42 = vpop.permute.xlu0 %3473 }
0x12dd   :  { %v7153_v15 = vadd.f32 %v3474_v42, %v3466_v29 }
0x12df   :  { %6361 = vtanh.f32 %v7153_v15 }
0x12e0   :  { %v3665_v10 = vpop.permute.xlu1 %3664 }
0x12e1   :  { %v3667_v28 = vadd.f32 %v3665_v10, %v3657_v35 }
0x12e3   :  { %6363 = vtanh.f32 %v3667_v28 }
0x12e9   :  { %v6362_v13 = vpop.eup %6361 }
0x12ea   :  { %3479 = vrot.lane.b32.xlu0 %v6362_v13, %s6387_s13 }
0x12ed   :  { %v6364_v25 = vpop.eup %6363  ;;  %v3684_v6 = vpop.permute.xlu0 %3683 }
0x12ee   :  { %3670 = vrot.lane.b32.xlu1 %v6364_v25, %s6387_s13  ;;  %v3689_v18 = vmul.f32 %v3684_v6, %v7074_v43  ;;  %v3686_v43 = vmul.f32 %v3684_v6, %v7088_v56  ;;  %v3846_v6 = vld [vmem:[%s7827_s1] sm:$0x3] }
0x12f1   :  { %v3677_v24 = vpop.permute.xlu1 %3676  ;;  %v7162_v52 = vpop.permute.xlu0 %3492 }
0x12f2   :  { %v3688_v11 = vmul.f32 %v3677_v24, %v3667_v28  ;;  %v3495_v34 = vmul.f32 %v7162_v52, %v7083_v30 }
0x12f4   :  { %v7160_v54 = vadd.f32 %v3689_v18, %v3688_v11 }
0x12f5   :  { %v7164_v44 = vpop.permute.xlu1 %3485 }
0x135c   :  { %v3480_v45 = vpop.permute.xlu0 %3479 }
0x135d   :  { %v3482_v46 = vmul.f32 %v6358_v22, %v3480_v45 }
0x135f   :  { %v3488_v37 = vmul.f32 %v7164_v44, %v3482_v46 }
0x1360   :  { %v3671_v53 = vpop.permute.xlu1 %3670 }
0x1361   :  { %v3673_v49 = vmul.f32 %v6360_v58, %v3671_v53  ;;  %v7169_v55 = vadd.f32 %v3495_v34, %v3488_v37  ;;  %v5302_v58 = vld [vmem:[%s7823_s0 + $0xe] sm:$0x3] }
0x1363   :  { %v3679_v62 = vmul.f32 %v3677_v24, %v3673_v49  ;;  %3849 = vrot.lane.b32.xlu0 %v7169_v55, %s6388_s16 }
0x1365   :  { %v7174_v61 = vadd.f32 %v3686_v43, %v3679_v62  ;;  %v4218_v62 = vsub.f32 1.0, %v3846_v6 }
0x1367   :  { %v7177_v5 = vmul.f32 %v7174_v61, %v3677_v24 }
0x1369   :  { %3771 = vrot.lane.b32.xlu1 %v7177_v5, %s6388_s16 }
0x136d   :  { %4040 = vrot.lane.b32.xlu1 %v7174_v61, %s6388_s16 }
0x13d5   :  { %v3850_v22 = vpop.permute.xlu0 %3849 }
0x13d6   :  { %5864 = vmatmul.mubr.msk.f32.vlgmr.msra.gmra.mrb[38].mxu1 %vm62_vm2, %v3850_v22  ;;  %v5301_v22 = vld [vmem:[%s7827_s1 + $0xe] sm:$0x3] }
0x13d7   :  { %6169 = vmatpush3.bf16.msra.mxu1 %v6505_v14  ;;  %5881 = vmatprep.mubr.msk.f32.mxu1 %vm6384_vm0, %v6385_v4 }
0x13d8   :  { %6170 = vmatprep.subr.bf16.mxu1 %v6383_v0 }
0x13db   :  { %v3772_v56 = vpop.permute.xlu1 %3771  ;;  %6172 = vmatpush3.bf16.msra.mxu1 %v6516_v17 }
0x13dc   :  { %5853 = vmatmul.mubr.msk.f32.vlgmr.msra.gmra.mrb[30].mxu0 %vm62_vm2, %v3772_v56  ;;  %v3497_v56 = vmul.f32 %v7164_v44, %v7153_v15 }
0x13dd   :  { %6166 = vmatpush3.bf16.msra.mxu0 %v6482_v9  ;;  %5870 = vmatprep.mubr.msk.f32.mxu0 %vm6384_vm0, %v6385_v4  ;;  %v4038_v9 = vld [vmem:[%s7823_s0] sm:$0x3] }
0x13de   :  { %6173 = vmatprep.subr.bf16.mxu0 %v6383_v0 }
0x13df   :  { %v4041_v14 = vpop.permute.xlu1 %4040 }
0x13e0   :  { %5871 = vmatmul.mubr.msk.f32.vlgmr.msra.gmra.mrb[32].mxu0 %vm136_vm1, %v5302_v58  ;;  %5882 = vmatmul.mubr.msk.f32.vlgmr.msra.gmra.mrb[40].mxu1 %vm62_vm2, %v4041_v14  ;;  %v3498_v58 = vmul.f32 %v7162_v52, %v7150_v16  ;;  %v6389_v52 = vmov 1966171168  }
0x13e1   :  { %6175 = vmatpush3.bf16.msra.mxu0 %v6528_v20  ;;  %5888 = vmatprep.mubr.msk.f32.mxu0 %vm6384_vm0, %v6385_v4 }
0x13e2   :  { %6176 = vmatprep.subr.bf16.mxu0 %v6383_v0 }
0x13e4   :  { %5889 = vmatmul.mubr.msk.f32.vlgmr.msra.gmra.mrb[34].mxu0 %vm136_vm1, %v4038_v9 }
0x13e5   :  { %6178 = vmatpush3.bf16.msra.mxu0 %v6578_v3  ;;  %5899 = vmatprep.mubr.msk.f32.mxu0 %vm6384_vm0, %v6385_v4 }
0x13e6   :  { %6179 = vmatprep.subr.bf16.mxu0 %v6383_v0 }
0x13e9   :  { %6181 = vmatpush3.bf16.msra.mxu0 %v6584_v7 }
0x13ea   :  { %6182 = vmatprep.subr.bf16.mxu0 %v6383_v0 }
0x14a9   :  { %v3919_v17 = vpop.f32.mrb[38].mxu1 }
0x14aa   :  { %v5865_v20 = vpop.f32.mrb[39].mxu1 }
0x14ab   :  { %v7237_v20 = vadd.f32 %v3498_v58, %v3497_v56 }
0x14b3   :  { %v3992_v2 = vpop.f32.mrb[32].mxu0  ;;  %v4110_v38 = vpop.f32.mrb[40].mxu1 }
0x14b4   :  { %v3993_v8 = vadd.f32 %v3992_v2, %v3919_v17  ;;  %v5872_v29 = vpop.f32.mrb[33].mxu0  ;;  %v5883_v42 = vpop.f32.mrb[41].mxu1 }
0x14b5   :  { %v4027_v29 = vsub.f32 1.0, %v5301_v22  ;;  %v453_v42 = vunpack.c.l.s4 %v6389_v52 }
0x14b6   :  { %v3996_v13 = vadd.f32 %v7041_v26, %v3993_v8 }
0x14b7   :  { %v4183_v35 = vpop.f32.mrb[34].mxu0 }
0x14b8   :  { %v4184_v10 = vadd.f32 %v4183_v35, %v4110_v38  ;;  %v5890_v28 = vpop.f32.mrb[35].mxu0  ;;  %v5305_v18 = vmul.f32 -1.442695, %v3996_v13  ;;  %v455_v35 = vlaneseq }
0x14ba   :  { %v4187_v3 = vadd.f32 %v7047_v33, %v4184_v10  ;;  %v449_v10 = vmul.f32 %v6625_v31, %v6597_v19  ;;  %v2615_v31 = vmul.f32 %v6987_v51, %v6982_v47 }
0x14bc   :  { %6365 = vtanh.f32 %v4187_v3  ;;  %v5308_v24 = vmul.f32 -1.442695, %v4187_v3 }
0x14bd   :  { %6367 = vtanh.f32 %v3996_v13  ;;  %v454_v13 = vunpack.c.0.s8 %v453_v42 }
0x14be   :  { %6369 = vpow2.f32 %v5308_v24 }
0x14bf   :  { %6371 = vpow2.f32 %v5305_v18  ;;  %v1535_v18 = vmul.f32 %v6822_v23, %v6791_v63  ;;  %v7271_v63 = vmul.f32 %v7169_v55, %v7164_v44 }
0x14c6   :  { %v6366_v25 = vpop.eup %6365 }
0x14c7   :  { %4197 = vrot.lane.b32.xlu0 %v6366_v25, %s6387_s13  ;;  %v6368_v7 = vpop.eup %6367  ;;  %v456_v25 = vshrl.u32 %v455_v35, 7 }
0x14c8   :  { %v6370_v33 = vpop.eup %6369 }
0x14c9   :  { %v4191_v11 = vadd.f32 1.0, %v6370_v33  ;;  %v6372_v26 = vpop.eup %6371  ;;  %v7254_v33 = vsub.s32 %v454_v13, %v456_v25  ;;  %v7277_v47 = vsub.s32 0, %v456_v25 }
0x14ca   :  { %v4000_v45 = vadd.f32 1.0, %v6372_v26 }
0x14cb   :  { %4006 = vrot.lane.b32.xlu0 %v6368_v7, %s6387_s13  ;;  %6373 = vrcp.f32 %v4191_v11  ;;  %v7258_v19 = vrot.slane %v449_v10, %v7254_v33  ;;  %v993_v11 = vmul.f32 %v6721_v48, %v6690_v39  ;;  %v7288_v48 = vrot.slane %v6694_v40, %v7254_v33 }
0x14cc   :  { %6375 = vrcp.f32 %v4000_v45  ;;  %v7303_v40 = vrot.slane %v6795_v1, %v7254_v33  ;;  %v7320_v1 = vrot.slane %v6907_v59, %v7254_v33 }
0x14cd   :  { %v466_v23 = vrot.slane %v7258_v19, %v7254_v33  ;;  %v1049_v45 = vrot.slane %v7288_v48, %v7254_v33 }
0x14cf   :  { %4214 = vperm.xlu0 %6251, %v3846_v6   ;;  %v477_v39 = vrot.slane %v466_v23, %v7277_v47 }
0x14d5   :  { %v7220_v46 = vpop.eup %6373 }
0x14d6   :  { %v7224_v53 = vpop.eup %6375  ;;  %v4195_v14 = vmul.f32 %v7220_v46, %v7160_v54 }
0x14d7   :  { %v4004_v2 = vmul.f32 %v7224_v53, %v7237_v20 }
0x1539   :  { %v4198_v34 = vpop.permute.xlu0 %4197 }
0x153a   :  { %v4200_v37 = vmul.f32 %v7220_v46, %v4198_v34  ;;  %v7297_v34 = vrot.slane %v1535_v18, %v7254_v33 }
0x153c   :  { %4202 = vrot.lane.b32.xlu1 %v4200_v37, %s6388_s16 }
0x153d   :  { %v4007_v49 = vpop.permute.xlu0 %4006 }
0x153e   :  { %v4009_v43 = vmul.f32 %v7224_v53, %v4007_v49  ;;  %v2077_v49 = vmul.f32 %v6896_v32, %v6891_v50 }
0x1540   :  { %4011 = vrot.lane.b32.xlu1 %v4009_v43, %s6388_s16  ;;  %v1060_v43 = vrot.slane %v1049_v45, %v7277_v47  ;;  %v7314_v56 = vrot.slane %v2077_v49, %v7254_v33 }
0x1542   :  { %v2094_v32 = vrot.slane %v7314_v56, %v7254_v33 }
0x1544   :  { %4221 = vperm.xlu1 %6252, %v4218_v62   ;;  %v1552_v62 = vrot.slane %v7297_v34, %v7254_v33 }
0x1546   :  { %v1563_v58 = vrot.slane %v1552_v62, %v7277_v47 }
0x1548   :  { %4023 = vperm.xlu1 %6252, %v5301_v22   ;;  %v1591_v22 = vrot.slane %v7303_v40, %v7254_v33 }
0x154a   :  { %v1602_v50 = vrot.slane %v1591_v22, %v7277_v47  ;;  %v7415_v22 = vrot.slane %v7271_v63, %v7254_v33 }
0x154e   :  { %v4215_v28 = vpop.permute.xlu0 %4214 }
0x15ae   :  { %v4203_v9 = vpop.permute.xlu1 %4202 }
0x15af   :  { %v4205_v17 = vadd.f32 %v4203_v9, %v4195_v14  ;;  %v2133_v14 = vrot.slane %v7320_v1, %v7254_v33  ;;  %v2105_v9 = vrot.slane %v2094_v32, %v7277_v47 }
0x15b1   :  { %6377 = vtanh.f32 %v4205_v17  ;;  %v4226_v7 = vmul.f32 %v4215_v28, %v4205_v17  ;;  %v2144_v17 = vrot.slane %v2133_v14, %v7277_v47  ;;  %v7430_v14 = vrot.slane %v7177_v5, %v7254_v33 }
0x15b2   :  { %v4012_v38 = vpop.permute.xlu1 %4011 }
0x15b3   :  { %v7241_v8 = vadd.f32 %v4012_v38, %v4004_v2 }
0x15b5   :  { %6379 = vtanh.f32 %v7241_v8 }
0x15bb   :  { %v6378_v15 = vpop.eup %6377 }
0x15bc   :  { %4208 = vrot.lane.b32.xlu0 %v6378_v15, %s6387_s13 }
0x15bf   :  { %v6380_v16 = vpop.eup %6379 }
0x15c0   :  { %4017 = vrot.lane.b32.xlu1 %v6380_v16, %s6387_s13  ;;  %4030 = vperm.xlu0 %6251, %v4027_v29  }
0x15c3   :  { %v4222_v3 = vpop.permute.xlu1 %4221 }
0x15c4   :  { %v4227_v6 = vmul.f32 %v4222_v3, %v7160_v54  ;;  %4383 = vrot.lane.b32.xlu1 %v449_v10, %s6388_s16  ;;  %v7265_v54 = vrot.slane %v6601_v21, %v7254_v33  ;;  %v7282_v21 = vrot.slane %v993_v11, %v7254_v33  ;;  %v4224_v15 = vmul.f32 %v4222_v3, %v7174_v61 }
0x15c5   :  { %v7350_v61 = vrot.slane %v2615_v31, %v7254_v33 }
0x15c6   :  { %v7250_v24 = vadd.f32 %v4227_v6, %v4226_v7  ;;  %v506_v51 = vrot.slane %v7265_v54, %v7254_v33  ;;  %v1010_v26 = vrot.slane %v7282_v21, %v7254_v33  ;;  %v3153_v7 = vmul.f32 %v7083_v30, %v7078_v12 }
0x15c7   :  { %v7332_v59 = vpop.permute.xlu1 %4023  ;;  %v7366_v6 = vrot.slane %v6995_v27, %v7254_v33  ;;  %v499_v12 = vcombine.high %v7265_v54, %v7265_v54 }
0x15c8   :  { %4586 = vrot.lane.b32.xlu1 %v1535_v18, %s6388_s16  ;;  %v517_v44 = vrot.slane %v506_v51, %v7277_v47  ;;  %v1021_v37 = vrot.slane %v1010_v26, %v7277_v47  ;;  %v7396_v26 = vrot.slane %v7091_v60, %v7254_v33 }
0x15c9   :  { %v2671_v27 = vrot.slane %v7366_v6, %v7254_v33 }
0x15ca   :  { %v3209_v62 = vrot.slane %v7396_v26, %v7254_v33 }
0x15cc   :  { %4788 = vrot.lane.b32.xlu1 %v2615_v31, %s6388_s16 }
0x15d0   :  { %4990 = vrot.lane.b32.xlu1 %v7271_v63, %s6388_s16  ;;  %v1545_v63 = vcombine.high %v7297_v34, %v7297_v34  ;;  %v1584_v34 = vcombine.high %v7303_v40, %v7303_v40 }
0x15d4   :  { %482 = vrot.lane.b32.xlu1 %v477_v39, %s6388_s16  ;;  %v513_v39 = vrot.slane %v499_v12, %v7254_v33 }
0x15d6   :  { %v521_v60 = vrot.slane %v513_v39, %v7277_v47 }
0x15d8   :  { %522 = vrot.lane.b32.xlu1 %v517_v44, %s6387_s13  ;;  %v1003_v44 = vcombine.high %v7282_v21, %v7282_v21  ;;  %v1042_v21 = vcombine.high %v7288_v48, %v7288_v48 }
0x15da   :  { %v1056_v32 = vrot.slane %v1042_v21, %v7254_v33 }
0x15dc   :  { %1026 = vrot.lane.b32.xlu1 %v1021_v37, %s6388_s16  ;;  %v2682_v37 = vrot.slane %v2671_v27, %v7277_v47  ;;  %v1064_v5 = vrot.slane %v1056_v32, %v7277_v47 }
0x15e0   :  { %1065 = vrot.lane.b32.xlu1 %v1060_v43, %s6387_s13  ;;  %v1017_v43 = vrot.slane %v1003_v44, %v7254_v33 }
0x15e2   :  { %v1025_v48 = vrot.slane %v1017_v43, %v7277_v47 }
0x15e4   :  { %1568 = vrot.lane.b32.xlu1 %v1563_v58, %s6388_s16 }
0x15e8   :  { %1607 = vrot.lane.b32.xlu1 %v1602_v50, %s6387_s13 }
0x15ec   :  { %2110 = vrot.lane.b32.xlu1 %v2105_v9, %s6388_s16 }
0x15f0   :  { %2149 = vrot.lane.b32.xlu1 %v2144_v17, %s6387_s13  ;;  %v3220_v17 = vrot.slane %v3209_v62, %v7277_v47  ;;  %v3701_v62 = vcombine.high %v7415_v22, %v7415_v22 }
0x162e   :  { %v4209_v2 = vpop.permute.xlu0 %4208 }
0x162f   :  { %v4211_v38 = vmul.f32 %v7220_v46, %v4209_v2  ;;  %v3708_v2 = vrot.slane %v7415_v22, %v7254_v33 }
0x1631   :  { %v4217_v29 = vmul.f32 %v4215_v28, %v4211_v38  ;;  %v1559_v38 = vrot.slane %v1545_v63, %v7254_v33 }
0x1632   :  { %v4018_v16 = vpop.permute.xlu1 %4017 }
0x1633   :  { %v7336_v52 = vadd.f32 %v4224_v15, %v4217_v29  ;;  %v4020_v46 = vmul.f32 %v7224_v53, %v4018_v16  ;;  %v459_v53 = vcombine.high %v7258_v19, %v7258_v19  ;;  %v7381_v19 = vrot.slane %v3153_v7, %v7254_v33 }
0x1634   :  { %v3747_v15 = vrot.slane %v7430_v14, %v7254_v33  ;;  %v1567_v40 = vrot.slane %v1559_v38, %v7277_v47 }
0x1635   :  { %v7339_v42 = vmul.f32 %v7336_v52, %v4215_v28  ;;  %v4026_v13 = vmul.f32 %v7332_v59, %v4020_v46  ;;  %v473_v30 = vrot.slane %v459_v53, %v7254_v33  ;;  %v3719_v46 = vrot.slane %v3708_v2, %v7277_v47 }
0x1636   :  { %v7341_v35 = vpop.permute.xlu1 %4383 }
0x1637   :  { %4309 = vrot.lane.b32.xlu0 %v7339_v42, %s6388_s16  ;;  %v481_v54 = vrot.slane %v473_v30, %v7277_v47 }
0x163a   :  { %v7345_v10 = vpop.permute.xlu1 %4586 }
0x163b   :  { %4485 = vrot.lane.b32.xlu0 %v993_v11, %s6388_s16  ;;  %v2632_v11 = vrot.slane %v7350_v61, %v7254_v33 }
0x163d   :  { %v2643_v51 = vrot.slane %v2632_v11, %v7277_v47 }
0x163e   :  { %v7352_v3 = vpop.permute.xlu1 %4788 }
0x163f   :  { %4687 = vrot.lane.b32.xlu0 %v2077_v49, %s6388_s16  ;;  %v7355_v28 = vpop.permute.xlu0 %4030  ;;  %v3170_v49 = vrot.slane %v7381_v19, %v7254_v33 }
0x1640   :  { %v4033_v25 = vmul.f32 %v7355_v28, %v7169_v55  ;;  %v4036_v39 = vmul.f32 %v7355_v28, %v7237_v20 }
0x1641   :  { %v3181_v50 = vrot.slane %v3170_v49, %v7277_v47  ;;  %v2664_v49 = vcombine.high %v7366_v6, %v7366_v6 }
0x1642   :  { %v4034_v18 = vadd.f32 %v4033_v25, %v4026_v13  ;;  %v7368_v31 = vpop.permute.xlu1 %4990  ;;  %v1598_v13 = vrot.slane %v1584_v34, %v7254_v33  ;;  %v2087_v25 = vcombine.high %v7314_v56, %v7314_v56  ;;  %v2126_v56 = vcombine.high %v7320_v1, %v7320_v1  ;;  %v50_v34 = vld [vmem:[%s7828_s8] sm:$0xff] }
0x1643   :  { %4889 = vrot.lane.b32.xlu0 %v3153_v7, %s6388_s16  ;;  %v4277_v7 = vrot.slane %v7339_v42, %v7254_v33 }
0x1644   :  { %v4229_v55 = vmul.f32 %v4034_v18, %v7332_v59  ;;  %5193 = vrot.lane.b32.xlu1 %v4034_v18, %s6388_s16  ;;  %v3758_v18 = vrot.slane %v3747_v15, %v7277_v47  ;;  %v1606_v42 = vrot.slane %v1598_v13, %v7277_v47  ;;  %v52_v15 = vld [vmem:[%s7828_s8 + $0x10] sm:$0xff] }
0x1645   :  { %v4285_v27 = vrot.slane %v4277_v7, %v7254_v33  ;;  %v4278_v22 = vcombine.high %v4277_v7, %v4277_v7 }
0x1646   :  { %v483_v23 = vpop.permute.xlu1 %482  ;;  %v7448_v29 = vrot.slane %v4229_v55, %v7254_v33 }
0x1647   :  { %489 = vst.msk [vmem:[%s7829_s9] sm:$0x1] %vm488_vm3, %v483_v23  ;;  %5091 = vrot.lane.b32.xlu0 %v4229_v55, %s6388_s16  ;;  %v2101_v55 = vrot.slane %v2087_v25, %v7254_v33  ;;  %v2140_v23 = vrot.slane %v2126_v56, %v7254_v33 }
0x1648   :  { %2648 = vrot.lane.b32.xlu1 %v2643_v51, %s6388_s16  ;;  %v4246_v11 = vrot.slane %v7448_v29, %v7254_v33 }
0x1649   :  { %v2109_v1 = vrot.slane %v2101_v55, %v7277_v47  ;;  %v2148_v44 = vrot.slane %v2140_v23, %v7277_v47 }
0x164a   :  { %v523_v45 = vpop.permute.xlu1 %522  ;;  %v4257_v30 = vrot.slane %v4246_v11, %v7277_v47 }
0x164b   :  { %529 = vst.msk [vmem:[%s7829_s9 + $0x7] sm:$0x1] %vm528_vm4, %v523_v45  ;;  %484 = vrot.lane.b32.xlu0 %v481_v54, %s6388_s16  ;;  %v4296_v54 = vrot.slane %v4285_v27, %v7277_v47  ;;  %v2625_v45 = vcombine.high %v7350_v61, %v7350_v61  ;;  %v2678_v61 = vrot.slane %v2664_v49, %v7254_v33 }
0x164c   :  { %2687 = vrot.lane.b32.xlu1 %v2682_v37, %s6387_s13  ;;  %v4035_v37 = vmul.f32 %v7332_v59, %v7241_v8  ;;  %v3163_v8 = vcombine.high %v7381_v19, %v7381_v19  ;;  %v3202_v59 = vcombine.high %v7396_v26, %v7396_v26  ;;  %v3740_v19 = vcombine.high %v7430_v14, %v7430_v14 }
0x164e   :  { %v1027_v58 = vpop.permute.xlu1 %1026  ;;  %v4037_v21 = vadd.f32 %v4036_v39, %v4035_v37  ;;  %v3177_v28 = vrot.slane %v3163_v8, %v7254_v33  ;;  %v3216_v43 = vrot.slane %v3202_v59, %v7254_v33  ;;  %v3754_v32 = vrot.slane %v3740_v19, %v7254_v33 }
0x164f   :  { %1032 = vst.msk [vmem:[%s7829_s9 + $0x1] sm:$0x1] %vm488_vm3, %v1027_v58  ;;  %524 = vrot.lane.b32.xlu0 %v521_v60, %s6387_s13  ;;  %v2639_v60 = vrot.slane %v2625_v45, %v7254_v33  ;;  %v3715_v58 = vrot.slane %v3701_v62, %v7254_v33 }
0x1650   :  { %3186 = vrot.lane.b32.xlu1 %v3181_v50, %s6388_s16  ;;  %v3185_v6 = vrot.slane %v3177_v28, %v7277_v47  ;;  %v3224_v26 = vrot.slane %v3216_v43, %v7277_v47  ;;  %v4239_v50 = vcombine.high %v7448_v29, %v7448_v29  ;;  %v3762_v63 = vrot.slane %v3754_v32, %v7277_v47 }
0x1651   :  { %v2647_v20 = vrot.slane %v2639_v60, %v7277_v47 }
0x1652   :  { %v1066_v9 = vpop.permute.xlu1 %1065  ;;  %v4253_v14 = vrot.slane %v4239_v50, %v7254_v33 }
0x1653   :  { %1071 = vst.msk [vmem:[%s7829_s9 + $0x6] sm:$0x1] %vm528_vm4, %v1066_v9  ;;  %1028 = vrot.lane.b32.xlu0 %v1025_v48, %s6388_s16  ;;  %v3723_v48 = vrot.slane %v3715_v58, %v7277_v47 }
0x1654   :  { %3225 = vrot.lane.b32.xlu1 %v3220_v17, %s6387_s13  ;;  %v4261_v9 = vrot.slane %v4253_v14, %v7277_v47  ;;  %v4292_v17 = vrot.slane %v4278_v22, %v7254_v33 }
0x1656   :  { %v1569_v16 = vpop.permute.xlu1 %1568  ;;  %v4300_v2 = vrot.slane %v4292_v17, %v7277_v47 }
0x1657   :  { %1574 = vst.msk [vmem:[%s7829_s9 + $0x2] sm:$0x1] %vm488_vm3, %v1569_v16  ;;  %1067 = vrot.lane.b32.xlu0 %v1064_v5, %s6387_s13  ;;  %v51_v5 = vld [vmem:[%s7828_s8 + $0x8] sm:$0xff] }
0x1658   :  { %3724 = vrot.lane.b32.xlu1 %v3719_v46, %s6388_s16  ;;  %v7545_v38 = vpack.c.bf16 %v51_v5, %v50_v34 }
0x165a   :  { %v1608_v53 = vpop.permute.xlu1 %1607 }
0x165b   :  { %1613 = vst.msk [vmem:[%s7829_s9 + $0x5] sm:$0x1] %vm528_vm4, %v1608_v53  ;;  %1570 = vrot.lane.b32.xlu0 %v1567_v40, %s6388_s16 }
0x165c   :  { %3763 = vrot.lane.b32.xlu1 %v3758_v18, %s6387_s13 }
0x165e   :  { %v2111_v12 = vpop.permute.xlu1 %2110 }
0x165f   :  { %2116 = vst.msk [vmem:[%s7829_s9 + $0x3] sm:$0x1] %vm488_vm3, %v2111_v12  ;;  %1609 = vrot.lane.b32.xlu0 %v1606_v42, %s6387_s13 }
0x1660   :  { %4262 = vrot.lane.b32.xlu1 %v4257_v30, %s6388_s16 }
0x1662   :  { %v2150_v51 = vpop.permute.xlu1 %2149 }
0x1663   :  { %2155 = vst.msk [vmem:[%s7829_s9 + $0x4] sm:$0x1] %vm528_vm4, %v2150_v51  ;;  %2112 = vrot.lane.b32.xlu0 %v2109_v1, %s6388_s16 }
0x1664   :  { %4301 = vrot.lane.b32.xlu1 %v4296_v54, %s6387_s13 }
0x1667   :  { %2151 = vrot.lane.b32.xlu0 %v2148_v44, %s6387_s13 }
0x1668   :  { %5199 = vrot.lane.b32.xlu1 %v7336_v52, %s6387_s13  ;;  %v2686_v52 = vrot.slane %v2678_v61, %v7277_v47  ;;  %v53_v47 = vld [vmem:[%s7828_s8 + $0x18] sm:$0xff] }
0x1669   :  { %v7555_v16 = vpack.c.bf16 %v53_v47, %v52_v15 }
0x166b   :  { %5205 = vrot.lane.b32.xlu0 %v4037_v21, %s6390_s3 }
0x166f   :  { %2650 = vrot.lane.b32.xlu0 %v2647_v20, %s6388_s16 }
0x1673   :  { %2689 = vrot.lane.b32.xlu0 %v2686_v52, %s6387_s13 }
0x1677   :  { %3188 = vrot.lane.b32.xlu0 %v3185_v6, %s6388_s16 }
0x167b   :  { %3227 = vrot.lane.b32.xlu0 %v3224_v26, %s6387_s13 }
0x167f   :  { %3726 = vrot.lane.b32.xlu0 %v3723_v48, %s6388_s16 }
0x1683   :  { %3765 = vrot.lane.b32.xlu0 %v3762_v63, %s6387_s13 }
0x1687   :  { %4264 = vrot.lane.b32.xlu0 %v4261_v9, %s6388_s16 }
0x168b   :  { %4303 = vrot.lane.b32.xlu0 %v4300_v2, %s6387_s13 }
0x16a9   :  { %v4310_v29 = vpop.permute.xlu0 %4309 }
0x16aa   :  { %5900 = vmatmul.mubr.msk.f32.vlgmr.msra.gmra.mrb[36].mxu0 %vm62_vm2, %v4310_v29 }
0x16ab   :  { %6184 = vmatpush3.bf16.msra.mxu0 %v7545_v38  ;;  %5910 = vmatprep.mubr.msk.f32.mxu0 %vm6384_vm0, %v6385_v4 }
0x16ac   :  { %6185 = vmatprep.subr.bf16.mxu0 %v6383_v0 }
0x16ad   :  { %v4486_v46 = vpop.permute.xlu0 %4485 }
0x16af   :  { %6187 = vmatpush3.bf16.msra.mxu0 %v7555_v16 }
0x16b0   :  { %6188 = vmatprep.subr.bf16.mxu0 %v6383_v0 }
0x16b1   :  { %v4688_v40 = vpop.permute.xlu0 %4687 }
0x16b2   :  { %5911 = vmatmul.mubr.msk.f32.vlgmr.msra.gmra.mrb[36].mxu0 %vm62_vm2, %v7341_v35 }
0x16b3   :  { %6190 = vmatpush3.bf16.msra.mxu0 %v7545_v38  ;;  %5921 = vmatprep.mubr.msk.f32.mxu0 %vm6384_vm0, %v6385_v4 }
0x16b4   :  { %6191 = vmatprep.subr.bf16.mxu0 %v6383_v0 }
0x16b5   :  { %v4890_v13 = vpop.permute.xlu0 %4889 }
0x16b6   :  { %v5194_v25 = vpop.permute.xlu1 %5193 }
0x16b7   :  { %5197 = vst.msk [vmem:[%s7830_s11] sm:$0x3] %vm5196_vm5, %v5194_v25  ;;  %6193 = vmatpush3.bf16.msra.mxu0 %v7555_v16 }
0x16b8   :  { %6194 = vmatprep.subr.bf16.mxu0 %v6383_v0 }
0x16b9   :  { %v7574_v35 = vpop.permute.xlu0 %5091 }
0x16ba   :  { %5922 = vmatmul.mubr.msk.f32.vlgmr.msra.gmra.mrb[30].mxu0 %vm62_vm2, %v4486_v46  ;;  %v2649_v7 = vpop.permute.xlu1 %2648 }
0x16bb   :  { %2654 = vst.msk [vmem:[%s7829_s9 + $0x4] sm:$0x1] %vm488_vm3, %v2649_v7  ;;  %6196 = vmatpush3.bf16.msra.mxu0 %v7545_v38  ;;  %5932 = vmatprep.mubr.msk.f32.mxu0 %vm6384_vm0, %v6385_v4 }
0x16bc   :  { %6197 = vmatprep.subr.bf16.mxu0 %v6383_v0 }
0x16bd   :  { %v485_v53 = vpop.permute.xlu0 %484 }
0x16be   :  { %490 = vst.msk [vmem:[%s7829_s9 + $0x8] sm:$0x1] %vm488_vm3, %v485_v53  ;;  %v2688_v18 = vpop.permute.xlu1 %2687 }
0x16bf   :  { %2693 = vst.msk [vmem:[%s7829_s9 + $0x3] sm:$0x1] %vm528_vm4, %v2688_v18  ;;  %6199 = vmatpush3.bf16.msra.mxu0 %v7555_v16 }
0x16c0   :  { %6200 = vmatprep.subr.bf16.mxu0 %v6383_v0 }
0x16c1   :  { %v525_v11 = vpop.permute.xlu0 %524 }
0x16c2   :  { %5933 = vmatmul.mubr.msk.f32.vlgmr.msra.gmra.mrb[24].mxu0 %vm62_vm2, %v7345_v10  ;;  %530 = vst.msk [vmem:[%s7829_s9 + $0xf] sm:$0x1] %vm528_vm4, %v525_v11  ;;  %v3187_v56 = vpop.permute.xlu1 %3186 }
0x16c3   :  { %3192 = vst.msk [vmem:[%s7829_s9 + $0x5] sm:$0x1] %vm488_vm3, %v3187_v56  ;;  %6202 = vmatpush3.bf16.msra.mxu0 %v7545_v38  ;;  %5943 = vmatprep.mubr.msk.f32.mxu0 %vm6384_vm0, %v6385_v4 }
0x16c4   :  { %6203 = vmatprep.subr.bf16.mxu0 %v6383_v0 }
0x16c5   :  { %v1029_v42 = vpop.permute.xlu0 %1028 }
0x16c6   :  { %1033 = vst.msk [vmem:[%s7829_s9 + $0x9] sm:$0x1] %vm488_vm3, %v1029_v42  ;;  %v3226_v10 = vpop.permute.xlu1 %3225 }
0x16c7   :  { %3231 = vst.msk [vmem:[%s7829_s9 + $0x2] sm:$0x1] %vm528_vm4, %v3226_v10  ;;  %6205 = vmatpush3.bf16.msra.mxu0 %v7555_v16 }
0x16c8   :  { %6206 = vmatprep.subr.bf16.mxu0 %v6383_v0 }
0x16c9   :  { %v1068_v55 = vpop.permute.xlu0 %1067 }
0x16ca   :  { %5944 = vmatmul.mubr.msk.f32.vlgmr.msra.gmra.mrb[18].mxu0 %vm62_vm2, %v4688_v40  ;;  %1072 = vst.msk [vmem:[%s7829_s9 + $0xe] sm:$0x1] %vm528_vm4, %v1068_v55  ;;  %v3725_v12 = vpop.permute.xlu1 %3724 }
0x16cb   :  { %3730 = vst.msk [vmem:[%s7829_s9 + $0x6] sm:$0x1] %vm488_vm3, %v3725_v12  ;;  %6208 = vmatpush3.bf16.msra.mxu0 %v7545_v38  ;;  %5954 = vmatprep.mubr.msk.f32.mxu0 %vm6384_vm0, %v6385_v4 }
0x16cc   :  { %6209 = vmatprep.subr.bf16.mxu0 %v6383_v0 }
0x16cd   :  { %v1571_v30 = vpop.permute.xlu0 %1570 }
0x16ce   :  { %1575 = vst.msk [vmem:[%s7829_s9 + $0xa] sm:$0x1] %vm488_vm3, %v1571_v30  ;;  %v3764_v27 = vpop.permute.xlu1 %3763 }
0x16cf   :  { %3769 = vst.msk [vmem:[%s7829_s9 + $0x1] sm:$0x1] %vm528_vm4, %v3764_v27  ;;  %6211 = vmatpush3.bf16.msra.mxu0 %v7555_v16 }
0x16d0   :  { %6212 = vmatprep.subr.bf16.mxu0 %v6383_v0 }
0x16d1   :  { %v1610_v1 = vpop.permute.xlu0 %1609 }
0x16d2   :  { %5955 = vmatmul.mubr.msk.f32.vlgmr.msra.gmra.mrb[12].mxu0 %vm62_vm2, %v7352_v3  ;;  %1614 = vst.msk [vmem:[%s7829_s9 + $0xd] sm:$0x1] %vm528_vm4, %v1610_v1  ;;  %v4263_v23 = vpop.permute.xlu1 %4262 }
0x16d3   :  { %4268 = vst.msk [vmem:[%s7829_s9 + $0x7] sm:$0x1] %vm488_vm3, %v4263_v23  ;;  %6214 = vmatpush3.bf16.msra.mxu0 %v7545_v38  ;;  %5965 = vmatprep.mubr.msk.f32.mxu0 %vm6384_vm0, %v6385_v4 }
0x16d4   :  { %6215 = vmatprep.subr.bf16.mxu0 %v6383_v0 }
0x16d5   :  { %v2113_v51 = vpop.permute.xlu0 %2112 }
0x16d6   :  { %2117 = vst.msk [vmem:[%s7829_s9 + $0xb] sm:$0x1] %vm488_vm3, %v2113_v51  ;;  %v4302_v3 = vpop.permute.xlu1 %4301 }
0x16d7   :  { %4307 = vst.msk [vmem:[%s7829_s9] sm:$0x1] %vm528_vm4, %v4302_v3  ;;  %6217 = vmatpush3.bf16.msra.mxu0 %v7555_v16 }
0x16d8   :  { %6218 = vmatprep.subr.bf16.mxu0 %v6383_v0 }
0x16d9   :  { %v2152_v54 = vpop.permute.xlu0 %2151 }
0x16da   :  { %5966 = vmatmul.mubr.msk.f32.vlgmr.msra.gmra.mrb[38].mxu0 %vm62_vm2, %v4890_v13  ;;  %2156 = vst.msk [vmem:[%s7829_s9 + $0xc] sm:$0x1] %vm528_vm4, %v2152_v54  ;;  %v5200_v39 = vpop.permute.xlu1 %5199 }
0x16db   :  { %5203 = vst.msk [vmem:[%s7830_s11] sm:$0x3] %vm5202_vm6, %v5200_v39  ;;  %6220 = vmatpush3.bf16.msra.mxu0 %v7545_v38  ;;  %5976 = vmatprep.mubr.msk.f32.mxu0 %vm6384_vm0, %v6385_v4 }
0x16dc   :  { %6221 = vmatprep.subr.bf16.mxu0 %v6383_v0 }
0x16dd   :  { %v5206_v44 = vpop.permute.xlu0 %5205 }
0x16de   :  { %5208 = vst.msk [vmem:[%s7831_s12] sm:$0x3] %vm5196_vm5, %v5206_v44 }
0x16df   :  { %5209 = vst.msk [vmem:[%s7831_s12] sm:$0x3] %vm5202_vm6, %v7250_v24  ;;  %6223 = vmatpush3.bf16.msra.mxu0 %v7555_v16 }
0x16e0   :  { %6224 = vmatprep.subr.bf16.mxu0 %v6383_v0 }
0x16e1   :  { %v2651_v45 = vpop.permute.xlu0 %2650 }
0x16e2   :  { %5977 = vmatmul.mubr.msk.f32.vlgmr.msra.gmra.mrb[40].mxu0 %vm62_vm2, %v7368_v31  ;;  %2655 = vst.msk [vmem:[%s7829_s9 + $0xc] sm:$0x1] %vm488_vm3, %v2651_v45 }
0x16e3   :  { %6226 = vmatpush3.bf16.msra.mxu0 %v7545_v38  ;;  %5987 = vmatprep.mubr.msk.f32.mxu0 %vm6384_vm0, %v6385_v4 }
0x16e4   :  { %6227 = vmatprep.subr.bf16.mxu0 %v6383_v0 }
0x16e5   :  { %v2690_v24 = vpop.permute.xlu0 %2689 }
0x16e6   :  { %2694 = vst.msk [vmem:[%s7829_s9 + $0xb] sm:$0x1] %vm528_vm4, %v2690_v24 }
0x16e7   :  { %6229 = vmatpush3.bf16.msra.mxu0 %v7555_v16 }
0x16e9   :  { %v3189_v31 = vpop.permute.xlu0 %3188 }
0x16ea   :  { %5988 = vmatmul.mubr.msk.f32.vlgmr.msra.gmra.mrb[42].mxu0 %vm62_vm2, %v7574_v35  ;;  %3193 = vst.msk [vmem:[%s7829_s9 + $0xd] sm:$0x1] %vm488_vm3, %v3189_v31 }
0x16ed   :  { %v3228_v4 = vpop.permute.xlu0 %3227 }
0x16ee   :  { %3232 = vst.msk [vmem:[%s7829_s9 + $0xa] sm:$0x1] %vm528_vm4, %v3228_v4 }
0x16f1   :  { %v3727_v0 = vpop.permute.xlu0 %3726 }
0x16f2   :  { %3731 = vst.msk [vmem:[%s7829_s9 + $0xe] sm:$0x1] %vm488_vm3, %v3727_v0 }
0x16f5   :  { %v3766_v37 = vpop.permute.xlu0 %3765 }
0x16f6   :  { %3770 = vst.msk [vmem:[%s7829_s9 + $0x9] sm:$0x1] %vm528_vm4, %v3766_v37 }
0x16f9   :  { %v4265_v49 = vpop.permute.xlu0 %4264 }
0x16fa   :  { %4269 = vst.msk [vmem:[%s7829_s9 + $0xf] sm:$0x1] %vm488_vm3, %v4265_v49 }
0x16fd   :  { %v4304_v21 = vpop.permute.xlu0 %4303 }
0x16fe   :  { %4308 = vst.msk [vmem:[%s7829_s9 + $0x8] sm:$0x1] %vm528_vm4, %v4304_v21 }
0x1785   :  { %v4453_v60 = vpop.f32.mrb[36].mxu0 }
0x1786   :  { %v4464_v20 = vrot.slane %v4453_v60, %v7254_v33  ;;  %v5912_v61 = vpop.f32.mrb[37].mxu0 }
0x1788   :  { %v4465_v8 = vcombine.high %v4464_v20, %v4464_v20  ;;  %v4472_v59 = vrot.slane %v4464_v20, %v7254_v33 }
0x178a   :  { %v4479_v52 = vrot.slane %v4465_v8, %v7254_v33  ;;  %4483 = vst.msk [vmem:[%s7832_s10] sm:$0x1] %vm4482_vm7, %v4472_v59 }
0x178c   :  { %4484 = vst.msk [vmem:[%s7832_s10 + $0x8] sm:$0x1] %vm4482_vm7, %v4479_v52 }
0x178d   :  { %v4555_v28 = vpop.f32.mrb[30].mxu0 }
0x178e   :  { %v4566_v6 = vrot.slane %v4555_v28, %v7254_v33  ;;  %v5923_v43 = vpop.f32.mrb[31].mxu0 }
0x1790   :  { %v4567_v62 = vcombine.high %v4566_v6, %v4566_v6  ;;  %v4574_v19 = vrot.slane %v4566_v6, %v7254_v33 }
0x1792   :  { %v4581_v26 = vrot.slane %v4567_v62, %v7254_v33  ;;  %4584 = vst.msk [vmem:[%s7832_s10 + $0x1] sm:$0x1] %vm4482_vm7, %v4574_v19 }
0x1794   :  { %4585 = vst.msk [vmem:[%s7832_s10 + $0x9] sm:$0x1] %vm4482_vm7, %v4581_v26 }
0x1795   :  { %v4656_v58 = vpop.f32.mrb[24].mxu0 }
0x1796   :  { %v4667_v50 = vrot.slane %v4656_v58, %v7254_v33  ;;  %v5934_v48 = vpop.f32.mrb[25].mxu0 }
0x1798   :  { %v4668_v32 = vcombine.high %v4667_v50, %v4667_v50  ;;  %v4675_v22 = vrot.slane %v4667_v50, %v7254_v33 }
0x179a   :  { %v4682_v63 = vrot.slane %v4668_v32, %v7254_v33  ;;  %4685 = vst.msk [vmem:[%s7832_s10 + $0x2] sm:$0x1] %vm4482_vm7, %v4675_v22 }
0x179c   :  { %4686 = vst.msk [vmem:[%s7832_s10 + $0xa] sm:$0x1] %vm4482_vm7, %v4682_v63 }
0x179d   :  { %v4757_v14 = vpop.f32.mrb[18].mxu0 }
0x179e   :  { %v4768_v9 = vrot.slane %v4757_v14, %v7254_v33  ;;  %v5945_v17 = vpop.f32.mrb[19].mxu0 }
0x17a0   :  { %v4769_v2 = vcombine.high %v4768_v9, %v4768_v9  ;;  %v4776_v34 = vrot.slane %v4768_v9, %v7254_v33 }
0x17a2   :  { %v4783_v5 = vrot.slane %v4769_v2, %v7254_v33  ;;  %4786 = vst.msk [vmem:[%s7832_s10 + $0x3] sm:$0x1] %vm4482_vm7, %v4776_v34 }
0x17a4   :  { %4787 = vst.msk [vmem:[%s7832_s10 + $0xb] sm:$0x1] %vm4482_vm7, %v4783_v5 }
0x17a5   :  { %v4858_v38 = vpop.f32.mrb[12].mxu0 }
0x17a6   :  { %v4869_v15 = vrot.slane %v4858_v38, %v7254_v33  ;;  %v5956_v47 = vpop.f32.mrb[13].mxu0 }
0x17a8   :  { %v4870_v29 = vcombine.high %v4869_v15, %v4869_v15  ;;  %v4877_v16 = vrot.slane %v4869_v15, %v7254_v33 }
0x17aa   :  { %v4884_v46 = vrot.slane %v4870_v29, %v7254_v33  ;;  %4887 = vst.msk [vmem:[%s7832_s10 + $0x4] sm:$0x1] %vm4482_vm7, %v4877_v16 }
0x17ac   :  { %4888 = vst.msk [vmem:[%s7832_s10 + $0xc] sm:$0x1] %vm4482_vm7, %v4884_v46 }
0x17ad   :  { %v4959_v40 = vpop.f32.mrb[38].mxu0 }
0x17ae   :  { %v4960_v13 = vadd.f32 %v4959_v40, %v6849_v36  ;;  %v5967_v25 = vpop.f32.mrb[39].mxu0 }
0x17b0   :  { %v4970_v35 = vrot.slane %v4960_v13, %v7254_v33 }
0x17b2   :  { %v4971_v7 = vcombine.high %v4970_v35, %v4970_v35  ;;  %v4978_v53 = vrot.slane %v4970_v35, %v7254_v33 }
0x17b4   :  { %v4985_v18 = vrot.slane %v4971_v7, %v7254_v33  ;;  %4988 = vst.msk [vmem:[%s7832_s10 + $0x5] sm:$0x1] %vm4482_vm7, %v4978_v53 }
0x17b5   :  { %v5060_v11 = vpop.f32.mrb[40].mxu0 }
0x17b6   :  { %4989 = vst.msk [vmem:[%s7832_s10 + $0xd] sm:$0x1] %vm4482_vm7, %v4985_v18  ;;  %v5061_v36 = vadd.f32 %v5060_v11, %v6746_v57  ;;  %v5978_v56 = vpop.f32.mrb[41].mxu0 }
0x17b8   :  { %v5071_v42 = vrot.slane %v5061_v36, %v7254_v33 }
0x17ba   :  { %v5072_v10 = vcombine.high %v5071_v42, %v5071_v42  ;;  %v5079_v55 = vrot.slane %v5071_v42, %v7254_v33 }
0x17bc   :  { %v5086_v12 = vrot.slane %v5072_v10, %v7254_v33  ;;  %5089 = vst.msk [vmem:[%s7832_s10 + $0x6] sm:$0x1] %vm4482_vm7, %v5079_v55 }
0x17bd   :  { %v5161_v30 = vpop.f32.mrb[42].mxu0 }
0x17be   :  { %5090 = vst.msk [vmem:[%s7832_s10 + $0xe] sm:$0x1] %vm4482_vm7, %v5086_v12  ;;  %v5162_v57 = vadd.f32 %v5161_v30, %v6652_v41  ;;  %v5989_v27 = vpop.f32.mrb[43].mxu0 }
0x17c0   :  { %v5172_v1 = vrot.slane %v5162_v57, %v7254_v33 }
0x17c2   :  { %v5173_v23 = vcombine.high %v5172_v1, %v5172_v1  ;;  %v5180_v51 = vrot.slane %v5172_v1, %v7254_v33 }
0x17c4   :  { %v5187_v3 = vrot.slane %v5173_v23, %v7254_v33  ;;  %5190 = vst.msk [vmem:[%s7832_s10 + $0x7] sm:$0x1] %vm4482_vm7, %v5180_v51 }
0x17c6   :  { %5191 = vst.msk [vmem:[%s7832_s10 + $0xf] sm:$0x1] %vm4482_vm7, %v5187_v3 }

</bundles_post_ra>
